<compile_context>
chip_gen: v5e
topology: v5e:2x2
jax: 0.10.0
libtpu: 0.0.40
codegen_flags: <defaults>
</compile_context>

<pallas_src>
import functools
import math

import jax
import jax.numpy as jnp
from jax import lax
from jax.experimental import pallas as pl
from jax.experimental.pallas import tpu as pltpu

LN_EPS = 1e-4  # glow-tts attentions.LayerNorm eps

LAYER_KEYS = ("wqkv", "bqkv", "wo", "bo", "g1", "be1",
              "fw1", "fb1", "fw2", "fb2", "g2", "be2")
HEAD_KEYS = ("wms", "bms", "dw1", "db1", "dg1", "dbe1",
             "dw2", "db2", "dg2", "dbe2", "dpw", "dpb")


# --------------------------------------------------------------------- in-kernel helpers
def _layer_norm(x, g, b):
    """glow-tts channel LayerNorm (channels = last dim in our layout), eps=1e-4."""
    mean = jnp.mean(x, axis=-1, keepdims=True)
    var = jnp.mean(jnp.square(x - mean), axis=-1, keepdims=True)
    return (x - mean) * lax.rsqrt(var + LN_EPS) * g + b


def _shift_rows(x, s):
    """result[t] = x[t + s] along time (sublanes), zero-filled out of range. Static s."""
    T = x.shape[0]
    if s == 0:
        return x
    if s > 0:
        pad = jnp.zeros((s,) + x.shape[1:], x.dtype)
        return jnp.concatenate([x[s:], pad], axis=0)
    pad = jnp.zeros((-s,) + x.shape[1:], x.dtype)
    return jnp.concatenate([pad, x[:T + s]], axis=0)


def _conv1d_same(x, w_ref, bias, k):
    """'same' Conv1d on a (T, Cin) f32 tile as ONE bf16 matmul over the k*Cin contraction.

    w_ref: (k*Cin, Cout) bf16 == torch (Cout, Cin, k).transpose(2, 1, 0).reshape(k*Cin, Cout).
    """
    pad = k // 2
    taps = [_shift_rows(x, d - pad) for d in range(k)]
    xk = (taps[0] if k == 1 else jnp.concatenate(taps, axis=-1)).astype(jnp.bfloat16)
    return jnp.dot(xk, w_ref[...], preferred_element_type=jnp.float32) + bias


# --------------------------------------------------------------------------- fused kernel
def _text_encoder_kernel(lens_ref, x_ref, *refs, n_layers, n_heads, dk, k, out_ch):
    out_ref = refs[-1]
    wrefs = refs[:-1]
    T, H = x_ref.shape
    P = out_ref.shape[-1]

    b = pl.program_id(0)
    length = lens_ref[b]                                            # SMEM scalar prefetch
    row = lax.broadcasted_iota(jnp.int32, (T, 1), 0)
    col = lax.broadcasted_iota(jnp.int32, (1, T), 1)
    m = (row < length).astype(jnp.float32)                          # (T, 1) time mask
    key_keep = col < length                                         # key-side mask only:
    mH = jnp.broadcast_to(m, (T, H))                                # (padded query rows are
                                                                    #  re-masked at the head)
    idx = 0

    def take(n):
        nonlocal idx
        r = wrefs[idx:idx + n]
        idx += n
        return r

    x = x_ref[...]                                                  # (T, H) f32
    neg = jnp.float32(-1e4)

    # ------------------------------------------- attentions.Encoder, all layers fused
    for _ in range(n_layers):
        (wqkv, bqkv, wo, bo, g1, be1, fw1, fb1, fw2, fb2, g2, be2) = take(12)
        xm = x * mH                                                 # x = x * x_mask
        qkv = jnp.dot(xm.astype(jnp.bfloat16), wqkv[...],
                      preferred_element_type=jnp.float32) + bqkv[...]   # (T, 3H) fused q|k|v
        wo_v = wo[...]                                              # (H, H) bf16
        acc = jnp.zeros((T, H), jnp.float32)
        # TODO(synk): flash-style key tiling here for long T (v7x 64 MiB VMEM).
        for h in range(n_heads):
            sl = slice(h * dk, (h + 1) * dk)
            qh = qkv[:, sl].astype(jnp.bfloat16)                    # 1/sqrt(dk) pre-folded
            kh = qkv[:, H + h * dk:H + (h + 1) * dk].astype(jnp.bfloat16)
            vh = qkv[:, 2 * H + h * dk:2 * H + (h + 1) * dk].astype(jnp.bfloat16)
            s = lax.dot_general(qh, kh, (((1,), (1,)), ((), ())),
                                preferred_element_type=jnp.float32)     # q @ k^T
            s = jnp.where(key_keep, s, neg)                              # masked_fill(-1e4)
            s = s - jnp.max(s, axis=-1, keepdims=True)
            p = jnp.exp(s)
            p = p * (1.0 / jnp.sum(p, axis=-1, keepdims=True))
            ctx = jnp.dot(p.astype(jnp.bfloat16), vh,
                          preferred_element_type=jnp.float32)            # (T, dk)
            # concat-free head merge: sum_h ctx_h @ Wo[h*dk:(h+1)*dk, :]
            acc = acc + jnp.dot(ctx.astype(jnp.bfloat16), wo_v[sl, :],
                                preferred_element_type=jnp.float32)
        y = acc + bo[...]
        x1 = _layer_norm(xm + y, g1[...], be1[...])                 # norm_1(x + y)

        # FFN: conv_2(relu(conv_1(x * mask)) * mask) * mask
        h1 = jnp.maximum(_conv1d_same(x1 * mH, fw1, fb1[...], k), 0.0)
        y2 = _conv1d_same(h1 * jnp.broadcast_to(m, h1.shape), fw2, fb2[...], k) * mH
        x = _layer_norm(x1 + y2, g2[...], be2[...])                 # norm_2(x + y)

    # -------------------------------- head: final mask + proj_m|proj_s + DurationPredictor
    (wms, bms, dw1, db1, dg1, dbe1, dw2, db2, dg2, dbe2, dpw, dpb) = take(12)
    xm = x * mH                                                     # final encoder mask

    # wms/bms are zero-padded to the lane-dense slab width P; columns [0, 2*out) hold
    # the fused proj_m|proj_s — one lane-aligned matmul, unmasked slab store.
    slab = jnp.dot(xm.astype(jnp.bfloat16), wms[...],
                   preferred_element_type=jnp.float32) + bms[...]   # (T, P)

    # DurationPredictor on x_dp = detach(x * mask) (identity); dropout = identity (eval).
    d = _layer_norm(jnp.maximum(_conv1d_same(xm, dw1, db1[...], k), 0.0),
                    dg1[...], dbe1[...])
    mD = jnp.broadcast_to(m, d.shape)
    d = _layer_norm(jnp.maximum(_conv1d_same(d * mD, dw2, db2[...], k), 0.0),
                    dg2[...], dbe2[...])
    # 1x1 proj (Fdp -> 1): elementwise multiply + lane reduce instead of an N=1 MXU matmul.
    logw = jnp.sum((d * mD) * dpw[...], axis=-1, keepdims=True) + dpb[...]   # (T, 1)

    onehot = (lax.broadcasted_iota(jnp.int32, (1, P), 1) == 2 * out_ch).astype(jnp.float32)
    out_ref[...] = (slab + logw * onehot) * m                       # masked lane-dense slab


# --------------------------------------------------------------------------- params
def init_params(key, cfg):
    """Canonical f32 parameters (torch-equivalent layouts, channels last)."""
    H = cfg["hidden_channels"]
    F_ = cfg["filter_channels"]
    Fdp = cfg["filter_channels_dp"]
    k = cfg["kernel_size"]
    out = cfg["out_channels"]
    nv = cfg["n_vocab"]
    L = cfg["n_layers"]

    keys = iter(jax.random.split(key, 512))

    def nrm(shape, scale=0.1):
        return (scale * jax.random.normal(next(keys), shape)).astype(jnp.float32)

    def bias(c):
        return nrm((1, c), 0.05)

    p = {"emb": nrm((nv, H), H ** (-0.5))}          # nn.init.normal_(emb, 0, H^-0.5)

    layers = []
    for _ in range(L):
        layers.append({
            # fused q|k|v 1x1 convs: (H, 3H) == concat of torch (H, H) weights^T
            "wqkv": nrm((H, 3 * H)), "bqkv": bias(3 * H),
            "wo": nrm((H, H)), "bo": bias(H),
            "g1": jnp.ones((1, H), jnp.float32), "be1": jnp.zeros((1, H), jnp.float32),
            # k-tap convs stored as (k, Cin, Cout) == torch (Cout, Cin, k).transpose(2,1,0)
            "fw1": nrm((k, H, F_)), "fb1": bias(F_),
            "fw2": nrm((k, F_, H)), "fb2": bias(H),
            "g2": jnp.ones((1, H), jnp.float32), "be2": jnp.zeros((1, H), jnp.float32),
        })
    p["layers"] = layers

    p["wms"], p["bms"] = nrm((H, 2 * out)), bias(2 * out)           # proj_m | proj_s fused
    p["dp_w1"], p["dp_b1"] = nrm((k, H, Fdp)), bias(Fdp)
    p["dp_g1"], p["dp_be1"] = jnp.ones((1, Fdp), jnp.float32), jnp.zeros((1, Fdp), jnp.float32)
    p["dp_w2"], p["dp_b2"] = nrm((k, Fdp, Fdp)), bias(Fdp)
    p["dp_g2"], p["dp_be2"] = jnp.ones((1, Fdp), jnp.float32), jnp.zeros((1, Fdp), jnp.float32)
    p["dp_pw"], p["dp_pb"] = nrm((Fdp, 1)), bias(1)
    return p


def prepare_params(params, cfg):
    """Canonical f32 params -> kernel-ready arrays.

    * matmul weights cast to bf16 (f32 accumulation in-kernel); biases / LN params stay f32
    * 1/sqrt(dk) softmax scale folded into the q columns of the fused qkv weight + bias
    * k-tap conv weights reshaped (k, Cin, Cout) -> (k*Cin, Cout) for a single matmul
    * proj_m|proj_s weight/bias zero-padded to the lane-dense (128-multiple) slab width
    * DurationPredictor 1x1 proj stored as a (1, Fdp) f32 row (lane reduce in-kernel)
    """
    H = cfg["hidden_channels"]
    out = cfg["out_channels"]
    dk = H // cfg["n_heads"]
    P = -(-(2 * out + 1) // 128) * 128

    def conv_w(w):
        kk, cin, cout = w.shape
        return w.reshape(kk * cin, cout).astype(jnp.bfloat16)

    qscale = jnp.concatenate([jnp.full((H,), dk ** (-0.5), jnp.float32),
                              jnp.ones((2 * H,), jnp.float32)])

    kp = {"emb": params["emb"]}
    layers = []
    for lp in params["layers"]:
        layers.append({
            "wqkv": (lp["wqkv"] * qscale[None, :]).astype(jnp.bfloat16),
            "bqkv": lp["bqkv"] * qscale[None, :],
            "wo": lp["wo"].astype(jnp.bfloat16), "bo": lp["bo"],
            "g1": lp["g1"], "be1": lp["be1"],
            "fw1": conv_w(lp["fw1"]), "fb1": lp["fb1"],
            "fw2": conv_w(lp["fw2"]), "fb2": lp["fb2"],
            "g2": lp["g2"], "be2": lp["be2"],
        })
    kp["layers"] = layers

    wms = jnp.zeros((H, P), jnp.float32).at[:, :2 * out].set(params["wms"])
    bms = jnp.zeros((1, P), jnp.float32).at[:, :2 * out].set(params["bms"])
    kp.update({
        "wms": wms.astype(jnp.bfloat16), "bms": bms,
        "dw1": conv_w(params["dp_w1"]), "db1": params["dp_b1"],
        "dg1": params["dp_g1"], "dbe1": params["dp_be1"],
        "dw2": conv_w(params["dp_w2"]), "db2": params["dp_b2"],
        "dg2": params["dp_g2"], "dbe2": params["dp_be2"],
        "dpw": jnp.transpose(params["dp_pw"]),        # (1, Fdp) f32
        "dpb": params["dp_pb"],
    })
    return kp


# --------------------------------------------------------------------------- forward
def text_encoder_forward(kparams, cfg, ids, x_lengths):
    H = cfg["hidden_channels"]
    nH = cfg["n_heads"]
    k = cfg["kernel_size"]
    out = cfg["out_channels"]
    L = cfg["n_layers"]
    B, T = ids.shape

    # emb(x) * sqrt(H) — embedding gather is parameter-setup glue, done in plain JAX.
    x = kparams["emb"][ids] * math.sqrt(H)                           # (B, T, H) f32
    x_lengths = x_lengths.astype(jnp.int32)

    weights = []
    for lp in kparams["layers"]:
        weights += [lp[key] for key in LAYER_KEYS]
    weights += [kparams[key] for key in HEAD_KEYS]

    P = kparams["wms"].shape[1]                                      # lane-dense slab width
    kern = functools.partial(_text_encoder_kernel, n_layers=L, n_heads=nH,
                             dk=H // nH, k=k, out_ch=out)

    # TODO(synk): at real glow-tts sizes, add pipeline_mode=pl.Buffered(1) on the constant
    #             weight specs to single-buffer them (v5e scoped-VMEM headroom).
    def wspec(w):
        nd = w.ndim
        return pl.BlockSpec(w.shape, lambda b, lens, _nd=nd: (0,) * _nd)

    slab = pl.pallas_call(
        kern,
        out_shape=jax.ShapeDtypeStruct((B, T, P), jnp.float32),
        grid_spec=pltpu.PrefetchScalarGridSpec(
            num_scalar_prefetch=1,              # x_lengths -> SMEM; mask built in-kernel
            grid=(B,),
            in_specs=[pl.BlockSpec((None, T, H), lambda b, lens: (b, 0, 0))]
                     + [wspec(w) for w in weights],
            out_specs=pl.BlockSpec((None, T, P), lambda b, lens: (b, 0, 0)),
        ),
        compiler_params=pltpu.CompilerParams(
            dimension_semantics=("parallel",),
            vmem_limit_bytes=32 * 1024 * 1024),
    )(x_lengths, x, *weights)

    x_m = slab[..., :out]
    x_logs = slab[..., out:2 * out]
    logw = slab[..., 2 * out:2 * out + 1]
    # commons.sequence_mask(x_lengths, T).unsqueeze(1) -> (B, T, 1) in our layout
    x_mask = (jnp.arange(T)[None, :] < x_lengths[:, None]
              ).astype(jnp.float32)[:, :, None]
    return x_m, x_logs, logw, x_mask


# ----------------------------------------------------------------------------- main
if __name__ == "__main__":
    cfg = dict(
        n_vocab=50, out_channels=4, hidden_channels=32, filter_channels=64,
        filter_channels_dp=64, n_heads=2, n_layers=2, kernel_size=3, p_dropout=0.1,
    )
    key = jax.random.PRNGKey(0)
    pkey, ikey = jax.random.split(key)
    params = prepare_params(init_params(pkey, cfg), cfg)

    B, T = 2, 16
    ids = jax.random.randint(ikey, (B, T), 0, cfg["n_vocab"], dtype=jnp.int32)
    x_lengths = jnp.array([16, 11], dtype=jnp.int32)

    x_m, x_logs, logw, x_mask = text_encoder_forward(params, cfg, ids, x_lengths)
    jax.block_until_ready((x_m, x_logs, logw, x_mask))

    assert x_m.shape == (B, T, cfg["out_channels"])
    assert x_logs.shape == (B, T, cfg["out_channels"])
    assert logw.shape == (B, T, 1)
    assert x_mask.shape == (B, T, 1)
    assert bool(jnp.all(jnp.isfinite(x_m))) and bool(jnp.all(jnp.isfinite(x_logs)))
    assert bool(jnp.all(jnp.isfinite(logw)))
    # padded positions must be zeroed by the mask
    assert bool(jnp.all(jnp.where(x_mask == 0.0, x_m, 0.0) == 0.0))
    print("KERNEL_OK")
</pallas_src>

<mosaic_0001>
module attributes {stable_mosaic.version = 11 : i64} {
  func.func @_text_encoder_kernel(%arg0: i32, %arg1: memref<2xi32, #tpu.memory_space<smem>>, %arg2: memref<1x16x32xf32, #tpu.memory_space<vmem>>, %arg3: memref<32x96xbf16, #tpu.memory_space<vmem>>, %arg4: memref<1x96xf32, #tpu.memory_space<vmem>>, %arg5: memref<32x32xbf16, #tpu.memory_space<vmem>>, %arg6: memref<1x32xf32, #tpu.memory_space<vmem>>, %arg7: memref<1x32xf32, #tpu.memory_space<vmem>>, %arg8: memref<1x32xf32, #tpu.memory_space<vmem>>, %arg9: memref<96x64xbf16, #tpu.memory_space<vmem>>, %arg10: memref<1x64xf32, #tpu.memory_space<vmem>>, %arg11: memref<192x32xbf16, #tpu.memory_space<vmem>>, %arg12: memref<1x32xf32, #tpu.memory_space<vmem>>, %arg13: memref<1x32xf32, #tpu.memory_space<vmem>>, %arg14: memref<1x32xf32, #tpu.memory_space<vmem>>, %arg15: memref<32x96xbf16, #tpu.memory_space<vmem>>, %arg16: memref<1x96xf32, #tpu.memory_space<vmem>>, %arg17: memref<32x32xbf16, #tpu.memory_space<vmem>>, %arg18: memref<1x32xf32, #tpu.memory_space<vmem>>, %arg19: memref<1x32xf32, #tpu.memory_space<vmem>>, %arg20: memref<1x32xf32, #tpu.memory_space<vmem>>, %arg21: memref<96x64xbf16, #tpu.memory_space<vmem>>, %arg22: memref<1x64xf32, #tpu.memory_space<vmem>>, %arg23: memref<192x32xbf16, #tpu.memory_space<vmem>>, %arg24: memref<1x32xf32, #tpu.memory_space<vmem>>, %arg25: memref<1x32xf32, #tpu.memory_space<vmem>>, %arg26: memref<1x32xf32, #tpu.memory_space<vmem>>, %arg27: memref<32x128xbf16, #tpu.memory_space<vmem>>, %arg28: memref<1x128xf32, #tpu.memory_space<vmem>>, %arg29: memref<96x64xbf16, #tpu.memory_space<vmem>>, %arg30: memref<1x64xf32, #tpu.memory_space<vmem>>, %arg31: memref<1x64xf32, #tpu.memory_space<vmem>>, %arg32: memref<1x64xf32, #tpu.memory_space<vmem>>, %arg33: memref<192x64xbf16, #tpu.memory_space<vmem>>, %arg34: memref<1x64xf32, #tpu.memory_space<vmem>>, %arg35: memref<1x64xf32, #tpu.memory_space<vmem>>, %arg36: memref<1x64xf32, #tpu.memory_space<vmem>>, %arg37: memref<1x64xf32, #tpu.memory_space<vmem>>, %arg38: memref<1x1xf32, #tpu.memory_space<vmem>>, %arg39: memref<1x16x128xf32, #tpu.memory_space<vmem>>) attributes {dimension_semantics = [#tpu.dimension_semantics<parallel>], iteration_bounds = array<i64: 2>, scalar_prefetch = 1 : i64, scratch_operands = 0 : i64, tpu.core_type = #tpu.core_type<tc>, window_params = [{transform_indices = @transform_0, window_bounds = array<i64: 1, 16, 32>}, {pipeline_mode = #tpu.pipeline_mode<synchronous>, transform_indices = @transform_1, window_bounds = array<i64: 32, 96>}, {pipeline_mode = #tpu.pipeline_mode<synchronous>, transform_indices = @transform_2, window_bounds = array<i64: 1, 96>}, {pipeline_mode = #tpu.pipeline_mode<synchronous>, transform_indices = @transform_3, window_bounds = array<i64: 32, 32>}, {pipeline_mode = #tpu.pipeline_mode<synchronous>, transform_indices = @transform_4, window_bounds = array<i64: 1, 32>}, {pipeline_mode = #tpu.pipeline_mode<synchronous>, transform_indices = @transform_5, window_bounds = array<i64: 1, 32>}, {pipeline_mode = #tpu.pipeline_mode<synchronous>, transform_indices = @transform_6, window_bounds = array<i64: 1, 32>}, {pipeline_mode = #tpu.pipeline_mode<synchronous>, transform_indices = @transform_7, window_bounds = array<i64: 96, 64>}, {pipeline_mode = #tpu.pipeline_mode<synchronous>, transform_indices = @transform_8, window_bounds = array<i64: 1, 64>}, {pipeline_mode = #tpu.pipeline_mode<synchronous>, transform_indices = @transform_9, window_bounds = array<i64: 192, 32>}, {pipeline_mode = #tpu.pipeline_mode<synchronous>, transform_indices = @transform_10, window_bounds = array<i64: 1, 32>}, {pipeline_mode = #tpu.pipeline_mode<synchronous>, transform_indices = @transform_11, window_bounds = array<i64: 1, 32>}, {pipeline_mode = #tpu.pipeline_mode<synchronous>, transform_indices = @transform_12, window_bounds = array<i64: 1, 32>}, {pipeline_mode = #tpu.pipeline_mode<synchronous>, transform_indices = @transform_13, window_bounds = array<i64: 32, 96>}, {pipeline_mode = #tpu.pipeline_mode<synchronous>, transform_indices = @transform_14, window_bounds = array<i64: 1, 96>}, {pipeline_mode = #tpu.pipeline_mode<synchronous>, transform_indices = @transform_15, window_bounds = array<i64: 32, 32>}, {pipeline_mode = #tpu.pipeline_mode<synchronous>, transform_indices = @transform_16, window_bounds = array<i64: 1, 32>}, {pipeline_mode = #tpu.pipeline_mode<synchronous>, transform_indices = @transform_17, window_bounds = array<i64: 1, 32>}, {pipeline_mode = #tpu.pipeline_mode<synchronous>, transform_indices = @transform_18, window_bounds = array<i64: 1, 32>}, {pipeline_mode = #tpu.pipeline_mode<synchronous>, transform_indices = @transform_19, window_bounds = array<i64: 96, 64>}, {pipeline_mode = #tpu.pipeline_mode<synchronous>, transform_indices = @transform_20, window_bounds = array<i64: 1, 64>}, {pipeline_mode = #tpu.pipeline_mode<synchronous>, transform_indices = @transform_21, window_bounds = array<i64: 192, 32>}, {pipeline_mode = #tpu.pipeline_mode<synchronous>, transform_indices = @transform_22, window_bounds = array<i64: 1, 32>}, {pipeline_mode = #tpu.pipeline_mode<synchronous>, transform_indices = @transform_23, window_bounds = array<i64: 1, 32>}, {pipeline_mode = #tpu.pipeline_mode<synchronous>, transform_indices = @transform_24, window_bounds = array<i64: 1, 32>}, {pipeline_mode = #tpu.pipeline_mode<synchronous>, transform_indices = @transform_25, window_bounds = array<i64: 32, 128>}, {pipeline_mode = #tpu.pipeline_mode<synchronous>, transform_indices = @transform_26, window_bounds = array<i64: 1, 128>}, {pipeline_mode = #tpu.pipeline_mode<synchronous>, transform_indices = @transform_27, window_bounds = array<i64: 96, 64>}, {pipeline_mode = #tpu.pipeline_mode<synchronous>, transform_indices = @transform_28, window_bounds = array<i64: 1, 64>}, {pipeline_mode = #tpu.pipeline_mode<synchronous>, transform_indices = @transform_29, window_bounds = array<i64: 1, 64>}, {pipeline_mode = #tpu.pipeline_mode<synchronous>, transform_indices = @transform_30, window_bounds = array<i64: 1, 64>}, {pipeline_mode = #tpu.pipeline_mode<synchronous>, transform_indices = @transform_31, window_bounds = array<i64: 192, 64>}, {pipeline_mode = #tpu.pipeline_mode<synchronous>, transform_indices = @transform_32, window_bounds = array<i64: 1, 64>}, {pipeline_mode = #tpu.pipeline_mode<synchronous>, transform_indices = @transform_33, window_bounds = array<i64: 1, 64>}, {pipeline_mode = #tpu.pipeline_mode<synchronous>, transform_indices = @transform_34, window_bounds = array<i64: 1, 64>}, {pipeline_mode = #tpu.pipeline_mode<synchronous>, transform_indices = @transform_35, window_bounds = array<i64: 1, 64>}, {pipeline_mode = #tpu.pipeline_mode<synchronous>, transform_indices = @transform_36, window_bounds = array<i64: 1, 1>}, {transform_indices = @transform_37, window_bounds = array<i64: 1, 16, 128>}]} {
    %0 = arith.index_cast %arg0 : i32 to index
    %1 = memref.load %arg1[%0] : memref<2xi32, #tpu.memory_space<smem>>
    %2 = tpu.iota {dimensions = array<i32: 0>} : vector<16x1xi32>
    %3 = tpu.iota {dimensions = array<i32: 1>} : vector<1x16xi32>
    %4 = vector.broadcast %1 : i32 to vector<16x1xi32>
    %5 = arith.cmpi slt, %2, %4 : vector<16x1xi32>
    %6 = arith.extui %5 : vector<16x1xi1> to vector<16x1xi32>
    %7 = arith.sitofp %6 : vector<16x1xi32> to vector<16x1xf32>
    %8 = vector.broadcast %1 : i32 to vector<1x16xi32>
    %9 = arith.cmpi slt, %3, %8 : vector<1x16xi32>
    %10 = vector.shape_cast %7 : vector<16x1xf32> to vector<16x1xf32>
    %11 = vector.broadcast %10 : vector<16x1xf32> to vector<16x32xf32>
    %c0 = arith.constant 0 : index
    %c0_0 = arith.constant 0 : index
    %c0_1 = arith.constant 0 : index
    %12 = vector.load %arg2[%c0, %c0_0, %c0_1] : memref<1x16x32xf32, #tpu.memory_space<vmem>>, vector<1x16x32xf32>
    %13 = vector.shape_cast %12 : vector<1x16x32xf32> to vector<16x32xf32>
    %14 = arith.mulf %13, %11 : vector<16x32xf32>
    %15 = arith.truncf %14 : vector<16x32xf32> to vector<16x32xbf16>
    %c0_2 = arith.constant 0 : index
    %c0_3 = arith.constant 0 : index
    %16 = vector.load %arg3[%c0_2, %c0_3] : memref<32x96xbf16, #tpu.memory_space<vmem>>, vector<32x96xbf16>
    %cst = arith.constant dense<0.000000e+00> : vector<16x96xf32>
    %17 = tpu.matmul %15, %16, %cst {dimension_numbers = #tpu.dot_dimension_numbers<[1], [0], [0], [1], [0, 0, 1, 1], [], []>} : vector<16x32xbf16>, vector<32x96xbf16>, vector<16x96xf32> -> vector<16x96xf32>
    %c0_4 = arith.constant 0 : index
    %c0_5 = arith.constant 0 : index
    %18 = vector.load %arg4[%c0_4, %c0_5] : memref<1x96xf32, #tpu.memory_space<vmem>>, vector<1x96xf32>
    %19 = vector.broadcast %18 : vector<1x96xf32> to vector<16x96xf32>
    %20 = arith.addf %17, %19 : vector<16x96xf32>
    %c0_6 = arith.constant 0 : index
    %c0_7 = arith.constant 0 : index
    %21 = vector.load %arg5[%c0_6, %c0_7] : memref<32x32xbf16, #tpu.memory_space<vmem>>, vector<32x32xbf16>
    %cst_8 = arith.constant 0.000000e+00 : f32
    %22 = vector.broadcast %cst_8 : f32 to vector<16x32xf32>
    %23 = vector.extract_strided_slice %20 {offsets = [0, 0], sizes = [16, 16], strides = [1, 1]} : vector<16x96xf32> to vector<16x16xf32>
    %24 = arith.truncf %23 : vector<16x16xf32> to vector<16x16xbf16>
    %25 = vector.extract_strided_slice %20 {offsets = [0, 32], sizes = [16, 16], strides = [1, 1]} : vector<16x96xf32> to vector<16x16xf32>
    %26 = arith.truncf %25 : vector<16x16xf32> to vector<16x16xbf16>
    %27 = vector.extract_strided_slice %20 {offsets = [0, 64], sizes = [16, 16], strides = [1, 1]} : vector<16x96xf32> to vector<16x16xf32>
    %28 = arith.truncf %27 : vector<16x16xf32> to vector<16x16xbf16>
    %cst_9 = arith.constant dense<0.000000e+00> : vector<16x16xf32>
    %29 = tpu.matmul %24, %26, %cst_9 {dimension_numbers = #tpu.dot_dimension_numbers<[1], [1], [0], [0], [0, 0, 1, 0], [], []>} : vector<16x16xbf16>, vector<16x16xbf16>, vector<16x16xf32> -> vector<16x16xf32>
    %cst_10 = arith.constant -1.000000e+04 : f32
    %30 = vector.shape_cast %9 : vector<1x16xi1> to vector<1x16xi1>
    %31 = vector.broadcast %30 : vector<1x16xi1> to vector<16x16xi1>
    %32 = vector.broadcast %cst_10 : f32 to vector<16x16xf32>
    %33 = arith.select %31, %29, %32 : vector<16x16xi1>, vector<16x16xf32>
    %cst_11 = arith.constant dense<0xFF800000> : vector<16xf32>
    %34 = vector.multi_reduction <maximumf>, %33, %cst_11 [1] : vector<16x16xf32> to vector<16xf32>
    %35 = vector.shape_cast %34 : vector<16xf32> to vector<16x1xf32>
    %36 = vector.broadcast %35 : vector<16x1xf32> to vector<16x16xf32>
    %37 = arith.subf %33, %36 : vector<16x16xf32>
    %38 = math.exp %37 : vector<16x16xf32>
    %cst_12 = arith.constant dense<0.000000e+00> : vector<16xf32>
    %39 = vector.multi_reduction <add>, %38, %cst_12 [1] : vector<16x16xf32> to vector<16xf32>
    %40 = vector.shape_cast %39 : vector<16xf32> to vector<16x1xf32>
    %cst_13 = arith.constant 1.000000e+00 : f32
    %41 = vector.broadcast %cst_13 : f32 to vector<16x1xf32>
    %42 = arith.divf %41, %40 : vector<16x1xf32>
    %43 = vector.broadcast %42 : vector<16x1xf32> to vector<16x16xf32>
    %44 = arith.mulf %38, %43 : vector<16x16xf32>
    %45 = arith.truncf %44 : vector<16x16xf32> to vector<16x16xbf16>
    %cst_14 = arith.constant dense<0.000000e+00> : vector<16x16xf32>
    %46 = tpu.matmul %45, %28, %cst_14 {dimension_numbers = #tpu.dot_dimension_numbers<[1], [0], [0], [1], [0, 0, 1, 1], [], []>} : vector<16x16xbf16>, vector<16x16xbf16>, vector<16x16xf32> -> vector<16x16xf32>
    %47 = arith.truncf %46 : vector<16x16xf32> to vector<16x16xbf16>
    %48 = vector.extract_strided_slice %21 {offsets = [0, 0], sizes = [16, 32], strides = [1, 1]} : vector<32x32xbf16> to vector<16x32xbf16>
    %cst_15 = arith.constant dense<0.000000e+00> : vector<16x32xf32>
    %49 = tpu.matmul %47, %48, %cst_15 {dimension_numbers = #tpu.dot_dimension_numbers<[1], [0], [0], [1], [0, 0, 1, 1], [], []>} : vector<16x16xbf16>, vector<16x32xbf16>, vector<16x32xf32> -> vector<16x32xf32>
    %50 = arith.addf %22, %49 : vector<16x32xf32>
    %51 = vector.extract_strided_slice %20 {offsets = [0, 16], sizes = [16, 16], strides = [1, 1]} : vector<16x96xf32> to vector<16x16xf32>
    %52 = arith.truncf %51 : vector<16x16xf32> to vector<16x16xbf16>
    %53 = vector.extract_strided_slice %20 {offsets = [0, 48], sizes = [16, 16], strides = [1, 1]} : vector<16x96xf32> to vector<16x16xf32>
    %54 = arith.truncf %53 : vector<16x16xf32> to vector<16x16xbf16>
    %55 = vector.extract_strided_slice %20 {offsets = [0, 80], sizes = [16, 16], strides = [1, 1]} : vector<16x96xf32> to vector<16x16xf32>
    %56 = arith.truncf %55 : vector<16x16xf32> to vector<16x16xbf16>
    %cst_16 = arith.constant dense<0.000000e+00> : vector<16x16xf32>
    %57 = tpu.matmul %52, %54, %cst_16 {dimension_numbers = #tpu.dot_dimension_numbers<[1], [1], [0], [0], [0, 0, 1, 0], [], []>} : vector<16x16xbf16>, vector<16x16xbf16>, vector<16x16xf32> -> vector<16x16xf32>
    %cst_17 = arith.constant -1.000000e+04 : f32
    %58 = vector.shape_cast %9 : vector<1x16xi1> to vector<1x16xi1>
    %59 = vector.broadcast %58 : vector<1x16xi1> to vector<16x16xi1>
    %60 = vector.broadcast %cst_17 : f32 to vector<16x16xf32>
    %61 = arith.select %59, %57, %60 : vector<16x16xi1>, vector<16x16xf32>
    %cst_18 = arith.constant dense<0xFF800000> : vector<16xf32>
    %62 = vector.multi_reduction <maximumf>, %61, %cst_18 [1] : vector<16x16xf32> to vector<16xf32>
    %63 = vector.shape_cast %62 : vector<16xf32> to vector<16x1xf32>
    %64 = vector.broadcast %63 : vector<16x1xf32> to vector<16x16xf32>
    %65 = arith.subf %61, %64 : vector<16x16xf32>
    %66 = math.exp %65 : vector<16x16xf32>
    %cst_19 = arith.constant dense<0.000000e+00> : vector<16xf32>
    %67 = vector.multi_reduction <add>, %66, %cst_19 [1] : vector<16x16xf32> to vector<16xf32>
    %68 = vector.shape_cast %67 : vector<16xf32> to vector<16x1xf32>
    %cst_20 = arith.constant 1.000000e+00 : f32
    %69 = vector.broadcast %cst_20 : f32 to vector<16x1xf32>
    %70 = arith.divf %69, %68 : vector<16x1xf32>
    %71 = vector.broadcast %70 : vector<16x1xf32> to vector<16x16xf32>
    %72 = arith.mulf %66, %71 : vector<16x16xf32>
    %73 = arith.truncf %72 : vector<16x16xf32> to vector<16x16xbf16>
    %cst_21 = arith.constant dense<0.000000e+00> : vector<16x16xf32>
    %74 = tpu.matmul %73, %56, %cst_21 {dimension_numbers = #tpu.dot_dimension_numbers<[1], [0], [0], [1], [0, 0, 1, 1], [], []>} : vector<16x16xbf16>, vector<16x16xbf16>, vector<16x16xf32> -> vector<16x16xf32>
    %75 = arith.truncf %74 : vector<16x16xf32> to vector<16x16xbf16>
    %76 = vector.extract_strided_slice %21 {offsets = [16, 0], sizes = [16, 32], strides = [1, 1]} : vector<32x32xbf16> to vector<16x32xbf16>
    %cst_22 = arith.constant dense<0.000000e+00> : vector<16x32xf32>
    %77 = tpu.matmul %75, %76, %cst_22 {dimension_numbers = #tpu.dot_dimension_numbers<[1], [0], [0], [1], [0, 0, 1, 1], [], []>} : vector<16x16xbf16>, vector<16x32xbf16>, vector<16x32xf32> -> vector<16x32xf32>
    %78 = arith.addf %50, %77 : vector<16x32xf32>
    %c0_23 = arith.constant 0 : index
    %c0_24 = arith.constant 0 : index
    %79 = vector.load %arg6[%c0_23, %c0_24] : memref<1x32xf32, #tpu.memory_space<vmem>>, vector<1x32xf32>
    %80 = vector.broadcast %79 : vector<1x32xf32> to vector<16x32xf32>
    %81 = arith.addf %78, %80 : vector<16x32xf32>
    %82 = arith.addf %14, %81 : vector<16x32xf32>
    %c0_25 = arith.constant 0 : index
    %c0_26 = arith.constant 0 : index
    %83 = vector.load %arg7[%c0_25, %c0_26] : memref<1x32xf32, #tpu.memory_space<vmem>>, vector<1x32xf32>
    %c0_27 = arith.constant 0 : index
    %c0_28 = arith.constant 0 : index
    %84 = vector.load %arg8[%c0_27, %c0_28] : memref<1x32xf32, #tpu.memory_space<vmem>>, vector<1x32xf32>
    %cst_29 = arith.constant dense<0.000000e+00> : vector<16xf32>
    %85 = vector.multi_reduction <add>, %82, %cst_29 [1] : vector<16x32xf32> to vector<16xf32>
    %86 = vector.shape_cast %85 : vector<16xf32> to vector<16x1xf32>
    %cst_30 = arith.constant 3.200000e+01 : f32
    %87 = vector.broadcast %cst_30 : f32 to vector<16x1xf32>
    %88 = arith.divf %86, %87 : vector<16x1xf32>
    %89 = vector.broadcast %88 : vector<16x1xf32> to vector<16x32xf32>
    %90 = arith.subf %82, %89 : vector<16x32xf32>
    %91 = arith.mulf %90, %90 : vector<16x32xf32>
    %cst_31 = arith.constant dense<0.000000e+00> : vector<16xf32>
    %92 = vector.multi_reduction <add>, %91, %cst_31 [1] : vector<16x32xf32> to vector<16xf32>
    %93 = vector.shape_cast %92 : vector<16xf32> to vector<16x1xf32>
    %cst_32 = arith.constant 3.200000e+01 : f32
    %94 = vector.broadcast %cst_32 : f32 to vector<16x1xf32>
    %95 = arith.divf %93, %94 : vector<16x1xf32>
    %96 = vector.broadcast %88 : vector<16x1xf32> to vector<16x32xf32>
    %97 = arith.subf %82, %96 : vector<16x32xf32>
    %cst_33 = arith.constant 9.99999974E-5 : f32
    %98 = vector.broadcast %cst_33 : f32 to vector<16x1xf32>
    %99 = arith.addf %95, %98 : vector<16x1xf32>
    %100 = math.rsqrt %99 : vector<16x1xf32>
    %101 = vector.broadcast %100 : vector<16x1xf32> to vector<16x32xf32>
    %102 = arith.mulf %97, %101 : vector<16x32xf32>
    %103 = vector.broadcast %83 : vector<1x32xf32> to vector<16x32xf32>
    %104 = arith.mulf %102, %103 : vector<16x32xf32>
    %105 = vector.broadcast %84 : vector<1x32xf32> to vector<16x32xf32>
    %106 = arith.addf %104, %105 : vector<16x32xf32>
    %107 = arith.mulf %106, %11 : vector<16x32xf32>
    %c0_34 = arith.constant 0 : index
    %c0_35 = arith.constant 0 : index
    %108 = vector.load %arg10[%c0_34, %c0_35] : memref<1x64xf32, #tpu.memory_space<vmem>>, vector<1x64xf32>
    %cst_36 = arith.constant 0.000000e+00 : f32
    %109 = vector.broadcast %cst_36 : f32 to vector<1x32xf32>
    %110 = vector.extract_strided_slice %107 {offsets = [0, 0], sizes = [15, 32], strides = [1, 1]} : vector<16x32xf32> to vector<15x32xf32>
    %111 = tpu.concatenate %109, %110 in 0 : vector<1x32xf32>, vector<15x32xf32> -> vector<16x32xf32>
    %cst_37 = arith.constant 0.000000e+00 : f32
    %112 = vector.broadcast %cst_37 : f32 to vector<1x32xf32>
    %113 = vector.extract_strided_slice %107 {offsets = [1, 0], sizes = [15, 32], strides = [1, 1]} : vector<16x32xf32> to vector<15x32xf32>
    %114 = tpu.concatenate %113, %112 in 0 : vector<15x32xf32>, vector<1x32xf32> -> vector<16x32xf32>
    %115 = tpu.concatenate %111, %107, %114 in 1 : vector<16x32xf32>, vector<16x32xf32>, vector<16x32xf32> -> vector<16x96xf32>
    %116 = arith.truncf %115 : vector<16x96xf32> to vector<16x96xbf16>
    %c0_38 = arith.constant 0 : index
    %c0_39 = arith.constant 0 : index
    %117 = vector.load %arg9[%c0_38, %c0_39] : memref<96x64xbf16, #tpu.memory_space<vmem>>, vector<96x64xbf16>
    %cst_40 = arith.constant dense<0.000000e+00> : vector<16x64xf32>
    %118 = tpu.matmul %116, %117, %cst_40 {dimension_numbers = #tpu.dot_dimension_numbers<[1], [0], [0], [1], [0, 0, 1, 1], [], []>} : vector<16x96xbf16>, vector<96x64xbf16>, vector<16x64xf32> -> vector<16x64xf32>
    %119 = vector.broadcast %108 : vector<1x64xf32> to vector<16x64xf32>
    %120 = arith.addf %118, %119 : vector<16x64xf32>
    %cst_41 = arith.constant 0.000000e+00 : f32
    %121 = vector.broadcast %cst_41 : f32 to vector<16x64xf32>
    %122 = arith.maximumf %120, %121 : vector<16x64xf32>
    %123 = vector.shape_cast %7 : vector<16x1xf32> to vector<16x1xf32>
    %124 = vector.broadcast %123 : vector<16x1xf32> to vector<16x64xf32>
    %125 = arith.mulf %122, %124 : vector<16x64xf32>
    %c0_42 = arith.constant 0 : index
    %c0_43 = arith.constant 0 : index
    %126 = vector.load %arg12[%c0_42, %c0_43] : memref<1x32xf32, #tpu.memory_space<vmem>>, vector<1x32xf32>
    %cst_44 = arith.constant 0.000000e+00 : f32
    %127 = vector.broadcast %cst_44 : f32 to vector<1x64xf32>
    %128 = vector.extract_strided_slice %125 {offsets = [0, 0], sizes = [15, 64], strides = [1, 1]} : vector<16x64xf32> to vector<15x64xf32>
    %129 = tpu.concatenate %127, %128 in 0 : vector<1x64xf32>, vector<15x64xf32> -> vector<16x64xf32>
    %cst_45 = arith.constant 0.000000e+00 : f32
    %130 = vector.broadcast %cst_45 : f32 to vector<1x64xf32>
    %131 = vector.extract_strided_slice %125 {offsets = [1, 0], sizes = [15, 64], strides = [1, 1]} : vector<16x64xf32> to vector<15x64xf32>
    %132 = tpu.concatenate %131, %130 in 0 : vector<15x64xf32>, vector<1x64xf32> -> vector<16x64xf32>
    %133 = tpu.concatenate %129, %125, %132 in 1 : vector<16x64xf32>, vector<16x64xf32>, vector<16x64xf32> -> vector<16x192xf32>
    %134 = arith.truncf %133 : vector<16x192xf32> to vector<16x192xbf16>
    %c0_46 = arith.constant 0 : index
    %c0_47 = arith.constant 0 : index
    %135 = vector.load %arg11[%c0_46, %c0_47] : memref<192x32xbf16, #tpu.memory_space<vmem>>, vector<192x32xbf16>
    %cst_48 = arith.constant dense<0.000000e+00> : vector<16x32xf32>
    %136 = tpu.matmul %134, %135, %cst_48 {dimension_numbers = #tpu.dot_dimension_numbers<[1], [0], [0], [1], [0, 0, 1, 1], [], []>} : vector<16x192xbf16>, vector<192x32xbf16>, vector<16x32xf32> -> vector<16x32xf32>
    %137 = vector.broadcast %126 : vector<1x32xf32> to vector<16x32xf32>
    %138 = arith.addf %136, %137 : vector<16x32xf32>
    %139 = arith.mulf %138, %11 : vector<16x32xf32>
    %140 = arith.addf %106, %139 : vector<16x32xf32>
    %c0_49 = arith.constant 0 : index
    %c0_50 = arith.constant 0 : index
    %141 = vector.load %arg13[%c0_49, %c0_50] : memref<1x32xf32, #tpu.memory_space<vmem>>, vector<1x32xf32>
    %c0_51 = arith.constant 0 : index
    %c0_52 = arith.constant 0 : index
    %142 = vector.load %arg14[%c0_51, %c0_52] : memref<1x32xf32, #tpu.memory_space<vmem>>, vector<1x32xf32>
    %cst_53 = arith.constant dense<0.000000e+00> : vector<16xf32>
    %143 = vector.multi_reduction <add>, %140, %cst_53 [1] : vector<16x32xf32> to vector<16xf32>
    %144 = vector.shape_cast %143 : vector<16xf32> to vector<16x1xf32>
    %cst_54 = arith.constant 3.200000e+01 : f32
    %145 = vector.broadcast %cst_54 : f32 to vector<16x1xf32>
    %146 = arith.divf %144, %145 : vector<16x1xf32>
    %147 = vector.broadcast %146 : vector<16x1xf32> to vector<16x32xf32>
    %148 = arith.subf %140, %147 : vector<16x32xf32>
    %149 = arith.mulf %148, %148 : vector<16x32xf32>
    %cst_55 = arith.constant dense<0.000000e+00> : vector<16xf32>
    %150 = vector.multi_reduction <add>, %149, %cst_55 [1] : vector<16x32xf32> to vector<16xf32>
    %151 = vector.shape_cast %150 : vector<16xf32> to vector<16x1xf32>
    %cst_56 = arith.constant 3.200000e+01 : f32
    %152 = vector.broadcast %cst_56 : f32 to vector<16x1xf32>
    %153 = arith.divf %151, %152 : vector<16x1xf32>
    %154 = vector.broadcast %146 : vector<16x1xf32> to vector<16x32xf32>
    %155 = arith.subf %140, %154 : vector<16x32xf32>
    %cst_57 = arith.constant 9.99999974E-5 : f32
    %156 = vector.broadcast %cst_57 : f32 to vector<16x1xf32>
    %157 = arith.addf %153, %156 : vector<16x1xf32>
    %158 = math.rsqrt %157 : vector<16x1xf32>
    %159 = vector.broadcast %158 : vector<16x1xf32> to vector<16x32xf32>
    %160 = arith.mulf %155, %159 : vector<16x32xf32>
    %161 = vector.broadcast %141 : vector<1x32xf32> to vector<16x32xf32>
    %162 = arith.mulf %160, %161 : vector<16x32xf32>
    %163 = vector.broadcast %142 : vector<1x32xf32> to vector<16x32xf32>
    %164 = arith.addf %162, %163 : vector<16x32xf32>
    %165 = arith.mulf %164, %11 : vector<16x32xf32>
    %166 = arith.truncf %165 : vector<16x32xf32> to vector<16x32xbf16>
    %c0_58 = arith.constant 0 : index
    %c0_59 = arith.constant 0 : index
    %167 = vector.load %arg15[%c0_58, %c0_59] : memref<32x96xbf16, #tpu.memory_space<vmem>>, vector<32x96xbf16>
    %cst_60 = arith.constant dense<0.000000e+00> : vector<16x96xf32>
    %168 = tpu.matmul %166, %167, %cst_60 {dimension_numbers = #tpu.dot_dimension_numbers<[1], [0], [0], [1], [0, 0, 1, 1], [], []>} : vector<16x32xbf16>, vector<32x96xbf16>, vector<16x96xf32> -> vector<16x96xf32>
    %c0_61 = arith.constant 0 : index
    %c0_62 = arith.constant 0 : index
    %169 = vector.load %arg16[%c0_61, %c0_62] : memref<1x96xf32, #tpu.memory_space<vmem>>, vector<1x96xf32>
    %170 = vector.broadcast %169 : vector<1x96xf32> to vector<16x96xf32>
    %171 = arith.addf %168, %170 : vector<16x96xf32>
    %c0_63 = arith.constant 0 : index
    %c0_64 = arith.constant 0 : index
    %172 = vector.load %arg17[%c0_63, %c0_64] : memref<32x32xbf16, #tpu.memory_space<vmem>>, vector<32x32xbf16>
    %cst_65 = arith.constant 0.000000e+00 : f32
    %173 = vector.broadcast %cst_65 : f32 to vector<16x32xf32>
    %174 = vector.extract_strided_slice %171 {offsets = [0, 0], sizes = [16, 16], strides = [1, 1]} : vector<16x96xf32> to vector<16x16xf32>
    %175 = arith.truncf %174 : vector<16x16xf32> to vector<16x16xbf16>
    %176 = vector.extract_strided_slice %171 {offsets = [0, 32], sizes = [16, 16], strides = [1, 1]} : vector<16x96xf32> to vector<16x16xf32>
    %177 = arith.truncf %176 : vector<16x16xf32> to vector<16x16xbf16>
    %178 = vector.extract_strided_slice %171 {offsets = [0, 64], sizes = [16, 16], strides = [1, 1]} : vector<16x96xf32> to vector<16x16xf32>
    %179 = arith.truncf %178 : vector<16x16xf32> to vector<16x16xbf16>
    %cst_66 = arith.constant dense<0.000000e+00> : vector<16x16xf32>
    %180 = tpu.matmul %175, %177, %cst_66 {dimension_numbers = #tpu.dot_dimension_numbers<[1], [1], [0], [0], [0, 0, 1, 0], [], []>} : vector<16x16xbf16>, vector<16x16xbf16>, vector<16x16xf32> -> vector<16x16xf32>
    %cst_67 = arith.constant -1.000000e+04 : f32
    %181 = vector.shape_cast %9 : vector<1x16xi1> to vector<1x16xi1>
    %182 = vector.broadcast %181 : vector<1x16xi1> to vector<16x16xi1>
    %183 = vector.broadcast %cst_67 : f32 to vector<16x16xf32>
    %184 = arith.select %182, %180, %183 : vector<16x16xi1>, vector<16x16xf32>
    %cst_68 = arith.constant dense<0xFF800000> : vector<16xf32>
    %185 = vector.multi_reduction <maximumf>, %184, %cst_68 [1] : vector<16x16xf32> to vector<16xf32>
    %186 = vector.shape_cast %185 : vector<16xf32> to vector<16x1xf32>
    %187 = vector.broadcast %186 : vector<16x1xf32> to vector<16x16xf32>
    %188 = arith.subf %184, %187 : vector<16x16xf32>
    %189 = math.exp %188 : vector<16x16xf32>
    %cst_69 = arith.constant dense<0.000000e+00> : vector<16xf32>
    %190 = vector.multi_reduction <add>, %189, %cst_69 [1] : vector<16x16xf32> to vector<16xf32>
    %191 = vector.shape_cast %190 : vector<16xf32> to vector<16x1xf32>
    %cst_70 = arith.constant 1.000000e+00 : f32
    %192 = vector.broadcast %cst_70 : f32 to vector<16x1xf32>
    %193 = arith.divf %192, %191 : vector<16x1xf32>
    %194 = vector.broadcast %193 : vector<16x1xf32> to vector<16x16xf32>
    %195 = arith.mulf %189, %194 : vector<16x16xf32>
    %196 = arith.truncf %195 : vector<16x16xf32> to vector<16x16xbf16>
    %cst_71 = arith.constant dense<0.000000e+00> : vector<16x16xf32>
    %197 = tpu.matmul %196, %179, %cst_71 {dimension_numbers = #tpu.dot_dimension_numbers<[1], [0], [0], [1], [0, 0, 1, 1], [], []>} : vector<16x16xbf16>, vector<16x16xbf16>, vector<16x16xf32> -> vector<16x16xf32>
    %198 = arith.truncf %197 : vector<16x16xf32> to vector<16x16xbf16>
    %199 = vector.extract_strided_slice %172 {offsets = [0, 0], sizes = [16, 32], strides = [1, 1]} : vector<32x32xbf16> to vector<16x32xbf16>
    %cst_72 = arith.constant dense<0.000000e+00> : vector<16x32xf32>
    %200 = tpu.matmul %198, %199, %cst_72 {dimension_numbers = #tpu.dot_dimension_numbers<[1], [0], [0], [1], [0, 0, 1, 1], [], []>} : vector<16x16xbf16>, vector<16x32xbf16>, vector<16x32xf32> -> vector<16x32xf32>
    %201 = arith.addf %173, %200 : vector<16x32xf32>
    %202 = vector.extract_strided_slice %171 {offsets = [0, 16], sizes = [16, 16], strides = [1, 1]} : vector<16x96xf32> to vector<16x16xf32>
    %203 = arith.truncf %202 : vector<16x16xf32> to vector<16x16xbf16>
    %204 = vector.extract_strided_slice %171 {offsets = [0, 48], sizes = [16, 16], strides = [1, 1]} : vector<16x96xf32> to vector<16x16xf32>
    %205 = arith.truncf %204 : vector<16x16xf32> to vector<16x16xbf16>
    %206 = vector.extract_strided_slice %171 {offsets = [0, 80], sizes = [16, 16], strides = [1, 1]} : vector<16x96xf32> to vector<16x16xf32>
    %207 = arith.truncf %206 : vector<16x16xf32> to vector<16x16xbf16>
    %cst_73 = arith.constant dense<0.000000e+00> : vector<16x16xf32>
    %208 = tpu.matmul %203, %205, %cst_73 {dimension_numbers = #tpu.dot_dimension_numbers<[1], [1], [0], [0], [0, 0, 1, 0], [], []>} : vector<16x16xbf16>, vector<16x16xbf16>, vector<16x16xf32> -> vector<16x16xf32>
    %cst_74 = arith.constant -1.000000e+04 : f32
    %209 = vector.shape_cast %9 : vector<1x16xi1> to vector<1x16xi1>
    %210 = vector.broadcast %209 : vector<1x16xi1> to vector<16x16xi1>
    %211 = vector.broadcast %cst_74 : f32 to vector<16x16xf32>
    %212 = arith.select %210, %208, %211 : vector<16x16xi1>, vector<16x16xf32>
    %cst_75 = arith.constant dense<0xFF800000> : vector<16xf32>
    %213 = vector.multi_reduction <maximumf>, %212, %cst_75 [1] : vector<16x16xf32> to vector<16xf32>
    %214 = vector.shape_cast %213 : vector<16xf32> to vector<16x1xf32>
    %215 = vector.broadcast %214 : vector<16x1xf32> to vector<16x16xf32>
    %216 = arith.subf %212, %215 : vector<16x16xf32>
    %217 = math.exp %216 : vector<16x16xf32>
    %cst_76 = arith.constant dense<0.000000e+00> : vector<16xf32>
    %218 = vector.multi_reduction <add>, %217, %cst_76 [1] : vector<16x16xf32> to vector<16xf32>
    %219 = vector.shape_cast %218 : vector<16xf32> to vector<16x1xf32>
    %cst_77 = arith.constant 1.000000e+00 : f32
    %220 = vector.broadcast %cst_77 : f32 to vector<16x1xf32>
    %221 = arith.divf %220, %219 : vector<16x1xf32>
    %222 = vector.broadcast %221 : vector<16x1xf32> to vector<16x16xf32>
    %223 = arith.mulf %217, %222 : vector<16x16xf32>
    %224 = arith.truncf %223 : vector<16x16xf32> to vector<16x16xbf16>
    %cst_78 = arith.constant dense<0.000000e+00> : vector<16x16xf32>
    %225 = tpu.matmul %224, %207, %cst_78 {dimension_numbers = #tpu.dot_dimension_numbers<[1], [0], [0], [1], [0, 0, 1, 1], [], []>} : vector<16x16xbf16>, vector<16x16xbf16>, vector<16x16xf32> -> vector<16x16xf32>
    %226 = arith.truncf %225 : vector<16x16xf32> to vector<16x16xbf16>
    %227 = vector.extract_strided_slice %172 {offsets = [16, 0], sizes = [16, 32], strides = [1, 1]} : vector<32x32xbf16> to vector<16x32xbf16>
    %cst_79 = arith.constant dense<0.000000e+00> : vector<16x32xf32>
    %228 = tpu.matmul %226, %227, %cst_79 {dimension_numbers = #tpu.dot_dimension_numbers<[1], [0], [0], [1], [0, 0, 1, 1], [], []>} : vector<16x16xbf16>, vector<16x32xbf16>, vector<16x32xf32> -> vector<16x32xf32>
    %229 = arith.addf %201, %228 : vector<16x32xf32>
    %c0_80 = arith.constant 0 : index
    %c0_81 = arith.constant 0 : index
    %230 = vector.load %arg18[%c0_80, %c0_81] : memref<1x32xf32, #tpu.memory_space<vmem>>, vector<1x32xf32>
    %231 = vector.broadcast %230 : vector<1x32xf32> to vector<16x32xf32>
    %232 = arith.addf %229, %231 : vector<16x32xf32>
    %233 = arith.addf %165, %232 : vector<16x32xf32>
    %c0_82 = arith.constant 0 : index
    %c0_83 = arith.constant 0 : index
    %234 = vector.load %arg19[%c0_82, %c0_83] : memref<1x32xf32, #tpu.memory_space<vmem>>, vector<1x32xf32>
    %c0_84 = arith.constant 0 : index
    %c0_85 = arith.constant 0 : index
    %235 = vector.load %arg20[%c0_84, %c0_85] : memref<1x32xf32, #tpu.memory_space<vmem>>, vector<1x32xf32>
    %cst_86 = arith.constant dense<0.000000e+00> : vector<16xf32>
    %236 = vector.multi_reduction <add>, %233, %cst_86 [1] : vector<16x32xf32> to vector<16xf32>
    %237 = vector.shape_cast %236 : vector<16xf32> to vector<16x1xf32>
    %cst_87 = arith.constant 3.200000e+01 : f32
    %238 = vector.broadcast %cst_87 : f32 to vector<16x1xf32>
    %239 = arith.divf %237, %238 : vector<16x1xf32>
    %240 = vector.broadcast %239 : vector<16x1xf32> to vector<16x32xf32>
    %241 = arith.subf %233, %240 : vector<16x32xf32>
    %242 = arith.mulf %241, %241 : vector<16x32xf32>
    %cst_88 = arith.constant dense<0.000000e+00> : vector<16xf32>
    %243 = vector.multi_reduction <add>, %242, %cst_88 [1] : vector<16x32xf32> to vector<16xf32>
    %244 = vector.shape_cast %243 : vector<16xf32> to vector<16x1xf32>
    %cst_89 = arith.constant 3.200000e+01 : f32
    %245 = vector.broadcast %cst_89 : f32 to vector<16x1xf32>
    %246 = arith.divf %244, %245 : vector<16x1xf32>
    %247 = vector.broadcast %239 : vector<16x1xf32> to vector<16x32xf32>
    %248 = arith.subf %233, %247 : vector<16x32xf32>
    %cst_90 = arith.constant 9.99999974E-5 : f32
    %249 = vector.broadcast %cst_90 : f32 to vector<16x1xf32>
    %250 = arith.addf %246, %249 : vector<16x1xf32>
    %251 = math.rsqrt %250 : vector<16x1xf32>
    %252 = vector.broadcast %251 : vector<16x1xf32> to vector<16x32xf32>
    %253 = arith.mulf %248, %252 : vector<16x32xf32>
    %254 = vector.broadcast %234 : vector<1x32xf32> to vector<16x32xf32>
    %255 = arith.mulf %253, %254 : vector<16x32xf32>
    %256 = vector.broadcast %235 : vector<1x32xf32> to vector<16x32xf32>
    %257 = arith.addf %255, %256 : vector<16x32xf32>
    %258 = arith.mulf %257, %11 : vector<16x32xf32>
    %c0_91 = arith.constant 0 : index
    %c0_92 = arith.constant 0 : index
    %259 = vector.load %arg22[%c0_91, %c0_92] : memref<1x64xf32, #tpu.memory_space<vmem>>, vector<1x64xf32>
    %cst_93 = arith.constant 0.000000e+00 : f32
    %260 = vector.broadcast %cst_93 : f32 to vector<1x32xf32>
    %261 = vector.extract_strided_slice %258 {offsets = [0, 0], sizes = [15, 32], strides = [1, 1]} : vector<16x32xf32> to vector<15x32xf32>
    %262 = tpu.concatenate %260, %261 in 0 : vector<1x32xf32>, vector<15x32xf32> -> vector<16x32xf32>
    %cst_94 = arith.constant 0.000000e+00 : f32
    %263 = vector.broadcast %cst_94 : f32 to vector<1x32xf32>
    %264 = vector.extract_strided_slice %258 {offsets = [1, 0], sizes = [15, 32], strides = [1, 1]} : vector<16x32xf32> to vector<15x32xf32>
    %265 = tpu.concatenate %264, %263 in 0 : vector<15x32xf32>, vector<1x32xf32> -> vector<16x32xf32>
    %266 = tpu.concatenate %262, %258, %265 in 1 : vector<16x32xf32>, vector<16x32xf32>, vector<16x32xf32> -> vector<16x96xf32>
    %267 = arith.truncf %266 : vector<16x96xf32> to vector<16x96xbf16>
    %c0_95 = arith.constant 0 : index
    %c0_96 = arith.constant 0 : index
    %268 = vector.load %arg21[%c0_95, %c0_96] : memref<96x64xbf16, #tpu.memory_space<vmem>>, vector<96x64xbf16>
    %cst_97 = arith.constant dense<0.000000e+00> : vector<16x64xf32>
    %269 = tpu.matmul %267, %268, %cst_97 {dimension_numbers = #tpu.dot_dimension_numbers<[1], [0], [0], [1], [0, 0, 1, 1], [], []>} : vector<16x96xbf16>, vector<96x64xbf16>, vector<16x64xf32> -> vector<16x64xf32>
    %270 = vector.broadcast %259 : vector<1x64xf32> to vector<16x64xf32>
    %271 = arith.addf %269, %270 : vector<16x64xf32>
    %cst_98 = arith.constant 0.000000e+00 : f32
    %272 = vector.broadcast %cst_98 : f32 to vector<16x64xf32>
    %273 = arith.maximumf %271, %272 : vector<16x64xf32>
    %274 = vector.shape_cast %7 : vector<16x1xf32> to vector<16x1xf32>
    %275 = vector.broadcast %274 : vector<16x1xf32> to vector<16x64xf32>
    %276 = arith.mulf %273, %275 : vector<16x64xf32>
    %c0_99 = arith.constant 0 : index
    %c0_100 = arith.constant 0 : index
    %277 = vector.load %arg24[%c0_99, %c0_100] : memref<1x32xf32, #tpu.memory_space<vmem>>, vector<1x32xf32>
    %cst_101 = arith.constant 0.000000e+00 : f32
    %278 = vector.broadcast %cst_101 : f32 to vector<1x64xf32>
    %279 = vector.extract_strided_slice %276 {offsets = [0, 0], sizes = [15, 64], strides = [1, 1]} : vector<16x64xf32> to vector<15x64xf32>
    %280 = tpu.concatenate %278, %279 in 0 : vector<1x64xf32>, vector<15x64xf32> -> vector<16x64xf32>
    %cst_102 = arith.constant 0.000000e+00 : f32
    %281 = vector.broadcast %cst_102 : f32 to vector<1x64xf32>
    %282 = vector.extract_strided_slice %276 {offsets = [1, 0], sizes = [15, 64], strides = [1, 1]} : vector<16x64xf32> to vector<15x64xf32>
    %283 = tpu.concatenate %282, %281 in 0 : vector<15x64xf32>, vector<1x64xf32> -> vector<16x64xf32>
    %284 = tpu.concatenate %280, %276, %283 in 1 : vector<16x64xf32>, vector<16x64xf32>, vector<16x64xf32> -> vector<16x192xf32>
    %285 = arith.truncf %284 : vector<16x192xf32> to vector<16x192xbf16>
    %c0_103 = arith.constant 0 : index
    %c0_104 = arith.constant 0 : index
    %286 = vector.load %arg23[%c0_103, %c0_104] : memref<192x32xbf16, #tpu.memory_space<vmem>>, vector<192x32xbf16>
    %cst_105 = arith.constant dense<0.000000e+00> : vector<16x32xf32>
    %287 = tpu.matmul %285, %286, %cst_105 {dimension_numbers = #tpu.dot_dimension_numbers<[1], [0], [0], [1], [0, 0, 1, 1], [], []>} : vector<16x192xbf16>, vector<192x32xbf16>, vector<16x32xf32> -> vector<16x32xf32>
    %288 = vector.broadcast %277 : vector<1x32xf32> to vector<16x32xf32>
    %289 = arith.addf %287, %288 : vector<16x32xf32>
    %290 = arith.mulf %289, %11 : vector<16x32xf32>
    %291 = arith.addf %257, %290 : vector<16x32xf32>
    %c0_106 = arith.constant 0 : index
    %c0_107 = arith.constant 0 : index
    %292 = vector.load %arg25[%c0_106, %c0_107] : memref<1x32xf32, #tpu.memory_space<vmem>>, vector<1x32xf32>
    %c0_108 = arith.constant 0 : index
    %c0_109 = arith.constant 0 : index
    %293 = vector.load %arg26[%c0_108, %c0_109] : memref<1x32xf32, #tpu.memory_space<vmem>>, vector<1x32xf32>
    %cst_110 = arith.constant dense<0.000000e+00> : vector<16xf32>
    %294 = vector.multi_reduction <add>, %291, %cst_110 [1] : vector<16x32xf32> to vector<16xf32>
    %295 = vector.shape_cast %294 : vector<16xf32> to vector<16x1xf32>
    %cst_111 = arith.constant 3.200000e+01 : f32
    %296 = vector.broadcast %cst_111 : f32 to vector<16x1xf32>
    %297 = arith.divf %295, %296 : vector<16x1xf32>
    %298 = vector.broadcast %297 : vector<16x1xf32> to vector<16x32xf32>
    %299 = arith.subf %291, %298 : vector<16x32xf32>
    %300 = arith.mulf %299, %299 : vector<16x32xf32>
    %cst_112 = arith.constant dense<0.000000e+00> : vector<16xf32>
    %301 = vector.multi_reduction <add>, %300, %cst_112 [1] : vector<16x32xf32> to vector<16xf32>
    %302 = vector.shape_cast %301 : vector<16xf32> to vector<16x1xf32>
    %cst_113 = arith.constant 3.200000e+01 : f32
    %303 = vector.broadcast %cst_113 : f32 to vector<16x1xf32>
    %304 = arith.divf %302, %303 : vector<16x1xf32>
    %305 = vector.broadcast %297 : vector<16x1xf32> to vector<16x32xf32>
    %306 = arith.subf %291, %305 : vector<16x32xf32>
    %cst_114 = arith.constant 9.99999974E-5 : f32
    %307 = vector.broadcast %cst_114 : f32 to vector<16x1xf32>
    %308 = arith.addf %304, %307 : vector<16x1xf32>
    %309 = math.rsqrt %308 : vector<16x1xf32>
    %310 = vector.broadcast %309 : vector<16x1xf32> to vector<16x32xf32>
    %311 = arith.mulf %306, %310 : vector<16x32xf32>
    %312 = vector.broadcast %292 : vector<1x32xf32> to vector<16x32xf32>
    %313 = arith.mulf %311, %312 : vector<16x32xf32>
    %314 = vector.broadcast %293 : vector<1x32xf32> to vector<16x32xf32>
    %315 = arith.addf %313, %314 : vector<16x32xf32>
    %316 = arith.mulf %315, %11 : vector<16x32xf32>
    %317 = arith.truncf %316 : vector<16x32xf32> to vector<16x32xbf16>
    %c0_115 = arith.constant 0 : index
    %c0_116 = arith.constant 0 : index
    %318 = vector.load %arg27[%c0_115, %c0_116] : memref<32x128xbf16, #tpu.memory_space<vmem>>, vector<32x128xbf16>
    %cst_117 = arith.constant dense<0.000000e+00> : vector<16x128xf32>
    %319 = tpu.matmul %317, %318, %cst_117 {dimension_numbers = #tpu.dot_dimension_numbers<[1], [0], [0], [1], [0, 0, 1, 1], [], []>} : vector<16x32xbf16>, vector<32x128xbf16>, vector<16x128xf32> -> vector<16x128xf32>
    %c0_118 = arith.constant 0 : index
    %c0_119 = arith.constant 0 : index
    %320 = vector.load %arg28[%c0_118, %c0_119] : memref<1x128xf32, #tpu.memory_space<vmem>>, vector<1x128xf32>
    %321 = vector.broadcast %320 : vector<1x128xf32> to vector<16x128xf32>
    %322 = arith.addf %319, %321 : vector<16x128xf32>
    %c0_120 = arith.constant 0 : index
    %c0_121 = arith.constant 0 : index
    %323 = vector.load %arg30[%c0_120, %c0_121] : memref<1x64xf32, #tpu.memory_space<vmem>>, vector<1x64xf32>
    %cst_122 = arith.constant 0.000000e+00 : f32
    %324 = vector.broadcast %cst_122 : f32 to vector<1x32xf32>
    %325 = vector.extract_strided_slice %316 {offsets = [0, 0], sizes = [15, 32], strides = [1, 1]} : vector<16x32xf32> to vector<15x32xf32>
    %326 = tpu.concatenate %324, %325 in 0 : vector<1x32xf32>, vector<15x32xf32> -> vector<16x32xf32>
    %cst_123 = arith.constant 0.000000e+00 : f32
    %327 = vector.broadcast %cst_123 : f32 to vector<1x32xf32>
    %328 = vector.extract_strided_slice %316 {offsets = [1, 0], sizes = [15, 32], strides = [1, 1]} : vector<16x32xf32> to vector<15x32xf32>
    %329 = tpu.concatenate %328, %327 in 0 : vector<15x32xf32>, vector<1x32xf32> -> vector<16x32xf32>
    %330 = tpu.concatenate %326, %316, %329 in 1 : vector<16x32xf32>, vector<16x32xf32>, vector<16x32xf32> -> vector<16x96xf32>
    %331 = arith.truncf %330 : vector<16x96xf32> to vector<16x96xbf16>
    %c0_124 = arith.constant 0 : index
    %c0_125 = arith.constant 0 : index
    %332 = vector.load %arg29[%c0_124, %c0_125] : memref<96x64xbf16, #tpu.memory_space<vmem>>, vector<96x64xbf16>
    %cst_126 = arith.constant dense<0.000000e+00> : vector<16x64xf32>
    %333 = tpu.matmul %331, %332, %cst_126 {dimension_numbers = #tpu.dot_dimension_numbers<[1], [0], [0], [1], [0, 0, 1, 1], [], []>} : vector<16x96xbf16>, vector<96x64xbf16>, vector<16x64xf32> -> vector<16x64xf32>
    %334 = vector.broadcast %323 : vector<1x64xf32> to vector<16x64xf32>
    %335 = arith.addf %333, %334 : vector<16x64xf32>
    %cst_127 = arith.constant 0.000000e+00 : f32
    %336 = vector.broadcast %cst_127 : f32 to vector<16x64xf32>
    %337 = arith.maximumf %335, %336 : vector<16x64xf32>
    %c0_128 = arith.constant 0 : index
    %c0_129 = arith.constant 0 : index
    %338 = vector.load %arg31[%c0_128, %c0_129] : memref<1x64xf32, #tpu.memory_space<vmem>>, vector<1x64xf32>
    %c0_130 = arith.constant 0 : index
    %c0_131 = arith.constant 0 : index
    %339 = vector.load %arg32[%c0_130, %c0_131] : memref<1x64xf32, #tpu.memory_space<vmem>>, vector<1x64xf32>
    %cst_132 = arith.constant dense<0.000000e+00> : vector<16xf32>
    %340 = vector.multi_reduction <add>, %337, %cst_132 [1] : vector<16x64xf32> to vector<16xf32>
    %341 = vector.shape_cast %340 : vector<16xf32> to vector<16x1xf32>
    %cst_133 = arith.constant 6.400000e+01 : f32
    %342 = vector.broadcast %cst_133 : f32 to vector<16x1xf32>
    %343 = arith.divf %341, %342 : vector<16x1xf32>
    %344 = vector.broadcast %343 : vector<16x1xf32> to vector<16x64xf32>
    %345 = arith.subf %337, %344 : vector<16x64xf32>
    %346 = arith.mulf %345, %345 : vector<16x64xf32>
    %cst_134 = arith.constant dense<0.000000e+00> : vector<16xf32>
    %347 = vector.multi_reduction <add>, %346, %cst_134 [1] : vector<16x64xf32> to vector<16xf32>
    %348 = vector.shape_cast %347 : vector<16xf32> to vector<16x1xf32>
    %cst_135 = arith.constant 6.400000e+01 : f32
    %349 = vector.broadcast %cst_135 : f32 to vector<16x1xf32>
    %350 = arith.divf %348, %349 : vector<16x1xf32>
    %351 = vector.broadcast %343 : vector<16x1xf32> to vector<16x64xf32>
    %352 = arith.subf %337, %351 : vector<16x64xf32>
    %cst_136 = arith.constant 9.99999974E-5 : f32
    %353 = vector.broadcast %cst_136 : f32 to vector<16x1xf32>
    %354 = arith.addf %350, %353 : vector<16x1xf32>
    %355 = math.rsqrt %354 : vector<16x1xf32>
    %356 = vector.broadcast %355 : vector<16x1xf32> to vector<16x64xf32>
    %357 = arith.mulf %352, %356 : vector<16x64xf32>
    %358 = vector.broadcast %338 : vector<1x64xf32> to vector<16x64xf32>
    %359 = arith.mulf %357, %358 : vector<16x64xf32>
    %360 = vector.broadcast %339 : vector<1x64xf32> to vector<16x64xf32>
    %361 = arith.addf %359, %360 : vector<16x64xf32>
    %362 = vector.shape_cast %7 : vector<16x1xf32> to vector<16x1xf32>
    %363 = vector.broadcast %362 : vector<16x1xf32> to vector<16x64xf32>
    %364 = arith.mulf %361, %363 : vector<16x64xf32>
    %c0_137 = arith.constant 0 : index
    %c0_138 = arith.constant 0 : index
    %365 = vector.load %arg34[%c0_137, %c0_138] : memref<1x64xf32, #tpu.memory_space<vmem>>, vector<1x64xf32>
    %cst_139 = arith.constant 0.000000e+00 : f32
    %366 = vector.broadcast %cst_139 : f32 to vector<1x64xf32>
    %367 = vector.extract_strided_slice %364 {offsets = [0, 0], sizes = [15, 64], strides = [1, 1]} : vector<16x64xf32> to vector<15x64xf32>
    %368 = tpu.concatenate %366, %367 in 0 : vector<1x64xf32>, vector<15x64xf32> -> vector<16x64xf32>
    %cst_140 = arith.constant 0.000000e+00 : f32
    %369 = vector.broadcast %cst_140 : f32 to vector<1x64xf32>
    %370 = vector.extract_strided_slice %364 {offsets = [1, 0], sizes = [15, 64], strides = [1, 1]} : vector<16x64xf32> to vector<15x64xf32>
    %371 = tpu.concatenate %370, %369 in 0 : vector<15x64xf32>, vector<1x64xf32> -> vector<16x64xf32>
    %372 = tpu.concatenate %368, %364, %371 in 1 : vector<16x64xf32>, vector<16x64xf32>, vector<16x64xf32> -> vector<16x192xf32>
    %373 = arith.truncf %372 : vector<16x192xf32> to vector<16x192xbf16>
    %c0_141 = arith.constant 0 : index
    %c0_142 = arith.constant 0 : index
    %374 = vector.load %arg33[%c0_141, %c0_142] : memref<192x64xbf16, #tpu.memory_space<vmem>>, vector<192x64xbf16>
    %cst_143 = arith.constant dense<0.000000e+00> : vector<16x64xf32>
    %375 = tpu.matmul %373, %374, %cst_143 {dimension_numbers = #tpu.dot_dimension_numbers<[1], [0], [0], [1], [0, 0, 1, 1], [], []>} : vector<16x192xbf16>, vector<192x64xbf16>, vector<16x64xf32> -> vector<16x64xf32>
    %376 = vector.broadcast %365 : vector<1x64xf32> to vector<16x64xf32>
    %377 = arith.addf %375, %376 : vector<16x64xf32>
    %cst_144 = arith.constant 0.000000e+00 : f32
    %378 = vector.broadcast %cst_144 : f32 to vector<16x64xf32>
    %379 = arith.maximumf %377, %378 : vector<16x64xf32>
    %c0_145 = arith.constant 0 : index
    %c0_146 = arith.constant 0 : index
    %380 = vector.load %arg35[%c0_145, %c0_146] : memref<1x64xf32, #tpu.memory_space<vmem>>, vector<1x64xf32>
    %c0_147 = arith.constant 0 : index
    %c0_148 = arith.constant 0 : index
    %381 = vector.load %arg36[%c0_147, %c0_148] : memref<1x64xf32, #tpu.memory_space<vmem>>, vector<1x64xf32>
    %cst_149 = arith.constant dense<0.000000e+00> : vector<16xf32>
    %382 = vector.multi_reduction <add>, %379, %cst_149 [1] : vector<16x64xf32> to vector<16xf32>
    %383 = vector.shape_cast %382 : vector<16xf32> to vector<16x1xf32>
    %cst_150 = arith.constant 6.400000e+01 : f32
    %384 = vector.broadcast %cst_150 : f32 to vector<16x1xf32>
    %385 = arith.divf %383, %384 : vector<16x1xf32>
    %386 = vector.broadcast %385 : vector<16x1xf32> to vector<16x64xf32>
    %387 = arith.subf %379, %386 : vector<16x64xf32>
    %388 = arith.mulf %387, %387 : vector<16x64xf32>
    %cst_151 = arith.constant dense<0.000000e+00> : vector<16xf32>
    %389 = vector.multi_reduction <add>, %388, %cst_151 [1] : vector<16x64xf32> to vector<16xf32>
    %390 = vector.shape_cast %389 : vector<16xf32> to vector<16x1xf32>
    %cst_152 = arith.constant 6.400000e+01 : f32
    %391 = vector.broadcast %cst_152 : f32 to vector<16x1xf32>
    %392 = arith.divf %390, %391 : vector<16x1xf32>
    %393 = vector.broadcast %385 : vector<16x1xf32> to vector<16x64xf32>
    %394 = arith.subf %379, %393 : vector<16x64xf32>
    %cst_153 = arith.constant 9.99999974E-5 : f32
    %395 = vector.broadcast %cst_153 : f32 to vector<16x1xf32>
    %396 = arith.addf %392, %395 : vector<16x1xf32>
    %397 = math.rsqrt %396 : vector<16x1xf32>
    %398 = vector.broadcast %397 : vector<16x1xf32> to vector<16x64xf32>
    %399 = arith.mulf %394, %398 : vector<16x64xf32>
    %400 = vector.broadcast %380 : vector<1x64xf32> to vector<16x64xf32>
    %401 = arith.mulf %399, %400 : vector<16x64xf32>
    %402 = vector.broadcast %381 : vector<1x64xf32> to vector<16x64xf32>
    %403 = arith.addf %401, %402 : vector<16x64xf32>
    %404 = arith.mulf %403, %363 : vector<16x64xf32>
    %c0_154 = arith.constant 0 : index
    %c0_155 = arith.constant 0 : index
    %405 = vector.load %arg37[%c0_154, %c0_155] : memref<1x64xf32, #tpu.memory_space<vmem>>, vector<1x64xf32>
    %406 = vector.broadcast %405 : vector<1x64xf32> to vector<16x64xf32>
    %407 = arith.mulf %404, %406 : vector<16x64xf32>
    %cst_156 = arith.constant dense<0.000000e+00> : vector<16xf32>
    %408 = vector.multi_reduction <add>, %407, %cst_156 [1] : vector<16x64xf32> to vector<16xf32>
    %409 = vector.shape_cast %408 : vector<16xf32> to vector<16x1xf32>
    %c0_157 = arith.constant 0 : index
    %c0_158 = arith.constant 0 : index
    %410 = vector.load %arg38[%c0_157, %c0_158] : memref<1x1xf32, #tpu.memory_space<vmem>>, vector<1x1xf32>
    %411 = vector.broadcast %410 : vector<1x1xf32> to vector<16x1xf32>
    %412 = arith.addf %409, %411 : vector<16x1xf32>
    %413 = tpu.iota {dimensions = array<i32: 1>} : vector<1x128xi32>
    %c8_i32 = arith.constant 8 : i32
    %414 = vector.broadcast %c8_i32 : i32 to vector<1x128xi32>
    %415 = arith.cmpi eq, %413, %414 : vector<1x128xi32>
    %416 = arith.extui %415 : vector<1x128xi1> to vector<1x128xi32>
    %417 = arith.sitofp %416 : vector<1x128xi32> to vector<1x128xf32>
    %418 = vector.broadcast %412 : vector<16x1xf32> to vector<16x128xf32>
    %419 = vector.broadcast %417 : vector<1x128xf32> to vector<16x128xf32>
    %420 = arith.mulf %418, %419 : vector<16x128xf32>
    %421 = arith.addf %322, %420 : vector<16x128xf32>
    %422 = vector.broadcast %7 : vector<16x1xf32> to vector<16x128xf32>
    %423 = arith.mulf %421, %422 : vector<16x128xf32>
    %c0_159 = arith.constant 0 : index
    %c0_160 = arith.constant 0 : index
    %c0_161 = arith.constant 0 : index
    %424 = vector.load %arg39[%c0_159, %c0_160, %c0_161] : memref<1x16x128xf32, #tpu.memory_space<vmem>>, vector<1x16x128xf32>
    %425 = vector.shape_cast %424 : vector<1x16x128xf32> to vector<16x128xf32>
    %426 = vector.shape_cast %423 : vector<16x128xf32> to vector<1x16x128xf32>
    tpu.vector_store %arg39[%c0_159, %c0_160, %c0_161], %426 {strides = array<i32>} : memref<1x16x128xf32, #tpu.memory_space<vmem>>, vector<1x16x128xf32>,
    return
  }
  func.func @transform_0(%arg0: i32, %arg1: memref<2xi32, #tpu.memory_space<smem>>) -> (i32, i32, i32) {
    %c0_i32 = arith.constant 0 : i32
    %c0_i32_0 = arith.constant 0 : i32
    %c0_i32_1 = arith.constant 0 : i32
    return %arg0, %c0_i32, %c0_i32_0 : i32, i32, i32
  }
  func.func @transform_1(%arg0: i32, %arg1: memref<2xi32, #tpu.memory_space<smem>>) -> (i32, i32) {
    %c0_i32 = arith.constant 0 : i32
    %c0_i32_0 = arith.constant 0 : i32
    %c0_i32_1 = arith.constant 0 : i32
    return %c0_i32, %c0_i32_0 : i32, i32
  }
  func.func @transform_2(%arg0: i32, %arg1: memref<2xi32, #tpu.memory_space<smem>>) -> (i32, i32) {
    %c0_i32 = arith.constant 0 : i32
    %c0_i32_0 = arith.constant 0 : i32
    %c0_i32_1 = arith.constant 0 : i32
    return %c0_i32, %c0_i32_0 : i32, i32
  }
  func.func @transform_3(%arg0: i32, %arg1: memref<2xi32, #tpu.memory_space<smem>>) -> (i32, i32) {
    %c0_i32 = arith.constant 0 : i32
    %c0_i32_0 = arith.constant 0 : i32
    %c0_i32_1 = arith.constant 0 : i32
    return %c0_i32, %c0_i32_0 : i32, i32
  }
  func.func @transform_4(%arg0: i32, %arg1: memref<2xi32, #tpu.memory_space<smem>>) -> (i32, i32) {
    %c0_i32 = arith.constant 0 : i32
    %c0_i32_0 = arith.constant 0 : i32
    %c0_i32_1 = arith.constant 0 : i32
    return %c0_i32, %c0_i32_0 : i32, i32
  }
  func.func @transform_5(%arg0: i32, %arg1: memref<2xi32, #tpu.memory_space<smem>>) -> (i32, i32) {
    %c0_i32 = arith.constant 0 : i32
    %c0_i32_0 = arith.constant 0 : i32
    %c0_i32_1 = arith.constant 0 : i32
    return %c0_i32, %c0_i32_0 : i32, i32
  }
  func.func @transform_6(%arg0: i32, %arg1: memref<2xi32, #tpu.memory_space<smem>>) -> (i32, i32) {
    %c0_i32 = arith.constant 0 : i32
    %c0_i32_0 = arith.constant 0 : i32
    %c0_i32_1 = arith.constant 0 : i32
    return %c0_i32, %c0_i32_0 : i32, i32
  }
  func.func @transform_7(%arg0: i32, %arg1: memref<2xi32, #tpu.memory_space<smem>>) -> (i32, i32) {
    %c0_i32 = arith.constant 0 : i32
    %c0_i32_0 = arith.constant 0 : i32
    %c0_i32_1 = arith.constant 0 : i32
    return %c0_i32, %c0_i32_0 : i32, i32
  }
  func.func @transform_8(%arg0: i32, %arg1: memref<2xi32, #tpu.memory_space<smem>>) -> (i32, i32) {
    %c0_i32 = arith.constant 0 : i32
    %c0_i32_0 = arith.constant 0 : i32
    %c0_i32_1 = arith.constant 0 : i32
    return %c0_i32, %c0_i32_0 : i32, i32
  }
  func.func @transform_9(%arg0: i32, %arg1: memref<2xi32, #tpu.memory_space<smem>>) -> (i32, i32) {
    %c0_i32 = arith.constant 0 : i32
    %c0_i32_0 = arith.constant 0 : i32
    %c0_i32_1 = arith.constant 0 : i32
    return %c0_i32, %c0_i32_0 : i32, i32
  }
  func.func @transform_10(%arg0: i32, %arg1: memref<2xi32, #tpu.memory_space<smem>>) -> (i32, i32) {
    %c0_i32 = arith.constant 0 : i32
    %c0_i32_0 = arith.constant 0 : i32
    %c0_i32_1 = arith.constant 0 : i32
    return %c0_i32, %c0_i32_0 : i32, i32
  }
  func.func @transform_11(%arg0: i32, %arg1: memref<2xi32, #tpu.memory_space<smem>>) -> (i32, i32) {
    %c0_i32 = arith.constant 0 : i32
    %c0_i32_0 = arith.constant 0 : i32
    %c0_i32_1 = arith.constant 0 : i32
    return %c0_i32, %c0_i32_0 : i32, i32
  }
  func.func @transform_12(%arg0: i32, %arg1: memref<2xi32, #tpu.memory_space<smem>>) -> (i32, i32) {
    %c0_i32 = arith.constant 0 : i32
    %c0_i32_0 = arith.constant 0 : i32
    %c0_i32_1 = arith.constant 0 : i32
    return %c0_i32, %c0_i32_0 : i32, i32
  }
  func.func @transform_13(%arg0: i32, %arg1: memref<2xi32, #tpu.memory_space<smem>>) -> (i32, i32) {
    %c0_i32 = arith.constant 0 : i32
    %c0_i32_0 = arith.constant 0 : i32
    %c0_i32_1 = arith.constant 0 : i32
    return %c0_i32, %c0_i32_0 : i32, i32
  }
  func.func @transform_14(%arg0: i32, %arg1: memref<2xi32, #tpu.memory_space<smem>>) -> (i32, i32) {
    %c0_i32 = arith.constant 0 : i32
    %c0_i32_0 = arith.constant 0 : i32
    %c0_i32_1 = arith.constant 0 : i32
    return %c0_i32, %c0_i32_0 : i32, i32
  }
  func.func @transform_15(%arg0: i32, %arg1: memref<2xi32, #tpu.memory_space<smem>>) -> (i32, i32) {
    %c0_i32 = arith.constant 0 : i32
    %c0_i32_0 = arith.constant 0 : i32
    %c0_i32_1 = arith.constant 0 : i32
    return %c0_i32, %c0_i32_0 : i32, i32
  }
  func.func @transform_16(%arg0: i32, %arg1: memref<2xi32, #tpu.memory_space<smem>>) -> (i32, i32) {
    %c0_i32 = arith.constant 0 : i32
    %c0_i32_0 = arith.constant 0 : i32
    %c0_i32_1 = arith.constant 0 : i32
    return %c0_i32, %c0_i32_0 : i32, i32
  }
  func.func @transform_17(%arg0: i32, %arg1: memref<2xi32, #tpu.memory_space<smem>>) -> (i32, i32) {
    %c0_i32 = arith.constant 0 : i32
    %c0_i32_0 = arith.constant 0 : i32
    %c0_i32_1 = arith.constant 0 : i32
    return %c0_i32, %c0_i32_0 : i32, i32
  }
  func.func @transform_18(%arg0: i32, %arg1: memref<2xi32, #tpu.memory_space<smem>>) -> (i32, i32) {
    %c0_i32 = arith.constant 0 : i32
    %c0_i32_0 = arith.constant 0 : i32
    %c0_i32_1 = arith.constant 0 : i32
    return %c0_i32, %c0_i32_0 : i32, i32
  }
  func.func @transform_19(%arg0: i32, %arg1: memref<2xi32, #tpu.memory_space<smem>>) -> (i32, i32) {
    %c0_i32 = arith.constant 0 : i32
    %c0_i32_0 = arith.constant 0 : i32
    %c0_i32_1 = arith.constant 0 : i32
    return %c0_i32, %c0_i32_0 : i32, i32
  }
  func.func @transform_20(%arg0: i32, %arg1: memref<2xi32, #tpu.memory_space<smem>>) -> (i32, i32) {
    %c0_i32 = arith.constant 0 : i32
    %c0_i32_0 = arith.constant 0 : i32
    %c0_i32_1 = arith.constant 0 : i32
    return %c0_i32, %c0_i32_0 : i32, i32
  }
  func.func @transform_21(%arg0: i32, %arg1: memref<2xi32, #tpu.memory_space<smem>>) -> (i32, i32) {
    %c0_i32 = arith.constant 0 : i32
    %c0_i32_0 = arith.constant 0 : i32
    %c0_i32_1 = arith.constant 0 : i32
    return %c0_i32, %c0_i32_0 : i32, i32
  }
  func.func @transform_22(%arg0: i32, %arg1: memref<2xi32, #tpu.memory_space<smem>>) -> (i32, i32) {
    %c0_i32 = arith.constant 0 : i32
    %c0_i32_0 = arith.constant 0 : i32
    %c0_i32_1 = arith.constant 0 : i32
    return %c0_i32, %c0_i32_0 : i32, i32
  }
  func.func @transform_23(%arg0: i32, %arg1: memref<2xi32, #tpu.memory_space<smem>>) -> (i32, i32) {
    %c0_i32 = arith.constant 0 : i32
    %c0_i32_0 = arith.constant 0 : i32
    %c0_i32_1 = arith.constant 0 : i32
    return %c0_i32, %c0_i32_0 : i32, i32
  }
  func.func @transform_24(%arg0: i32, %arg1: memref<2xi32, #tpu.memory_space<smem>>) -> (i32, i32) {
    %c0_i32 = arith.constant 0 : i32
    %c0_i32_0 = arith.constant 0 : i32
    %c0_i32_1 = arith.constant 0 : i32
    return %c0_i32, %c0_i32_0 : i32, i32
  }
  func.func @transform_25(%arg0: i32, %arg1: memref<2xi32, #tpu.memory_space<smem>>) -> (i32, i32) {
    %c0_i32 = arith.constant 0 : i32
    %c0_i32_0 = arith.constant 0 : i32
    %c0_i32_1 = arith.constant 0 : i32
    return %c0_i32, %c0_i32_0 : i32, i32
  }
  func.func @transform_26(%arg0: i32, %arg1: memref<2xi32, #tpu.memory_space<smem>>) -> (i32, i32) {
    %c0_i32 = arith.constant 0 : i32
    %c0_i32_0 = arith.constant 0 : i32
    %c0_i32_1 = arith.constant 0 : i32
    return %c0_i32, %c0_i32_0 : i32, i32
  }
  func.func @transform_27(%arg0: i32, %arg1: memref<2xi32, #tpu.memory_space<smem>>) -> (i32, i32) {
    %c0_i32 = arith.constant 0 : i32
    %c0_i32_0 = arith.constant 0 : i32
    %c0_i32_1 = arith.constant 0 : i32
    return %c0_i32, %c0_i32_0 : i32, i32
  }
  func.func @transform_28(%arg0: i32, %arg1: memref<2xi32, #tpu.memory_space<smem>>) -> (i32, i32) {
    %c0_i32 = arith.constant 0 : i32
    %c0_i32_0 = arith.constant 0 : i32
    %c0_i32_1 = arith.constant 0 : i32
    return %c0_i32, %c0_i32_0 : i32, i32
  }
  func.func @transform_29(%arg0: i32, %arg1: memref<2xi32, #tpu.memory_space<smem>>) -> (i32, i32) {
    %c0_i32 = arith.constant 0 : i32
    %c0_i32_0 = arith.constant 0 : i32
    %c0_i32_1 = arith.constant 0 : i32
    return %c0_i32, %c0_i32_0 : i32, i32
  }
  func.func @transform_30(%arg0: i32, %arg1: memref<2xi32, #tpu.memory_space<smem>>) -> (i32, i32) {
    %c0_i32 = arith.constant 0 : i32
    %c0_i32_0 = arith.constant 0 : i32
    %c0_i32_1 = arith.constant 0 : i32
    return %c0_i32, %c0_i32_0 : i32, i32
  }
  func.func @transform_31(%arg0: i32, %arg1: memref<2xi32, #tpu.memory_space<smem>>) -> (i32, i32) {
    %c0_i32 = arith.constant 0 : i32
    %c0_i32_0 = arith.constant 0 : i32
    %c0_i32_1 = arith.constant 0 : i32
    return %c0_i32, %c0_i32_0 : i32, i32
  }
  func.func @transform_32(%arg0: i32, %arg1: memref<2xi32, #tpu.memory_space<smem>>) -> (i32, i32) {
    %c0_i32 = arith.constant 0 : i32
    %c0_i32_0 = arith.constant 0 : i32
    %c0_i32_1 = arith.constant 0 : i32
    return %c0_i32, %c0_i32_0 : i32, i32
  }
  func.func @transform_33(%arg0: i32, %arg1: memref<2xi32, #tpu.memory_space<smem>>) -> (i32, i32) {
    %c0_i32 = arith.constant 0 : i32
    %c0_i32_0 = arith.constant 0 : i32
    %c0_i32_1 = arith.constant 0 : i32
    return %c0_i32, %c0_i32_0 : i32, i32
  }
  func.func @transform_34(%arg0: i32, %arg1: memref<2xi32, #tpu.memory_space<smem>>) -> (i32, i32) {
    %c0_i32 = arith.constant 0 : i32
    %c0_i32_0 = arith.constant 0 : i32
    %c0_i32_1 = arith.constant 0 : i32
    return %c0_i32, %c0_i32_0 : i32, i32
  }
  func.func @transform_35(%arg0: i32, %arg1: memref<2xi32, #tpu.memory_space<smem>>) -> (i32, i32) {
    %c0_i32 = arith.constant 0 : i32
    %c0_i32_0 = arith.constant 0 : i32
    %c0_i32_1 = arith.constant 0 : i32
    return %c0_i32, %c0_i32_0 : i32, i32
  }
  func.func @transform_36(%arg0: i32, %arg1: memref<2xi32, #tpu.memory_space<smem>>) -> (i32, i32) {
    %c0_i32 = arith.constant 0 : i32
    %c0_i32_0 = arith.constant 0 : i32
    %c0_i32_1 = arith.constant 0 : i32
    return %c0_i32, %c0_i32_0 : i32, i32
  }
  func.func @transform_37(%arg0: i32, %arg1: memref<2xi32, #tpu.memory_space<smem>>) -> (i32, i32, i32) {
    %c0_i32 = arith.constant 0 : i32
    %c0_i32_0 = arith.constant 0 : i32
    %c0_i32_1 = arith.constant 0 : i32
    return %arg0, %c0_i32, %c0_i32_0 : i32, i32, i32
  }
}

</mosaic_0001>

<bundles_post_ra>
// kernel: tpu_custom_call.1
= control target key start
LH: loop header
LB: loop body
LE: loop exit
PB: predicated region body
PF: predicated region fallthrough
CT: control target
= control target key end

     0   :  { %s3746_s6 = smov 1   ;;  %s3747_s10 = smov 2   ;;  %s4440_s0 = inlined_call_operand.smem [shape: u32[39], index: -1, kind: input, shape index: {}] }
   0x1   :  { %s3805_s5 = sld [smem:[%s4440_s0]]   ;;  %s3748_s14 = smov 3  }
   0x2   :  { %s3810_s9 = sld [smem:[%s4440_s0 + %s3746_s6]]   ;;  %s3749_s18 = smov 4  }
   0x3   :  { %s3815_s13 = sld [smem:[%s4440_s0 + %s3747_s10]]   ;;  %s3750_s22 = smov 5  }
   0x4   :  { %s3820_s17 = sld [smem:[%s4440_s0 + %s3748_s14]]   ;;  %s3751_s26 = smov 6  }
   0x5   :  { %s3825_s21 = sld [smem:[%s4440_s0 + %s3749_s18]]   ;;  %s3752_s30 = smov 7  }
   0x6   :  { %s3830_s25 = sld [smem:[%s4440_s0 + %s3750_s22]]   ;;  %s3753_s4 = smov 8  }
   0x7   :  { %s3835_s29 = sld [smem:[%s4440_s0 + %s3751_s26]]   ;;  %s3754_s10 = smov 9  }
   0x8   :  { %4458 = sst [smem:[#allocation9_spill]] %s3810_s9  ;;  %s3755_s15 = smov 10  }
   0x9   :  { %s3840_s3 = sld [smem:[%s4440_s0 + %s3752_s30]]   ;;  %s3756_s20 = smov 11  }
   0xa   :  { %s3845_s8 = sld [smem:[%s4440_s0 + %s3753_s4]]   ;;  %s3757_s26 = smov 12  }
   0xb   :  { %s3850_s14 = sld [smem:[%s4440_s0 + %s3754_s10]]   ;;  %s3758_s1 = smov 13  }
   0xc   :  { %s3855_s19 = sld [smem:[%s4440_s0 + %s3755_s15]]   ;;  %s3759_s7 = smov 14  }
   0xd   :  { %s3860_s24 = sld [smem:[%s4440_s0 + %s3756_s20]]   ;;  %s3760_s15 = smov 15  }
   0xe   :  { %s3865_s30 = sld [smem:[%s4440_s0 + %s3757_s26]]   ;;  %s3761_s22 = smov 16  }
   0xf   :  { %4459 = sst [smem:[#allocation10_spill]] %s3840_s3  ;;  %s3762_s28 = smov 17  }
  0x10   :  { %4460 = sst [smem:[#allocation11_spill]] %s3845_s8  ;;  %s3781_s26 = smov 36  }
  0x11   :  { %s3870_s6 = sld [smem:[%s4440_s0 + %s3758_s1]]   ;;  %s3782_s2 = smov 38  }
  0x12   :  { %s3875_s12 = sld [smem:[%s4440_s0 + %s3759_s7]]   ;;  %s3763_s7 = smov 18  }
  0x13   :  { %s3880_s20 = sld [smem:[%s4440_s0 + %s3760_s15]]   ;;  %s3764_s15 = smov 19  }
  0x14   :  { %s3885_s27 = sld [smem:[%s4440_s0 + %s3761_s22]]   ;;  %s3765_s22 = smov 20  }
  0x15   :  { %s3890_s4 = sld [smem:[%s4440_s0 + %s3762_s28]]   ;;  %s3766_s28 = smov 21  }
  0x17   :  { %4461 = sst [smem:[#allocation12_spill]] %s3870_s6 }
  0x18   :  { %4462 = sst [smem:[#allocation13_spill]] %s3875_s12 }
  0x19   :  { %4463 = sst [smem:[#allocation14_spill]] %s3880_s20 }
  0x1a   :  { %4464 = sst [smem:[#allocation15_spill]] %s3885_s27 }
  0x1b   :  { %4465 = sst [smem:[#allocation16_spill]] %s3890_s4 }
  0x1c   :  { %s3895_s6 = sld [smem:[%s4440_s0 + %s3763_s7]]   ;;  %s3767_s7 = smov 22  }
  0x1d   :  { %s3900_s20 = sld [smem:[%s4440_s0 + %s3764_s15]]   ;;  %s3768_s15 = smov 23  }
  0x1e   :  { %s3905_s27 = sld [smem:[%s4440_s0 + %s3765_s22]]   ;;  %s3769_s22 = smov 24  }
  0x1f   :  { %s3910_s4 = sld [smem:[%s4440_s0 + %s3766_s28]]   ;;  %s3770_s28 = smov 25  }
  0x22   :  { %4466 = sst [smem:[#allocation17_spill]] %s3895_s6 }
  0x23   :  { %4467 = sst [smem:[#allocation18_spill]] %s3900_s20 }
  0x24   :  { %4468 = sst [smem:[#allocation19_spill]] %s3905_s27 }
  0x25   :  { %4469 = sst [smem:[#allocation20_spill]] %s3910_s4 }
  0x26   :  { %s3915_s6 = sld [smem:[%s4440_s0 + %s3767_s7]]   ;;  %s3771_s7 = smov 26  }
  0x27   :  { %s3920_s20 = sld [smem:[%s4440_s0 + %s3768_s15]]   ;;  %s3772_s15 = smov 27  }
  0x28   :  { %s3925_s27 = sld [smem:[%s4440_s0 + %s3769_s22]]   ;;  %s3773_s22 = smov 28  }
  0x29   :  { %s3930_s4 = sld [smem:[%s4440_s0 + %s3770_s28]]   ;;  %s3774_s28 = smov 29  }
  0x2a   :  { %s3945_s1 = sld [smem:[%s4440_s0 + %s3773_s22]]   ;;  %s3777_s22 = smov 32  }
  0x2b   :  { %s3950_s10 = sld [smem:[%s4440_s0 + %s3774_s28]]  }
  0x2c   :  { %4470 = sst [smem:[#allocation21_spill]] %s3915_s6 }
  0x2d   :  { %4471 = sst [smem:[#allocation22_spill]] %s3920_s20 }
  0x2e   :  { %4472 = sst [smem:[#allocation23_spill]] %s3925_s27 }
  0x2f   :  { %4473 = sst [smem:[#allocation24_spill]] %s3930_s4  ;;  %s3778_s4 = smov 33  }
  0x30   :  { %s3935_s6 = sld [smem:[%s4440_s0 + %s3771_s7]]   ;;  %s3775_s7 = smov 30  }
  0x31   :  { %s3940_s20 = sld [smem:[%s4440_s0 + %s3772_s15]]   ;;  %s3776_s15 = smov 31  }
  0x32   :  { %4476 = sst [smem:[#allocation27_spill]] %s3945_s1 }
  0x33   :  { %4477 = sst [smem:[#allocation28_spill]] %s3950_s10 }
  0x34   :  { %s3955_s16 = sld [smem:[%s4440_s0 + %s3775_s7]]   ;;  %s3779_s7 = smov 34  }
  0x35   :  { %s3960_s23 = sld [smem:[%s4440_s0 + %s3776_s15]]   ;;  %s3780_s15 = smov 35  }
  0x36   :  { %4474 = sst [smem:[#allocation25_spill]] %s3935_s6 }
  0x37   :  { %4475 = sst [smem:[#allocation26_spill]] %s3940_s20 }
  0x38   :  { %s3965_s6 = sld [smem:[%s4440_s0 + %s3777_s22]]   ;;  %s83_s22 = sshll.u32 %s3805_s5, 4  ;;  %s84_s22 = int_to_ptr.vmem [resolvable:$true] %s83_s22 }
  0x39   :  { %s3970_s27 = sld [smem:[%s4440_s0 + %s3778_s4]]  }
  0x3a   :  { %4478 = sst [smem:[#allocation29_spill]] %s3955_s16 }
  0x3b   :  { %4479 = sst [smem:[#allocation30_spill]] %s3960_s23  ;;  %s3672_s23 = scalar_lea.vmem %s3805_s5, 1 }
  0x3c   :  { %s3975_s20 = sld [smem:[%s4440_s0 + %s3779_s7]]   ;;  %s3668_s7 = sshra.s32 %s84_s22, 4  ;;  %s3669_s7 = int_to_ptr.vmem [resolvable:$true] %s3668_s7 }
  0x3d   :  { %s3980_s1 = sld [smem:[%s4440_s0 + %s3780_s15]]   ;;  %s3670_s11 = scalar_lea.vmem %s3669_s7, 1 }
  0x3e   :  { %4480 = sst [smem:[#allocation31_spill]] %s3965_s6  ;;  %p3671_p0 = scmp.ne.s32.totalorder %s3669_s7, %s3670_s11 }
  0x3f   :  { %4481 = sst [smem:[#allocation32_spill]] %s3970_s27  ;;  %p3673_p1 = scmp.lt.s32.totalorder %s3669_s7, %s3805_s5 }
  0x40   :  { %s3986_s4 = sld [smem:[%s4440_s0 + %s3781_s26]]   ;;  %p3674_p2 = scmp.lt.s32.totalorder %s3672_s23, %s3670_s11 }
  0x41   :  { %s3991_s16 = sld [smem:[%s4440_s0 + %s3782_s2]]  }
  0x42   :  { %p3675_p3 = por %p3674_p2, %p3673_p1 }
  0x43   :  { %4482 = sst [smem:[#allocation33_spill]] %s3980_s1 }
  0x44   :  { %p3676_p4 = pnand %p3675_p3, %p3671_p0 }
  0x46   :  { %4483 = sst [smem:[#allocation34_spill]] %s3986_s4 }
  0x47   :  { %3679 = shalt.err (!%p3676_p4)  }
  0x48   :  { %s3783_s6 = smov [#allocation3]   ;;  %s3784_s15 = smov 37  }
  0x49   :  { %86 = dma.vmem_to_smem %s84_s22, 16, %s3783_s6, [#allocation2] }
  0x4a   :  { %s3085_s28 = sld [smem:[%s4440_s0 + %s3784_s15]]  }
  0x50   :  { %v87_v0 = vstv %s3085_s28 }
  0x51   :  { %88 = vst [vmem:[#allocation4] sm:$0x1] %v87_v0 }
  0x52   :  { %3724 = dma.done.wait [#allocation2], 16 }
  0x53   :  { %3725 = vsyncadd [#allocation2], 4294967280 }
  0x54   :  { %91 = sfence }
  0x55   :  { %92 = vsyncpa [#allocation6], 0 }
  0x56   :  { %94 = vsyncpa [#allocation6 + $0x1], 0  ;;  %s3998_s10 = smov 0   ;;  %s4000_s5 = smov 0  }
  0x57   :  { %s4002_s27 = smov 0   ;;  %s4004_s2 = smov 0  }
  0x58 LB: > { %s4484_s12 = sld [smem:[#allocation13_spill]]  ;;  %s4019_s0 = sadd.s32 4294967295, %s3744_s2   ;;  %s3736_s5 = sphi %s4000_s5, %s4518_s5   ;;  %s3732_s10 = sphi %s3998_s10, %s4517_s10   ;;  %s3744_s2 = sphi %s4004_s2, %s4520_s2   ;;  %s3740_s27 = sphi %s4002_s27, %s4519_s27  }
  0x59   : > { %s4485_s8 = sld [smem:[#allocation11_spill]]  ;;  %s3088_s22 = sadd.s32 4294967294, %s3744_s2  }
  0x5a   : > { %s4023_s7 = sadd.s32 1, %s3744_s2   ;;  %s889_s11 = sadd.s32 1, %s3740_s27 }
  0x5b   : > { %s886_s23 = ssub.s32 %s3744_s2, %s4023_s7  ;;  %p899_p5 = scmp.ne.s32.totalorder %s3740_s27, %s3736_s5 }
  0x5c   : > { %p887_p6 = scmp.eq.s32.totalorder %s886_s23, 0  ;;  %p900_p7 = scmp.eq.s32.totalorder %s4019_s0, 1 }
  0x5d   : > { %p905_p8 = scmp.ne.s32.totalorder %s3736_s5, %s3732_s10  ;;  %p906_p9 = scmp.eq.s32.totalorder %s3088_s22, 1 }
  0x5e   : > { %s4034_s6 = scalar_select %p887_p6, %s3740_s27, %s889_s11  }
  0x5f   : > { %p4036_p10 = por %p900_p7, %p899_p5  ;;  %p4040_p11 = por %p906_p9, %p905_p8 }
  0x60   : > { %p3091_p12 = scmp.ge.s32.totalorder %s3744_s2, 1  ;;  %p1040_p13 = scmp.lt.s32.totalorder %s3744_s2, 3 }
  0x62   : > { %p1041_p0 = pnand %p3091_p12, %p1040_p13 }
  0x63   : > { %s4488_s9 = sld [smem:[#allocation9_spill]] (!%p1041_p0)  ;;  %p1132_p1 = scmp.lt.s32.totalorder (!%p1041_p0), %s4019_s0, 1 }
  0x64   : > { %1044 = sbr.rel (%p1041_p0) target bundleno = 5851 (0x16db), region = 168  ;;  %s1138_s26 = sld [smem:[#allocation3 + %s4019_s0]] (!%p1041_p0) }
  0x65   : > { %s4450_s23 = smov (!%p1041_p0), 64   ;;  %s4491_s3 = sld [smem:[#allocation10_spill]] (!%p1041_p0) }
  0x66   : > { %s4514_s1 = sld [smem:[#allocation33_spill]] (!%p1041_p0) }
  0x67   : > { %s4515_s4 = sld [smem:[#allocation34_spill]] (!%p1041_p0) }
  0x69   : > { %v3382_v1 = vld [vmem:[%s3815_s13 + $0x8] sm:$0xff]  ;;  %v1139_v2 = vlaneseq  ;;  %v3381_v3 = vld [vmem:[%s3815_s13] sm:$0xff]  ;;  %s1133_s28 = scalar_select %p1132_p1, %s4019_s0, 1  ;;  %vm1177_vm0 = vcmask 261120   ;;  %v3785_v9 = vmov 0.0   ;;  %vm1203_vm3 = vcmask 130048  }
  0x6a   : > { %1187 = vmatpush.bf16.msra.mxu0 %v3382_v1  ;;  %v1144_v6 = vstv %s1138_s26  ;;  %v3583_v16 = vld [vmem:[%s3820_s17] ss:$0 sm:$0xff]  ;;  %s3787_s26 = smov 96  }
  0x6b   : > { %v1140_v4 = vshrl.u32 %v1139_v2, 7  ;;  %s3380_s22 = sshll.u32 %s1133_s28, 4  ;;  %v4077_v24 = vand.u32 127, %v1139_v2  ;;  %s3788_s28 = smov 80  }
  0x6c   : > { %s1136_s11 = scalar_lea.vmem %s4488_s9, %s3380_s22  ;;  %s3789_s22 = smov 112  }
  0x6d   : > { %v1141_v5 = vadd.s32 8, %v1140_v4  ;;  %v1152_v7 = vld [vmem:[%s1136_s11] sm:$0xff]  ;;  %v1153_v8 = vld [vmem:[%s1136_s11 + $0x8] sm:$0xff]  ;;  %vm1145_vm1 = vcmp.lt.s32.totalorder %v1140_v4, %v1144_v6  ;;  %vm4080_vm4 = vcmp.lt.s32.totalorder %v4077_v24, %v1144_v6  ;;  %s4447_s11 = smov 48   ;;  %s4507_s9 = sld [smem:[#allocation23_spill]] }
  0x6e   : > { %1188 = vmatpush.bf16.msra.mxu0 %v3381_v3  ;;  %v4053_v10 = vsel %vm1145_vm1, 1.0, %v3785_v9 }
  0x6f   : > { %vm1146_vm2 = vcmp.lt.s32.totalorder %v1141_v5, %v1144_v6  ;;  %v4059_v12 = vmul.f32 %v4053_v10, %v1152_v7  ;;  %v3383_v6 = vld [vmem:[%s3825_s21] sm:$0xff] }
  0x70   : > { %v4056_v11 = vsel %vm1146_vm2, 1.0, %v3785_v9 }
  0x71   : > { %v4062_v13 = vmul.f32 %v4056_v11, %v1153_v8 }
  0x73   : > { %v1156_v14 = vpack.c.bf16 %v4062_v13, %v4059_v12 }
  0x75   : > { %3105 = vmatmul.msk.bf16.vlgmr.msra.gmra.mxu0 %vm1177_vm0, %v1156_v14 }
  0xf2   : > { %v1190_v15 = vpop.f32.mrf.mxu0 }
  0xf3   : > { %v1191_v18 = vadd.f32 %v3583_v16, %v1190_v15 }
  0xfa   : > { %v1192_v17 = vpop.f32.mrf.mxu0 }
  0xfb   : > { %v1193_v19 = vadd.f32 %v3583_v16, %v1192_v17 }
  0xfd   : > { %v4068_v20 = vpack.c.bf16 %v1193_v19, %v1191_v18 }
  0xff   : > { %1279 = vrot.lane.b32.xlu2 %v4068_v20, %s4450_s23  ;;  %1201 = vrot.lane.b32.xlu0 %v4068_v20, %s3787_s26 }
 0x159   : > { %v1280_v21 = vpop.permute.xlu2 %1279 }
 0x15a   : > { %1292 = vmatpush.bf16.msra.mxu3 %v1280_v21 }
 0x171   : > { %v1202_v22 = vpop.permute.xlu0 %1201 }
 0x172   : > { %v1208_v23 = vsel %vm1203_vm3, %v1202_v22, 0 }
 0x173   : > { %1217 = vmatpush.bf16.xpose.msra.mxu1 %v1208_v23 }
 0x17a   : > { %3106 = vmatmul.msk.bf16.vlgmr.msra.gmra.mxu1 %vm1203_vm3, %v4068_v20 }
 0x17b   : > { %1437 = vmatpush.bf16.msrb.mxu1 %v3383_v6 }
 0x1f7   : > { %v1219_v26 = vpop.f32.mrf.mxu1 }
 0x1f8   : > { %v1226_v27 = vsel %vm4080_vm4, %v1219_v26, -10000.0 }
 0x1f9   : > { %v1228_v28 = vsel %vm1203_vm3, %v1226_v27, -inf }
 0x1fa   : > { %1229 = vmax.xlane.f32.xlu0 %v1228_v28 }
 0x1ff   : > { %v1221_v29 = vpop.f32.mrf.mxu1 }
 0x200   : > { %v1227_v30 = vsel %vm4080_vm4, %v1221_v29, -10000.0 }
 0x201   : > { %v1231_v31 = vsel %vm1203_vm3, %v1227_v30, -inf }
 0x202   : > { %1232 = vmax.xlane.f32.xlu1 %v1231_v31 }
 0x26d   : > { %v1230_v32 = vpop.xlane.xlu0 %1229 }
 0x26e   : > { %v1234_v33 = vsub.f32 %v1226_v27, %v1230_v32 }
 0x270   : > { %v1236_v34 = vmul.f32 1.442695, %v1234_v33 }
 0x272   : > { %3608 = vpow2.f32 %v1236_v34 }
 0x275   : > { %v1233_v35 = vpop.xlane.xlu1 %1232 }
 0x276   : > { %v1235_v36 = vsub.f32 %v1227_v30, %v1233_v35 }
 0x278   : > { %v3609_v37 = vpop.eup %3608  ;;  %v1238_v38 = vmul.f32 1.442695, %v1235_v36 }
 0x279   : > { %v1240_v39 = vsel %vm1203_vm3, %v3609_v37, 0.0 }
 0x27a   : > { %3610 = vpow2.f32 %v1238_v38  ;;  %1241 = vadd.xlane.f32.xlu1 %v1240_v39 }
 0x280   : > { %v3611_v40 = vpop.eup %3610 }
 0x281   : > { %v1243_v41 = vsel %vm1203_vm3, %v3611_v40, 0.0 }
 0x282   : > { %1244 = vadd.xlane.f32.xlu2 %v1243_v41 }
 0x293   : > { %1302 = vrot.lane.b32.xlu1 %v4068_v20, %s3788_s28 }
 0x29a   : > { %1300 = vrot.lane.b32.xlu2 %v4068_v20, %s3789_s22 }
 0x2ed   : > { %v1242_v42 = vpop.xlane.xlu1 %1241 }
 0x2ee   : > { %3612 = vrcp.f32 %v1242_v42  ;;  %v1257_v51 = vand.u32 2147483648, %v1242_v42  ;;  %vm1251_vm6 = vweird.f32 %v1242_v42  ;;  %v1255_v52 = vand.u32 2147483647, %v1242_v42 }
 0x2f0   : > { %v1258_v58 = vor.u32 1.1754944e-38, %v1257_v51  ;;  %vm1256_vm9 = vcmp.eq.f32.partialorder %v1255_v52, 8.507059e+37 }
 0x2f4   : > { %v3613_v43 = vpop.eup %3612 }
 0x2f5   : > { %v1247_v44 = vmul.f32 %v3613_v43, %v1242_v42  ;;  %v1245_v45 = vpop.xlane.xlu2 %1244  ;;  %vm1252_vm5 = vweird.f32 %v3613_v43 }
 0x2f6   : > { %3614 = vrcp.f32 %v1245_v45  ;;  %vm1253_vm7 = vmor %vm1251_vm6, %vm1252_vm5  ;;  %v1272_v54 = vand.u32 2147483648, %v1245_v45  ;;  %v1270_v56 = vand.u32 2147483647, %v1245_v45  ;;  %vm1266_vm10 = vweird.f32 %v1245_v45 }
 0x2f7   : > { %v1248_v46 = vsub.f32 1.0, %v1247_v44 }
 0x2f8   : > { %v1273_v60 = vor.u32 1.1754944e-38, %v1272_v54  ;;  %vm1271_vm12 = vcmp.eq.f32.partialorder %v1270_v56, 8.507059e+37 }
 0x2f9   : > { %v1249_v47 = vmul.f32 %v3613_v43, %v1248_v46 }
 0x2fb   : > { %v1250_v49 = vadd.f32 %v3613_v43, %v1249_v47 }
 0x2fc   : > { %v3615_v48 = vpop.eup %3614 }
 0x2fd   : > { %v1262_v50 = vmul.f32 %v3615_v48, %v1245_v45  ;;  %vm1267_vm8 = vweird.f32 %v3615_v48  ;;  %v1254_v57 = vsel %vm1253_vm7, %v3613_v43, %v1250_v49  ;;  %v1301_v5 = vpop.permute.xlu2 %1300 }
 0x2fe   : > { %vm1268_vm11 = vmor %vm1266_vm10, %vm1267_vm8  ;;  %v1259_v61 = vsel %vm1256_vm9, %v1258_v58, %v1254_v57 }
 0x2ff   : > { %v1263_v53 = vsub.f32 1.0, %v1262_v50  ;;  %v1276_v2 = vmul.f32 %v3609_v37, %v1259_v61 }
 0x301   : > { %v1264_v55 = vmul.f32 %v3615_v48, %v1263_v53 }
 0x303   : > { %v1265_v59 = vadd.f32 %v3615_v48, %v1264_v55 }
 0x305   : > { %v1303_v62 = vpop.permute.xlu1 %1302  ;;  %v1269_v63 = vsel %vm1268_vm11, %v3615_v48, %v1265_v59  ;;  %v3384_v59 = vld [vmem:[%s3825_s21 + $0x8] sm:$0xff] }
 0x306   : > { %v1308_v0 = vsel %vm1203_vm3, %v1303_v62, 0  ;;  %v1274_v1 = vsel %vm1271_vm12, %v1273_v60, %v1269_v63  ;;  %1414 = vmatpush.bf16.msrb.mxu0 %v3384_v59 }
 0x307   : > { %1317 = vmatpush.bf16.xpose.msrb.mxu3 %v1308_v0  ;;  %v1277_v3 = vmul.f32 %v3611_v40, %v1274_v1  ;;  %v3584_v0 = vld [vmem:[%s3830_s25] ss:$0 sm:$0xff] }
 0x309   : > { %v1278_v4 = vpack.c.bf16 %v1277_v3, %v1276_v2 }
 0x30b   : > { %3107 = vmatmul.msk.bf16.vlgmr.msra.gmra.mxu3 %vm1203_vm3, %v1278_v4 }
 0x31b   : > { %3108 = vmatmul.msk.bf16.vlgmr.msrb.gmra.mxu3 %vm1203_vm3, %v1301_v5 }
 0x38e   : > { %v1294_v7 = vpop.f32.mrf.mxu3 }
 0x396   : > { %v1296_v8 = vpop.f32.mrf.mxu3 }
 0x397   : > { %v1299_v14 = vpack.c.bf16 %v1296_v8, %v1294_v7 }
 0x399   : > { %3119 = vmatmul.msk.bf16.vlgmr.msrb.gmra.mxu1 %vm1203_vm3, %v1299_v14 }
 0x39e   : > { %v1319_v15 = vpop.f32.mrf.mxu3 }
 0x39f   : > { %v1324_v16 = vsel %vm4080_vm4, %v1319_v15, -10000.0 }
 0x3a0   : > { %v1326_v17 = vsel %vm1203_vm3, %v1324_v16, -inf }
 0x3a1   : > { %1327 = vmax.xlane.f32.xlu2 %v1326_v17  ;;  %v3791_v17 = vmov 32.0  }
 0x3a6   : > { %v1321_v18 = vpop.f32.mrf.mxu3 }
 0x3a7   : > { %v1325_v19 = vsel %vm4080_vm4, %v1321_v18, -10000.0 }
 0x3a8   : > { %v1329_v21 = vsel %vm1203_vm3, %v1325_v19, -inf }
 0x3a9   : > { %1330 = vmax.xlane.f32.xlu1 %v1329_v21 }
 0x414   : > { %v1328_v22 = vpop.xlane.xlu2 %1327 }
 0x415   : > { %v1332_v23 = vsub.f32 %v1324_v16, %v1328_v22 }
 0x416   : > { %v1439_v63 = vpop.f32.mrf.mxu1 }
 0x417   : > { %v1334_v26 = vmul.f32 1.442695, %v1332_v23 }
 0x419   : > { %3616 = vpow2.f32 %v1334_v26 }
 0x41c   : > { %v1331_v27 = vpop.xlane.xlu1 %1330 }
 0x41d   : > { %v1333_v28 = vsub.f32 %v1325_v19, %v1331_v27 }
 0x41e   : > { %v1441_v6 = vpop.f32.mrf.mxu1 }
 0x41f   : > { %v3617_v29 = vpop.eup %3616  ;;  %v1336_v30 = vmul.f32 1.442695, %v1333_v28 }
 0x420   : > { %v1338_v31 = vsel %vm1203_vm3, %v3617_v29, 0.0 }
 0x421   : > { %3618 = vpow2.f32 %v1336_v30  ;;  %1339 = vadd.xlane.f32.xlu0 %v1338_v31 }
 0x427   : > { %v3619_v32 = vpop.eup %3618 }
 0x428   : > { %v1341_v33 = vsel %vm1203_vm3, %v3619_v32, 0.0 }
 0x429   : > { %1342 = vadd.xlane.f32.xlu0 %v1341_v33 }
 0x43d   : > { %1377 = vrot.lane.b32.xlu0 %v4068_v20, %s4447_s11  ;;  %s4448_s11 = smov 32  }
 0x494   : > { %v1340_v34 = vpop.xlane.xlu0 %1339 }
 0x495   : > { %3620 = vrcp.f32 %v1340_v34  ;;  %v1355_v43 = vand.u32 2147483648, %v1340_v34  ;;  %vm1349_vm14 = vweird.f32 %v1340_v34  ;;  %v1353_v44 = vand.u32 2147483647, %v1340_v34 }
 0x497   : > { %v1356_v49 = vor.u32 1.1754944e-38, %v1355_v43  ;;  %vm1354_vm2 = vcmp.eq.f32.partialorder %v1353_v44, 8.507059e+37 }
 0x49b   : > { %v3621_v35 = vpop.eup %3620 }
 0x49c   : > { %v1345_v36 = vmul.f32 %v3621_v35, %v1340_v34  ;;  %v1343_v37 = vpop.xlane.xlu0 %1342  ;;  %vm1350_vm13 = vweird.f32 %v3621_v35 }
 0x49d   : > { %3622 = vrcp.f32 %v1343_v37  ;;  %vm1351_vm15 = vmor %vm1349_vm14, %vm1350_vm13  ;;  %v1370_v46 = vand.u32 2147483648, %v1343_v37  ;;  %v1368_v20 = vand.u32 2147483647, %v1343_v37  ;;  %vm1364_vm5 = vweird.f32 %v1343_v37 }
 0x49e   : > { %v1346_v38 = vsub.f32 1.0, %v1345_v36  ;;  %3624 = vrcp.f32 %v3791_v17  ;;  %v3387_v17 = vld [vmem:[%s4485_s8 + $0x10] sm:$0xff] }
 0x49f   : > { %v1371_v51 = vor.u32 1.1754944e-38, %v1370_v46  ;;  %vm1369_vm7 = vcmp.eq.f32.partialorder %v1368_v20, 8.507059e+37 }
 0x4a0   : > { %v1347_v39 = vmul.f32 %v3621_v35, %v1346_v38 }
 0x4a2   : > { %v1348_v41 = vadd.f32 %v3621_v35, %v1347_v39 }
 0x4a3   : > { %v3623_v40 = vpop.eup %3622 }
 0x4a4   : > { %v1360_v42 = vmul.f32 %v3623_v40, %v1343_v37  ;;  %vm1365_vm1 = vweird.f32 %v3623_v40  ;;  %v1352_v48 = vsel %vm1351_vm15, %v3621_v35, %v1348_v41  ;;  %v3625_v18 = vpop.eup %3624  ;;  %vm1527_vm15 = vcmask 1046528  }
 0x4a5   : > { %vm1366_vm6 = vmor %vm1364_vm5, %vm1365_vm1  ;;  %v1357_v52 = vsel %vm1354_vm2, %v1356_v49, %v1352_v48  ;;  %v1461_v19 = vmul.f32 32.0, %v3625_v18  ;;  %vm1465_vm8 = vweird.f32 %v3625_v18  ;;  %v3585_v48 = vld [vmem:[%s3835_s29] ss:$0 sm:$0xff]  ;;  %vm1520_vm1 = vcmask 1040384  }
 0x4a6   : > { %v1361_v45 = vsub.f32 1.0, %v1360_v42  ;;  %v1374_v55 = vmul.f32 %v3617_v29, %v1357_v52  ;;  %vm1548_vm2 = vcmask 523264   ;;  %vm1603_vm5 = vcmask 785408  }
 0x4a7   : > { %v1462_v21 = vsub.f32 1.0, %v1461_v19  ;;  %v3385_v19 = vld [vmem:[%s4485_s8] sm:$0xff] }
 0x4a8   : > { %v1362_v47 = vmul.f32 %v3623_v40, %v1361_v45 }
 0x4a9   : > { %v1463_v22 = vmul.f32 %v3625_v18, %v1462_v21 }
 0x4aa   : > { %v1363_v50 = vadd.f32 %v3623_v40, %v1362_v47 }
 0x4ab   : > { %v1464_v23 = vadd.f32 %v3625_v18, %v1463_v22 }
 0x4ac   : > { %v1367_v53 = vsel %vm1366_vm6, %v3623_v40, %v1363_v50 }
 0x4ad   : > { %v1372_v54 = vsel %vm1369_vm7, %v1371_v51, %v1367_v53 }
 0x4ae   : > { %v1375_v56 = vmul.f32 %v3619_v32, %v1372_v54 }
 0x4af   : > { %v1378_v57 = vpop.permute.xlu0 %1377 }
 0x4b0   : > { %1390 = vmatpush.bf16.msra.mxu2 %v1378_v57  ;;  %v1376_v58 = vpack.c.bf16 %v1375_v56, %v1374_v55  ;;  %v3586_v55 = vld [vmem:[%s4491_s3] ss:$0 sm:$0xff]  ;;  %s4503_s3 = sld [smem:[#allocation20_spill]] }
 0x4b3   : > { %3109 = vmatmul.msk.bf16.vlgmr.msra.gmra.mxu2 %vm1203_vm3, %v1376_v58 }
 0x536   : > { %v1392_v60 = vpop.f32.mrf.mxu2 }
 0x53e   : > { %v1394_v61 = vpop.f32.mrf.mxu2 }
 0x53f   : > { %v1397_v62 = vpack.c.bf16 %v1394_v61, %v1392_v60 }
 0x541   : > { %3114 = vmatmul.msk.bf16.vlgmr.msrb.gmra.mxu0 %vm1203_vm3, %v1397_v62 }
 0x5be   : > { %v1416_v1 = vpop.f32.mrf.mxu0 }
 0x5bf   : > { %v1440_v2 = vadd.f32 %v1439_v63, %v1416_v1 }
 0x5c1   : > { %v1448_v3 = vadd.f32 %v3584_v0, %v1440_v2 }
 0x5c3   : > { %v1450_v4 = vadd.f32 %v1448_v3, %v4059_v12  ;;  %v4119_v12 = vsel %vm1465_vm8, %v3625_v18, %v1464_v23  ;;  %v3386_v18 = vld [vmem:[%s4485_s8 + $0x8] sm:$0xff] }
 0x5c5   : > { %v1454_v5 = vsel %vm1177_vm0, %v1450_v4, 0.0 }
 0x5c6   : > { %1455 = vadd.xlane.f32.xlu2 %v1454_v5  ;;  %v1418_v7 = vpop.f32.mrf.mxu0 }
 0x5c7   : > { %v1442_v8 = vadd.f32 %v1441_v6, %v1418_v7 }
 0x5c9   : > { %v1449_v14 = vadd.f32 %v3584_v0, %v1442_v8 }
 0x5cb   : > { %v1451_v15 = vadd.f32 %v1449_v14, %v4062_v13  ;;  %v3390_v14 = vld [vmem:[%s4485_s8 + $0x28] sm:$0xff] }
 0x5cc   : > { %1609 = vmatpush.bf16.msra.mxu3 %v3390_v14 }
 0x5cd   : > { %v1457_v16 = vsel %vm1177_vm0, %v1451_v15, 0.0 }
 0x5ce   : > { %1458 = vadd.xlane.f32.xlu1 %v1457_v16  ;;  %v3388_v16 = vld [vmem:[%s4485_s8 + $0x18] sm:$0xff] }
 0x639   : > { %v1456_v26 = vpop.xlane.xlu2 %1455 }
 0x63a   : > { %v1467_v27 = vmul.f32 %v4119_v12, %v1456_v26 }
 0x63c   : > { %v1469_v28 = vsub.f32 %v1450_v4, %v1467_v27 }
 0x63e   : > { %v1471_v29 = vmul.f32 %v1469_v28, %v1469_v28 }
 0x640   : > { %v1473_v13 = vsel %vm1177_vm0, %v1471_v29, 0.0 }
 0x641   : > { %1474 = vadd.xlane.f32.xlu0 %v1473_v13  ;;  %v1459_v30 = vpop.xlane.xlu1 %1458 }
 0x642   : > { %v1468_v31 = vmul.f32 %v4119_v12, %v1459_v30 }
 0x644   : > { %v1470_v32 = vsub.f32 %v1451_v15, %v1468_v31  ;;  %v3389_v15 = vld [vmem:[%s4485_s8 + $0x20] sm:$0xff]  ;;  %s4506_s8 = sld [smem:[#allocation27_spill]] }
 0x645   : > { %1610 = vmatpush.bf16.msra.mxu3 %v3389_v15 }
 0x646   : > { %v1472_v33 = vmul.f32 %v1470_v32, %v1470_v32 }
 0x648   : > { %v1476_v34 = vsel %vm1177_vm0, %v1472_v33, 0.0 }
 0x649   : > { %1477 = vadd.xlane.f32.xlu2 %v1476_v34  ;;  %1611 = vmatpush.bf16.msra.mxu3 %v3388_v16  ;;  %v3402_v34 = vld [vmem:[%s3855_s19 + $0x58] sm:$0xff] }
 0x64a   : > { %1770 = vmatpush.bf16.msra.mxu0 %v3402_v34 }
 0x64d   : > { %1612 = vmatpush.bf16.msra.mxu3 %v3387_v17 }
 0x651   : > { %1613 = vmatpush.bf16.msra.mxu3 %v3386_v18 }
 0x655   : > { %1614 = vmatpush.bf16.msra.mxu3 %v3385_v19 }
 0x6b4   : > { %v1475_v35 = vpop.xlane.xlu0 %1474 }
 0x6b5   : > { %v1479_v36 = vmul.f32 %v1475_v35, %v4119_v12  ;;  %v3401_v35 = vld [vmem:[%s3855_s19 + $0x50] sm:$0xff] }
 0x6b6   : > { %1771 = vmatpush.bf16.msra.mxu0 %v3401_v35 }
 0x6b7   : > { %v1481_v37 = vadd.f32 0.0001, %v1479_v36  ;;  %v3400_v36 = vld [vmem:[%s3855_s19 + $0x48] sm:$0xff] }
 0x6b9   : > { %3626 = vrsqrt.f32 %v1481_v37  ;;  %vm1489_vm10 = vweird.f32 %v1481_v37 }
 0x6ba   : > { %1772 = vmatpush.bf16.msra.mxu0 %v3400_v36 }
 0x6bc   : > { %v1478_v38 = vpop.xlane.xlu2 %1477 }
 0x6bd   : > { %v1480_v39 = vmul.f32 %v1478_v38, %v4119_v12  ;;  %v3398_v38 = vld [vmem:[%s3855_s19 + $0x38] sm:$0xff] }
 0x6be   : > { %1752 = vmatpush.bf16.msrb.mxu2 %v3398_v38 }
 0x6bf   : > { %v3627_v40 = vpop.eup %3626  ;;  %v1482_v41 = vadd.f32 0.0001, %v1480_v39  ;;  %v3397_v39 = vld [vmem:[%s3855_s19 + $0x30] sm:$0xff] }
 0x6c0   : > { %v1484_v42 = vmul.f32 %v3627_v40, %v1481_v37  ;;  %vm1490_vm9 = vweird.f32 %v3627_v40  ;;  %v3399_v37 = vld [vmem:[%s3855_s19 + $0x40] sm:$0xff] }
 0x6c1   : > { %3628 = vrsqrt.f32 %v1482_v41  ;;  %vm1491_vm11 = vmor %vm1489_vm10, %vm1490_vm9  ;;  %vm1499_vm13 = vweird.f32 %v1482_v41  ;;  %1773 = vmatpush.bf16.msra.mxu0 %v3399_v37 }
 0x6c2   : > { %v1485_v43 = vmul.f32 %v3627_v40, %v1484_v42  ;;  %1753 = vmatpush.bf16.msrb.mxu2 %v3397_v39  ;;  %v3395_v42 = vld [vmem:[%s3855_s19 + $0x20] sm:$0xff]  ;;  %v3404_v39 = vld [vmem:[%s4484_s12 + $0x8] sm:$0xff] }
 0x6c3   : > { %1872 = vmatpush.bf16.msra.mxu1 %v3404_v39 }
 0x6c4   : > { %v1486_v44 = vmul.f32 0.5, %v1485_v43 }
 0x6c6   : > { %v1487_v45 = vsub.f32 1.5, %v1486_v44 }
 0x6c7   : > { %v3629_v46 = vpop.eup %3628 }
 0x6c8   : > { %v1488_v47 = vmul.f32 %v3627_v40, %v1487_v45  ;;  %v1494_v20 = vmul.f32 %v3629_v46, %v1482_v41  ;;  %vm1500_vm12 = vweird.f32 %v3629_v46  ;;  %v3587_v41 = vld [vmem:[%s3850_s14] ss:$0 sm:$0xff]  ;;  %v3394_v45 = vld [vmem:[%s3855_s19 + $0x18] sm:$0xff] }
 0x6c9   : > { %vm1501_vm14 = vmor %vm1499_vm13, %vm1500_vm12 }
 0x6ca   : > { %v1492_v49 = vsel %vm1491_vm11, %v3627_v40, %v1488_v47  ;;  %v1495_v50 = vmul.f32 %v3629_v46, %v1494_v20  ;;  %v3396_v40 = vld [vmem:[%s3855_s19 + $0x28] sm:$0xff]  ;;  %v3393_v47 = vld [vmem:[%s3855_s19 + $0x10] sm:$0xff] }
 0x6cb   : > { %v1503_v51 = vmul.f32 %v1492_v49, %v1469_v28  ;;  %1754 = vmatpush.bf16.msrb.mxu2 %v3396_v40 }
 0x6cc   : > { %v1496_v52 = vmul.f32 0.5, %v1495_v50  ;;  %v3392_v50 = vld [vmem:[%s3855_s19 + $0x8] sm:$0xff] }
 0x6cd   : > { %v1508_v53 = vmul.f32 %v3585_v48, %v1503_v51 }
 0x6ce   : > { %v1497_v54 = vsub.f32 1.5, %v1496_v52 }
 0x6cf   : > { %v4129_v58 = vadd.f32 %v3586_v55, %v1508_v53  ;;  %1755 = vmatpush.bf16.msrb.mxu2 %v3395_v42  ;;  %v3403_v42 = vld [vmem:[%s4484_s12] sm:$0xff] }
 0x6d0   : > { %v1498_v56 = vmul.f32 %v3629_v46, %v1497_v54  ;;  %1873 = vmatpush.bf16.msra.mxu1 %v3403_v42 }
 0x6d1   : > { %v1515_v61 = vmul.f32 %v4053_v10, %v4129_v58 }
 0x6d2   : > { %v1502_v57 = vsel %vm1501_vm14, %v3629_v46, %v1498_v56 }
 0x6d3   : > { %v1504_v59 = vmul.f32 %v1502_v57, %v1470_v32  ;;  %v1528_v0 = vrot.slane %v1515_v61, 1  ;;  %v1521_v3 = vrot.slane %v1515_v61, 7  ;;  %1756 = vmatpush.bf16.msrb.mxu2 %v3394_v45 }
 0x6d5   : > { %v1509_v60 = vmul.f32 %v3585_v48, %v1504_v59  ;;  %v1526_v29 = vsel %vm1520_vm1, 0.0, %v1521_v3 }
 0x6d7   : > { %v4133_v62 = vadd.f32 %v3586_v55, %v1509_v60  ;;  %1757 = vmatpush.bf16.msrb.mxu2 %v3393_v47 }
 0x6d9   : > { %v1516_v63 = vmul.f32 %v4056_v11, %v4133_v62 }
 0x6db   : > { %v3536_v1 = vpack.i.bf16 %v1516_v63, %v1515_v61  ;;  %v1529_v2 = vrot.slane %v1516_v63, 1  ;;  %v1522_v4 = vrot.slane %v1516_v63, 7  ;;  %1758 = vmatpush.bf16.msrb.mxu2 %v3392_v50 }
 0x6dd   : > { %3537 = vrot.lane.b32.xlu1 %v3536_v1, %s4448_s11  ;;  %v1530_v5 = vsel %vm1527_vm15, %v1528_v0, %v1529_v2  ;;  %v1532_v6 = vsel %vm1527_vm15, %v1529_v2, 0.0  ;;  %v1523_v7 = vsel %vm1520_vm1, %v1521_v3, %v1522_v4  ;;  %v3391_v0 = vld [vmem:[%s3855_s19] sm:$0xff]  ;;  %s4492_s11 = sld [smem:[#allocation12_spill]] }
 0x6de   : > { %v3541_v8 = vpack.i.bf16 %v1532_v6, %v1530_v5 }
 0x6df   : > { %1759 = vmatpush.bf16.msrb.mxu2 %v3391_v0 }
 0x6e0   : > { %3542 = vrot.lane.b32.xlu2 %v3541_v8, %s4450_s23  ;;  %v3588_v8 = vld [vmem:[%s3860_s24] ss:$0 sm:$0xff] }
 0x73a   : > { %v3543_v21 = vpop.permute.xlu2 %3542 }
 0x73b   : > { %v3545_v27 = vunpack.i.h.bf16 %v3543_v21  ;;  %v3544_v28 = vunpack.i.l.bf16 %v3543_v21 }
 0x74f   : > { %v3538_v22 = vpop.permute.xlu1 %3537 }
 0x750   : > { %v3540_v23 = vunpack.i.h.bf16 %v3538_v22  ;;  %v3539_v26 = vunpack.i.l.bf16 %v3538_v22 }
 0x752   : > { %v1546_v13 = vsel %vm1177_vm0, %v1526_v29, %v3539_v26  ;;  %v1547_v30 = vsel %vm1177_vm0, %v1523_v7, %v3540_v23 }
 0x753   : > { %v1549_v31 = vsel %vm1548_vm2, %v1546_v13, %v3544_v28  ;;  %v1550_v32 = vsel %vm1548_vm2, %v1547_v30, %v3545_v27 }
 0x754   : > { %v1551_v33 = vpack.c.bf16 %v1550_v32, %v1549_v31 }
 0x756   : > { %3144 = vmatmul.msk.bf16.vlgmr.msra.gmra.mxu3 %vm1603_vm5, %v1551_v33 }
 0x7d9   : > { %v1616_v43 = vpop.f32.mrf.mxu3 }
 0x7da   : > { %v1617_v44 = vadd.f32 %v3587_v41, %v1616_v43 }
 0x7dc   : > { %v1621_v46 = vmax.f32 %v1617_v44, 0.0 }
 0x7de   : > { %v1623_v49 = vmul.f32 %v4053_v10, %v1621_v46 }
 0x7e0   : > { %v1628_v53 = vrot.slane %v1623_v49, 7  ;;  %v1634_v54 = vrot.slane %v1623_v49, 1 }
 0x7e1   : > { %v1618_v20 = vpop.f32.mrf.mxu3 }
 0x7e2   : > { %v1619_v48 = vadd.f32 %v3587_v41, %v1618_v20  ;;  %v1633_v4 = vsel %vm1520_vm1, 0.0, %v1628_v53 }
 0x7e4   : > { %v1622_v51 = vmax.f32 %v1619_v48, 0.0 }
 0x7e6   : > { %v1624_v52 = vmul.f32 %v4056_v11, %v1622_v51 }
 0x7e8   : > { %v1629_v55 = vrot.slane %v1624_v52, 7  ;;  %v1635_v56 = vrot.slane %v1624_v52, 1  ;;  %v3546_v57 = vpack.i.bf16 %v1624_v52, %v1623_v49 }
 0x7ea   : > { %v1636_v59 = vsel %vm1527_vm15, %v1634_v54, %v1635_v56  ;;  %v1639_v60 = vsel %vm1527_vm15, %v1635_v56, 0.0  ;;  %3547 = vrot.lane.b32.xlu1 %v3546_v57, %s4450_s23  ;;  %v1630_v61 = vsel %vm1520_vm1, %v1628_v53, %v1629_v55  ;;  %v3589_v56 = vld [vmem:[%s3865_s30] ss:$0 sm:$0xff]  ;;  %s4493_s23 = sld [smem:[#allocation14_spill]] }
 0x7eb   : > { %v1649_v63 = vpack.c.bf16 %v1639_v60, %v1636_v59 }
 0x7ed   : > { %3193 = vmatmul.msk.bf16.vlgmr.msra.gmra.mxu0 %vm1548_vm2, %v1649_v63 }
 0x85c   : > { %v3548_v1 = vpop.permute.xlu1 %3547 }
 0x85d   : > { %v3550_v2 = vunpack.i.h.bf16 %v3548_v1  ;;  %v3549_v3 = vunpack.i.l.bf16 %v3548_v1 }
 0x85f   : > { %v1646_v5 = vsel %vm1548_vm2, %v1633_v4, %v3549_v3  ;;  %v1647_v6 = vsel %vm1548_vm2, %v1630_v61, %v3550_v2  ;;  %v3590_v61 = vld [vmem:[%s4492_s11] ss:$0 sm:$0xff]  ;;  %s4498_s11 = sld [smem:[#allocation19_spill]] }
 0x860   : > { %v1648_v7 = vpack.c.bf16 %v1647_v6, %v1646_v5 }
 0x862   : > { %1760 = vmatmul.bf16.vlgmr.msrb.gmra.mxu2 %v1648_v7 }
 0x86a   : > { %v1775_v14 = vpop.f32.mrf.mxu0 }
 0x872   : > { %v1777_v26 = vpop.f32.mrf.mxu0 }
 0x8e5   : > { %v1761_v15 = vpop.f32.mrf.mxu2 }
 0x8e6   : > { %v1762_v16 = vadd.f32 %v3588_v8, %v1761_v15 }
 0x8e8   : > { %v1776_v17 = vadd.f32 %v1775_v14, %v1762_v16  ;;  %v3591_v14 = vld [vmem:[%s4493_s23] ss:$0 sm:$0xff]  ;;  %s4494_s23 = smov 48  }
 0x8ea   : > { %v1780_v18 = vmul.f32 %v4053_v10, %v1776_v17 }
 0x8ec   : > { %v1782_v19 = vadd.f32 %v1780_v18, %v4129_v58 }
 0x8ed   : > { %v1763_v21 = vpop.f32.mrf.mxu2 }
 0x8ee   : > { %v1764_v22 = vadd.f32 %v3588_v8, %v1763_v21  ;;  %v1786_v23 = vsel %vm1177_vm0, %v1782_v19, 0.0 }
 0x8ef   : > { %1787 = vadd.xlane.f32.xlu2 %v1786_v23 }
 0x8f0   : > { %v1778_v27 = vadd.f32 %v1777_v26, %v1764_v22 }
 0x8f2   : > { %v1781_v28 = vmul.f32 %v4056_v11, %v1778_v27 }
 0x8f4   : > { %v1783_v29 = vadd.f32 %v1781_v28, %v4133_v62 }
 0x8f6   : > { %v1789_v13 = vsel %vm1177_vm0, %v1783_v29, 0.0 }
 0x8f7   : > { %1790 = vadd.xlane.f32.xlu1 %v1789_v13 }
 0x962   : > { %v1788_v30 = vpop.xlane.xlu2 %1787 }
 0x963   : > { %v1792_v31 = vmul.f32 %v1788_v30, %v4119_v12 }
 0x965   : > { %v1794_v58 = vsub.f32 %v1782_v19, %v1792_v31 }
 0x967   : > { %v1796_v32 = vmul.f32 %v1794_v58, %v1794_v58 }
 0x969   : > { %v1798_v33 = vsel %vm1177_vm0, %v1796_v32, 0.0 }
 0x96a   : > { %v1791_v34 = vpop.xlane.xlu1 %1790  ;;  %1799 = vadd.xlane.f32.xlu0 %v1798_v33 }
 0x96b   : > { %v1793_v35 = vmul.f32 %v1791_v34, %v4119_v12 }
 0x96d   : > { %v1795_v36 = vsub.f32 %v1783_v29, %v1793_v35 }
 0x96f   : > { %v1797_v37 = vmul.f32 %v1795_v36, %v1795_v36 }
 0x971   : > { %v1801_v62 = vsel %vm1177_vm0, %v1797_v37, 0.0 }
 0x972   : > { %1802 = vadd.xlane.f32.xlu0 %v1801_v62 }
 0x9dd   : > { %v1800_v38 = vpop.xlane.xlu0 %1799 }
 0x9de   : > { %v1804_v40 = vmul.f32 %v1800_v38, %v4119_v12 }
 0x9e0   : > { %v1806_v41 = vadd.f32 0.0001, %v1804_v40 }
 0x9e2   : > { %3630 = vrsqrt.f32 %v1806_v41  ;;  %vm1814_vm7 = vweird.f32 %v1806_v41 }
 0x9e5   : > { %v1803_v43 = vpop.xlane.xlu0 %1802 }
 0x9e6   : > { %v1805_v44 = vmul.f32 %v1803_v43, %v4119_v12 }
 0x9e8   : > { %v3631_v45 = vpop.eup %3630  ;;  %v1807_v46 = vadd.f32 0.0001, %v1805_v44 }
 0x9e9   : > { %v1809_v47 = vmul.f32 %v3631_v45, %v1806_v41  ;;  %vm1815_vm6 = vweird.f32 %v3631_v45 }
 0x9ea   : > { %3632 = vrsqrt.f32 %v1807_v46  ;;  %vm1816_vm8 = vmor %vm1814_vm7, %vm1815_vm6  ;;  %vm1824_vm10 = vweird.f32 %v1807_v46 }
 0x9eb   : > { %v1810_v20 = vmul.f32 %v3631_v45, %v1809_v47 }
 0x9ed   : > { %v1811_v48 = vmul.f32 0.5, %v1810_v20 }
 0x9ef   : > { %v1812_v49 = vsub.f32 1.5, %v1811_v48 }
 0x9f0   : > { %v3633_v50 = vpop.eup %3632 }
 0x9f1   : > { %v1813_v51 = vmul.f32 %v3631_v45, %v1812_v49  ;;  %v1819_v52 = vmul.f32 %v3633_v50, %v1807_v46  ;;  %vm1825_vm9 = vweird.f32 %v3633_v50 }
 0x9f2   : > { %vm1826_vm11 = vmor %vm1824_vm10, %vm1825_vm9 }
 0x9f3   : > { %v1817_v53 = vsel %vm1816_vm8, %v3631_v45, %v1813_v51  ;;  %v1820_v54 = vmul.f32 %v3633_v50, %v1819_v52 }
 0x9f4   : > { %v1828_v57 = vmul.f32 %v1817_v53, %v1794_v58 }
 0x9f5   : > { %v1821_v55 = vmul.f32 0.5, %v1820_v54 }
 0x9f6   : > { %v1833_v63 = vmul.f32 %v3589_v56, %v1828_v57 }
 0x9f7   : > { %v1822_v59 = vsub.f32 1.5, %v1821_v55 }
 0x9f8   : > { %v1838_v2 = vadd.f32 %v3590_v61, %v1833_v63 }
 0x9f9   : > { %v1823_v60 = vmul.f32 %v3633_v50, %v1822_v59 }
 0x9fa   : > { %v4195_v5 = vmul.f32 %v4053_v10, %v1838_v2 }
 0x9fb   : > { %v1827_v0 = vsel %vm1826_vm11, %v3633_v50, %v1823_v60 }
 0x9fc   : > { %v1829_v1 = vmul.f32 %v1827_v0, %v1795_v36 }
 0x9fe   : > { %v1834_v3 = vmul.f32 %v3589_v56, %v1829_v1 }
 0xa00   : > { %v1839_v4 = vadd.f32 %v3590_v61, %v1834_v3 }
 0xa02   : > { %v4198_v6 = vmul.f32 %v4056_v11, %v1839_v4 }
 0xa04   : > { %v1842_v7 = vpack.c.bf16 %v4198_v6, %v4195_v5 }
 0xa06   : > { %3202 = vmatmul.msk.bf16.vlgmr.msra.gmra.mxu1 %vm1177_vm0, %v1842_v7 }
 0xa83   : > { %v1875_v8 = vpop.f32.mrf.mxu1 }
 0xa84   : > { %v1876_v16 = vadd.f32 %v3591_v14, %v1875_v8 }
 0xa8b   : > { %v1877_v15 = vpop.f32.mrf.mxu1 }
 0xa8c   : > { %v1878_v17 = vadd.f32 %v3591_v14, %v1877_v15 }
 0xa8e   : > { %v1884_v18 = vpack.c.bf16 %v1878_v17, %v1876_v16 }
 0xa90   : > { %1886 = vrot.lane.b32.xlu2 %v1884_v18, %s3787_s26  ;;  %1984 = vrot.lane.b32.xlu0 %v1884_v18, %s3788_s28  ;;  %s4495_s26 = smov 64   ;;  %s4496_s28 = sld [smem:[#allocation15_spill]] }
 0xa98   : > { %1982 = vrot.lane.b32.xlu0 %v1884_v18, %s3789_s22  ;;  %s4497_s22 = sld [smem:[#allocation16_spill]] }
 0xaea   : > { %v1887_v19 = vpop.permute.xlu2 %1886 }
 0xaeb   : > { %v1892_v21 = vsel %vm1203_vm3, %v1887_v19, 0 }
 0xaec   : > { %1901 = vmatpush.bf16.xpose.msrb.mxu3 %v1892_v21 }
 0xaf3   : > { %3203 = vmatmul.msk.bf16.vlgmr.msrb.gmra.mxu3 %vm1203_vm3, %v1884_v18 }
 0xb02   : > { %v1985_v22 = vpop.permute.xlu0 %1984 }
 0xb03   : > { %v1990_v23 = vsel %vm1203_vm3, %v1985_v22, 0 }
 0xb04   : > { %1999 = vmatpush.bf16.xpose.msrb.mxu1 %v1990_v23 }
 0xb0a   : > { %v1983_v26 = vpop.permute.xlu0 %1982 }
 0xb0b   : > { %3205 = vmatmul.msk.bf16.vlgmr.msrb.gmra.mxu1 %vm1203_vm3, %v1983_v26 }
 0xb76   : > { %v1903_v29 = vpop.f32.mrf.mxu3 }
 0xb77   : > { %v1908_v30 = vsel %vm4080_vm4, %v1903_v29, -10000.0 }
 0xb78   : > { %v1910_v32 = vsel %vm1203_vm3, %v1908_v30, -inf }
 0xb7e   : > { %v1905_v34 = vpop.f32.mrf.mxu3 }
 0xb7f   : > { %v1909_v35 = vsel %vm4080_vm4, %v1905_v34, -10000.0 }
 0xb80   : > { %v1913_v36 = vsel %vm1203_vm3, %v1909_v35, -inf }
 0xb88   : > { %v2001_v27 = vpop.f32.mrf.mxu1 }
 0xb89   : > { %v2006_v28 = vsel %vm4080_vm4, %v2001_v27, -10000.0 }
 0xb8a   : > { %v2008_v13 = vsel %vm1203_vm3, %v2006_v28, -inf }
 0xb8b   : > { %2009 = vmax.xlane.f32.xlu1 %v2008_v13 }
 0xb90   : > { %v2003_v31 = vpop.f32.mrf.mxu1 }
 0xb91   : > { %v2007_v58 = vsel %vm4080_vm4, %v2003_v31, -10000.0 }
 0xb92   : > { %v2011_v33 = vsel %vm1203_vm3, %v2007_v58, -inf }
 0xb93   : > { %1911 = vmax.xlane.f32.xlu1 %v1910_v32  ;;  %2012 = vmax.xlane.f32.xlu0 %v2011_v33 }
 0xb9b   : > { %1914 = vmax.xlane.f32.xlu1 %v1913_v36 }
 0xba7   : > { %2059 = vrot.lane.b32.xlu0 %v1884_v18, %s4494_s23  ;;  %s4499_s23 = sld [smem:[#allocation17_spill]] }
 0xbfe   : > { %v2010_v37 = vpop.xlane.xlu1 %2009 }
 0xbff   : > { %v2014_v62 = vsub.f32 %v2006_v28, %v2010_v37 }
 0xc01   : > { %v2016_v38 = vmul.f32 1.442695, %v2014_v62 }
 0xc03   : > { %3634 = vpow2.f32 %v2016_v38 }
 0xc06   : > { %v1912_v39 = vpop.xlane.xlu1 %1911  ;;  %v2013_v40 = vpop.xlane.xlu0 %2012 }
 0xc07   : > { %v1916_v41 = vsub.f32 %v1908_v30, %v1912_v39  ;;  %v2015_v44 = vsub.f32 %v2007_v58, %v2013_v40 }
 0xc09   : > { %v4224_v42 = vpop.eup %3634  ;;  %v1918_v43 = vmul.f32 1.442695, %v1916_v41  ;;  %v2018_v45 = vmul.f32 1.442695, %v2015_v44 }
 0xc0a   : > { %v2020_v25 = vsel %vm1203_vm3, %v4224_v42, 0.0 }
 0xc0b   : > { %3636 = vpow2.f32 %v1918_v43  ;;  %2021 = vadd.xlane.f32.xlu2 %v2020_v25 }
 0xc0c   : > { %3638 = vpow2.f32 %v2018_v45 }
 0xc0e   : > { %v1915_v46 = vpop.xlane.xlu1 %1914 }
 0xc0f   : > { %v1917_v20 = vsub.f32 %v1909_v35, %v1915_v46 }
 0xc11   : > { %v4228_v47 = vpop.eup %3636  ;;  %v1920_v49 = vmul.f32 1.442695, %v1917_v20 }
 0xc12   : > { %v1922_v48 = vsel %vm1203_vm3, %v4228_v47, 0.0  ;;  %v3639_v50 = vpop.eup %3638 }
 0xc13   : > { %1923 = vadd.xlane.f32.xlu1 %v1922_v48  ;;  %3640 = vpow2.f32 %v1920_v49  ;;  %v2023_v52 = vsel %vm1203_vm3, %v3639_v50, 0.0 }
 0xc19   : > { %v2060_v51 = vpop.permute.xlu0 %2059  ;;  %v4233_v53 = vpop.eup %3640 }
 0xc1a   : > { %2072 = vmatpush.bf16.msra.mxu3 %v2060_v51  ;;  %v1925_v54 = vsel %vm1203_vm3, %v4233_v53, 0.0  ;;  %v3405_v51 = vld [vmem:[%s4496_s28] sm:$0xff] }
 0xc1b   : > { %2024 = vadd.xlane.f32.xlu1 %v2023_v52 }
 0xc23   : > { %1926 = vadd.xlane.f32.xlu1 %v1925_v54 }
 0xc3c   : > { %1961 = vrot.lane.b32.xlu1 %v1884_v18, %s4495_s26 }
 0xc7e   : > { %v2022_v55 = vpop.xlane.xlu2 %2021 }
 0xc7f   : > { %3642 = vrcp.f32 %v2022_v55  ;;  %v2037_v7 = vand.u32 2147483648, %v2022_v55  ;;  %vm2031_vm12 = vweird.f32 %v2022_v55  ;;  %v2035_v8 = vand.u32 2147483647, %v2022_v55 }
 0xc81   : > { %v2038_v21 = vor.u32 1.1754944e-38, %v2037_v7  ;;  %vm2036_vm6 = vcmp.eq.f32.partialorder %v2035_v8, 8.507059e+37 }
 0xc85   : > { %v3643_v57 = vpop.eup %3642 }
 0xc86   : > { %v4238_v56 = vpop.xlane.xlu1 %1923  ;;  %v2027_v59 = vmul.f32 %v3643_v57, %v2022_v55  ;;  %vm2032_vm4 = vweird.f32 %v3643_v57 }
 0xc87   : > { %3644 = vrcp.f32 %v4238_v56  ;;  %vm2033_vm13 = vmor %vm2031_vm12, %vm2032_vm4  ;;  %v1939_v39 = vand.u32 2147483648, %v4238_v56  ;;  %v1937_v40 = vand.u32 2147483647, %v4238_v56 }
 0xc88   : > { %v2028_v60 = vsub.f32 1.0, %v2027_v59  ;;  %v3592_v59 = vld [vmem:[%s4497_s22] ss:$0 sm:$0xff]  ;;  %s4500_s22 = sld [smem:[#allocation18_spill]] }
 0xc89   : > { %v1940_v44 = vor.u32 1.1754944e-38, %v1939_v39 }
 0xc8a   : > { %v2029_v63 = vmul.f32 %v3643_v57, %v2028_v60 }
 0xc8c   : > { %v2030_v2 = vadd.f32 %v3643_v57, %v2029_v63 }
 0xc8d   : > { %v3645_v0 = vpop.eup %3644 }
 0xc8e   : > { %v2025_v61 = vpop.xlane.xlu1 %2024  ;;  %v1929_v14 = vmul.f32 %v3645_v0, %v4238_v56  ;;  %v2034_v17 = vsel %vm2033_vm13, %v3643_v57, %v2030_v2  ;;  %vm1934_vm11 = vweird.f32 %v3645_v0  ;;  %vm1933_vm13 = vweird.f32 %v4238_v56 }
 0xc8f   : > { %3646 = vrcp.f32 %v2025_v61  ;;  %v2052_v16 = vand.u32 2147483648, %v2025_v61  ;;  %v2050_v19 = vand.u32 2147483647, %v2025_v61  ;;  %vm2046_vm7 = vweird.f32 %v2025_v61 }
 0xc90   : > { %v1930_v22 = vsub.f32 1.0, %v1929_v14  ;;  %v2039_v27 = vsel %vm2036_vm6, %v2038_v21, %v2034_v17 }
 0xc91   : > { %v2053_v28 = vor.u32 1.1754944e-38, %v2052_v16  ;;  %vm2051_vm9 = vcmp.eq.f32.partialorder %v2050_v19, 8.507059e+37  ;;  %v2056_v31 = vmul.f32 %v4224_v42, %v2039_v27 }
 0xc92   : > { %v1931_v58 = vmul.f32 %v3645_v0, %v1930_v22 }
 0xc94   : > { %v1932_v37 = vadd.f32 %v3645_v0, %v1931_v58 }
 0xc95   : > { %v3647_v1 = vpop.eup %3646 }
 0xc96   : > { %v2042_v3 = vmul.f32 %v3647_v1, %v2025_v61  ;;  %v1927_v4 = vpop.xlane.xlu1 %1926  ;;  %vm2047_vm14 = vweird.f32 %v3647_v1 }
 0xc97   : > { %3648 = vrcp.f32 %v1927_v4  ;;  %vm2048_vm8 = vmor %vm2046_vm7, %vm2047_vm14  ;;  %v1954_v36 = vand.u32 2147483648, %v1927_v4  ;;  %vm1948_vm4 = vweird.f32 %v1927_v4  ;;  %v1952_v38 = vand.u32 2147483647, %v1927_v4 }
 0xc98   : > { %v2043_v15 = vsub.f32 1.0, %v2042_v3  ;;  %vm1935_vm14 = vmor %vm1933_vm13, %vm1934_vm11  ;;  %vm1938_vm7 = vcmp.eq.f32.partialorder %v1937_v40, 8.507059e+37 }
 0xc99   : > { %v1955_v42 = vor.u32 1.1754944e-38, %v1954_v36  ;;  %v1936_v43 = vsel %vm1935_vm14, %v3645_v0, %v1932_v37  ;;  %vm1953_vm6 = vcmp.eq.f32.partialorder %v1952_v38, 8.507059e+37  ;;  %v3411_v37 = vld [vmem:[%s4498_s11 + $0x20] sm:$0xff] }
 0xc9a   : > { %v2044_v18 = vmul.f32 %v3647_v1, %v2043_v15  ;;  %v1941_v45 = vsel %vm1938_vm7, %v1940_v44, %v1936_v43  ;;  %v3410_v43 = vld [vmem:[%s4498_s11 + $0x18] sm:$0xff] }
 0xc9b   : > { %v1958_v20 = vmul.f32 %v4228_v47, %v1941_v45 }
 0xc9c   : > { %v2045_v23 = vadd.f32 %v3647_v1, %v2044_v18 }
 0xc9d   : > { %v3649_v26 = vpop.eup %3648 }
 0xc9e   : > { %v2049_v29 = vsel %vm2048_vm8, %v3647_v1, %v2045_v23  ;;  %v1944_v13 = vmul.f32 %v3649_v26, %v1927_v4  ;;  %vm1949_vm10 = vweird.f32 %v3649_v26 }
 0xc9f   : > { %v2054_v30 = vsel %vm2051_vm9, %v2053_v28, %v2049_v29  ;;  %vm1950_vm12 = vmor %vm1948_vm4, %vm1949_vm10 }
 0xca0   : > { %v2057_v32 = vmul.f32 %v3639_v50, %v2054_v30  ;;  %v1945_v33 = vsub.f32 1.0, %v1944_v13  ;;  %v3406_v50 = vld [vmem:[%s4496_s28 + $0x8] sm:$0xff] }
 0xca1   : > { %2096 = vmatpush.bf16.msra.mxu2 %v3406_v50 }
 0xca2   : > { %v1946_v34 = vmul.f32 %v3649_v26, %v1945_v33  ;;  %v2058_v35 = vpack.c.bf16 %v2057_v32, %v2056_v31 }
 0xca4   : > { %v1947_v62 = vadd.f32 %v3649_v26, %v1946_v34  ;;  %3206 = vmatmul.msk.bf16.vlgmr.msra.gmra.mxu3 %vm1203_vm3, %v2058_v35  ;;  %v3412_v34 = vld [vmem:[%s4498_s11 + $0x28] sm:$0xff] }
 0xca5   : > { %2280 = vmatpush.bf16.msra.mxu1 %v3412_v34 }
 0xca6   : > { %v1951_v41 = vsel %vm1950_vm12, %v3649_v26, %v1947_v62 }
 0xca7   : > { %v1956_v25 = vsel %vm1953_vm6, %v1955_v42, %v1951_v41  ;;  %v3593_v41 = vld [vmem:[%s4499_s23] ss:$0 sm:$0xff]  ;;  %s4501_s23 = smov 32  }
 0xca8   : > { %v1959_v46 = vmul.f32 %v4233_v53, %v1956_v25 }
 0xca9   : > { %2281 = vmatpush.bf16.msra.mxu1 %v3411_v37 }
 0xcaa   : > { %v1960_v49 = vpack.c.bf16 %v1959_v46, %v1958_v20  ;;  %v3594_v46 = vld [vmem:[%s4500_s22] ss:$0 sm:$0xff]  ;;  %s4502_s22 = sld [smem:[#allocation21_spill]] }
 0xcad   : > { %2282 = vmatpush.bf16.msra.mxu1 %v3410_v43 }
 0xcae   : > { %v1962_v48 = vpop.permute.xlu1 %1961 }
 0xcaf   : > { %1974 = vmatpush.bf16.msrb.mxu0 %v1962_v48 }
 0xcb2   : > { %3204 = vmatmul.msk.bf16.vlgmr.msrb.gmra.mxu0 %vm1203_vm3, %v1960_v49 }
 0xcb3   : > { %2119 = vmatpush.bf16.msra.mxu0 %v3405_v51 }
 0xd27   : > { %v2074_v52 = vpop.f32.mrf.mxu3 }
 0xd2f   : > { %v1976_v54 = vpop.f32.mrf.mxu0  ;;  %v2076_v55 = vpop.f32.mrf.mxu3 }
 0xd30   : > { %v2079_v56 = vpack.c.bf16 %v2076_v55, %v2074_v52 }
 0xd32   : > { %3211 = vmatmul.msk.bf16.vlgmr.msra.gmra.mxu2 %vm1203_vm3, %v2079_v56 }
 0xd37   : > { %v1978_v57 = vpop.f32.mrf.mxu0 }
 0xd38   : > { %v1981_v53 = vpack.c.bf16 %v1978_v57, %v1976_v54 }
 0xd3a   : > { %3216 = vmatmul.msk.bf16.vlgmr.msra.gmra.mxu0 %vm1203_vm3, %v1981_v53 }
 0xdb5   : > { %v2098_v47 = vpop.f32.mrf.mxu2 }
 0xdb7   : > { %v2121_v60 = vpop.f32.mrf.mxu0 }
 0xdb8   : > { %v2122_v61 = vadd.f32 %v2121_v60, %v2098_v47 }
 0xdba   : > { %v2130_v63 = vadd.f32 %v3592_v59, %v2122_v61 }
 0xdbc   : > { %v2132_v0 = vadd.f32 %v2130_v63, %v4195_v5 }
 0xdbd   : > { %v2100_v2 = vpop.f32.mrf.mxu2 }
 0xdbe   : > { %v2136_v1 = vsel %vm1177_vm0, %v2132_v0, 0.0 }
 0xdbf   : > { %v2123_v3 = vpop.f32.mrf.mxu0  ;;  %2137 = vadd.xlane.f32.xlu2 %v2136_v1  ;;  %v3409_v1 = vld [vmem:[%s4498_s11 + $0x10] sm:$0xff] }
 0xdc0   : > { %v2124_v4 = vadd.f32 %v2123_v3, %v2100_v2  ;;  %2283 = vmatpush.bf16.msra.mxu1 %v3409_v1  ;;  %v3408_v2 = vld [vmem:[%s4498_s11 + $0x8] sm:$0xff]  ;;  %v3407_v3 = vld [vmem:[%s4498_s11] sm:$0xff]  ;;  %s4508_s11 = sld [smem:[#allocation24_spill]] }
 0xdc2   : > { %v2131_v7 = vadd.f32 %v3592_v59, %v2124_v4 }
 0xdc4   : > { %v2133_v8 = vadd.f32 %v2131_v7, %v4198_v6  ;;  %2284 = vmatpush.bf16.msra.mxu1 %v3408_v2 }
 0xdc6   : > { %v2139_v14 = vsel %vm1177_vm0, %v2133_v8, 0.0 }
 0xdc7   : > { %2140 = vadd.xlane.f32.xlu0 %v2139_v14 }
 0xdc8   : > { %2285 = vmatpush.bf16.msra.mxu1 %v3407_v3 }
 0xe32   : > { %v2138_v15 = vpop.xlane.xlu2 %2137 }
 0xe33   : > { %v2142_v16 = vmul.f32 %v2138_v15, %v4119_v12 }
 0xe35   : > { %v2144_v17 = vsub.f32 %v2132_v0, %v2142_v16 }
 0xe37   : > { %v2146_v18 = vmul.f32 %v2144_v17, %v2144_v17 }
 0xe39   : > { %v2148_v19 = vsel %vm1177_vm0, %v2146_v18, 0.0 }
 0xe3a   : > { %2149 = vadd.xlane.f32.xlu2 %v2148_v19  ;;  %v2141_v5 = vpop.xlane.xlu0 %2140 }
 0xe3b   : > { %v2143_v21 = vmul.f32 %v2141_v5, %v4119_v12 }
 0xe3d   : > { %v2145_v22 = vsub.f32 %v2133_v8, %v2143_v21 }
 0xe3f   : > { %v2147_v23 = vmul.f32 %v2145_v22, %v2145_v22 }
 0xe41   : > { %v2151_v26 = vsel %vm1177_vm0, %v2147_v23, 0.0  ;;  %v3424_v23 = vld [vmem:[%s4502_s22 + $0x58] sm:$0xff] }
 0xe42   : > { %2152 = vadd.xlane.f32.xlu1 %v2151_v26  ;;  %2441 = vmatpush.bf16.msrb.mxu2 %v3424_v23  ;;  %v3423_v26 = vld [vmem:[%s4502_s22 + $0x50] sm:$0xff] }
 0xe46   : > { %2442 = vmatpush.bf16.msrb.mxu2 %v3423_v26 }
 0xead   : > { %v2150_v6 = vpop.xlane.xlu2 %2149 }
 0xeae   : > { %v2154_v27 = vmul.f32 %v2150_v6, %v4119_v12  ;;  %v3422_v6 = vld [vmem:[%s4502_s22 + $0x48] sm:$0xff] }
 0xeaf   : > { %2443 = vmatpush.bf16.msrb.mxu2 %v3422_v6 }
 0xeb0   : > { %v2156_v28 = vadd.f32 0.0001, %v2154_v27  ;;  %v3421_v27 = vld [vmem:[%s4502_s22 + $0x40] sm:$0xff] }
 0xeb2   : > { %3650 = vrsqrt.f32 %v2156_v28  ;;  %vm2164_vm8 = vweird.f32 %v2156_v28 }
 0xeb3   : > { %2444 = vmatpush.bf16.msrb.mxu2 %v3421_v27 }
 0xeb5   : > { %v2153_v29 = vpop.xlane.xlu1 %2152 }
 0xeb6   : > { %v2155_v13 = vmul.f32 %v2153_v29, %v4119_v12  ;;  %v3419_v29 = vld [vmem:[%s4502_s22 + $0x30] sm:$0xff] }
 0xeb8   : > { %v3651_v30 = vpop.eup %3650  ;;  %v2157_v31 = vadd.f32 0.0001, %v2155_v13  ;;  %v3418_v13 = vld [vmem:[%s4502_s22 + $0x28] sm:$0xff] }
 0xeb9   : > { %v2159_v58 = vmul.f32 %v3651_v30, %v2156_v28  ;;  %vm2165_vm3 = vweird.f32 %v3651_v30  ;;  %v3420_v28 = vld [vmem:[%s4502_s22 + $0x38] sm:$0xff] }
 0xeba   : > { %3652 = vrsqrt.f32 %v2157_v31  ;;  %vm2166_vm9 = vmor %vm2164_vm8, %vm2165_vm3  ;;  %vm2174_vm11 = vweird.f32 %v2157_v31  ;;  %2423 = vmatpush.bf16.msrb.mxu3 %v3420_v28 }
 0xebb   : > { %v2160_v32 = vmul.f32 %v3651_v30, %v2159_v58 }
 0xebd   : > { %v2161_v33 = vmul.f32 0.5, %v2160_v32 }
 0xebe   : > { %2424 = vmatpush.bf16.msrb.mxu3 %v3419_v29 }
 0xebf   : > { %v2162_v35 = vsub.f32 1.5, %v2161_v33  ;;  %v3416_v33 = vld [vmem:[%s4502_s22 + $0x18] sm:$0xff] }
 0xec0   : > { %v3653_v36 = vpop.eup %3652 }
 0xec1   : > { %v2163_v62 = vmul.f32 %v3651_v30, %v2162_v35  ;;  %v2169_v38 = vmul.f32 %v3653_v36, %v2157_v31  ;;  %vm2175_vm10 = vweird.f32 %v3653_v36  ;;  %v3417_v31 = vld [vmem:[%s4502_s22 + $0x20] sm:$0xff]  ;;  %v3415_v35 = vld [vmem:[%s4502_s22 + $0x10] sm:$0xff] }
 0xec2   : > { %vm2176_vm4 = vmor %vm2174_vm11, %vm2175_vm10  ;;  %2425 = vmatpush.bf16.msrb.mxu3 %v3418_v13 }
 0xec3   : > { %v2167_v39 = vsel %vm2166_vm9, %v3651_v30, %v2163_v62  ;;  %v2170_v40 = vmul.f32 %v3653_v36, %v2169_v38  ;;  %v3595_v30 = vld [vmem:[%s4503_s3] ss:$0 sm:$0xff]  ;;  %v3414_v38 = vld [vmem:[%s4502_s22 + $0x8] sm:$0xff]  ;;  %s4504_s3 = sld [smem:[#allocation22_spill]] }
 0xec4   : > { %v2178_v42 = vmul.f32 %v2167_v39, %v2144_v17 }
 0xec5   : > { %v2171_v44 = vmul.f32 0.5, %v2170_v40 }
 0xec6   : > { %v2183_v45 = vmul.f32 %v3593_v41, %v2178_v42  ;;  %2426 = vmatpush.bf16.msrb.mxu3 %v3417_v31 }
 0xec7   : > { %v2172_v25 = vsub.f32 1.5, %v2171_v44 }
 0xec8   : > { %v4270_v50 = vadd.f32 %v3594_v46, %v2183_v45 }
 0xec9   : > { %v2173_v20 = vmul.f32 %v3653_v36, %v2172_v25 }
 0xeca   : > { %v2190_v54 = vmul.f32 %v4053_v10, %v4270_v50  ;;  %2427 = vmatpush.bf16.msrb.mxu3 %v3416_v33 }
 0xecb   : > { %v2177_v48 = vsel %vm2176_vm4, %v3653_v36, %v2173_v20 }
 0xecc   : > { %v2179_v49 = vmul.f32 %v2177_v48, %v2145_v22  ;;  %v2195_v57 = vrot.slane %v2190_v54, 7  ;;  %v2201_v60 = vrot.slane %v2190_v54, 1 }
 0xece   : > { %v2184_v51 = vmul.f32 %v3593_v41, %v2179_v49  ;;  %v2200_v15 = vsel %vm1520_vm1, 0.0, %v2195_v57  ;;  %2428 = vmatpush.bf16.msrb.mxu3 %v3415_v35  ;;  %v3413_v49 = vld [vmem:[%s4502_s22] sm:$0xff]  ;;  %v3432_v35 = vld [vmem:[%s4506_s8 + $0x28] sm:$0xff] }
 0xecf   : > { %2639 = vmatpush.bf16.msrb.mxu1 %v3432_v35 }
 0xed0   : > { %v4272_v52 = vadd.f32 %v3594_v46, %v2184_v51 }
 0xed2   : > { %v2191_v55 = vmul.f32 %v4056_v11, %v4272_v52  ;;  %2429 = vmatpush.bf16.msrb.mxu3 %v3414_v38 }
 0xed4   : > { %v3551_v56 = vpack.i.bf16 %v2191_v55, %v2190_v54  ;;  %v2196_v53 = vrot.slane %v2191_v55, 7  ;;  %v2202_v47 = vrot.slane %v2191_v55, 1 }
 0xed6   : > { %3552 = vrot.lane.b32.xlu2 %v3551_v56, %s4501_s23  ;;  %v2197_v59 = vsel %vm1520_vm1, %v2195_v57, %v2196_v53  ;;  %v2203_v61 = vsel %vm1527_vm15, %v2201_v60, %v2202_v47  ;;  %v2205_v63 = vsel %vm1527_vm15, %v2202_v47, 0.0  ;;  %2430 = vmatpush.bf16.msrb.mxu3 %v3413_v49 }
 0xed7   : > { %v3556_v0 = vpack.i.bf16 %v2205_v63, %v2203_v61 }
 0xede   : > { %3557 = vrot.lane.b32.xlu2 %v3556_v0, %s4495_s26 }
 0xf30   : > { %v3553_v4 = vpop.permute.xlu2 %3552 }
 0xf31   : > { %v3555_v7 = vunpack.i.h.bf16 %v3553_v4  ;;  %v3554_v8 = vunpack.i.l.bf16 %v3553_v4 }
 0xf33   : > { %v2219_v18 = vsel %vm1177_vm0, %v2200_v15, %v3554_v8  ;;  %v2220_v19 = vsel %vm1177_vm0, %v2197_v59, %v3555_v7  ;;  %v3596_v59 = vld [vmem:[%s4504_s3] ss:$0 sm:$0xff]  ;;  %s4505_s3 = sld [smem:[#allocation25_spill]] }
 0xf38   : > { %v3558_v14 = vpop.permute.xlu2 %3557 }
 0xf39   : > { %v3560_v16 = vunpack.i.h.bf16 %v3558_v14  ;;  %v3559_v17 = vunpack.i.l.bf16 %v3558_v14  ;;  %v3426_v29 = vld [vmem:[%s4505_s3 + $0x8] sm:$0xff] }
 0xf3a   : > { %2543 = vmatpush.bf16.msrb.mxu0 %v3426_v29 }
 0xf3b   : > { %v2221_v5 = vsel %vm1548_vm2, %v2219_v18, %v3559_v17  ;;  %v2222_v21 = vsel %vm1548_vm2, %v2220_v19, %v3560_v16 }
 0xf3c   : > { %v2223_v22 = vpack.c.bf16 %v2222_v21, %v2221_v5 }
 0xf3e   : > { %3241 = vmatmul.msk.bf16.vlgmr.msra.gmra.mxu1 %vm1603_vm5, %v2223_v22 }
 0xfbb   : > { %v2287_v58 = vpop.f32.mrf.mxu1 }
 0xfbc   : > { %v2288_v32 = vadd.f32 %v3595_v30, %v2287_v58 }
 0xfbe   : > { %v2292_v34 = vmax.f32 %v2288_v32, 0.0 }
 0xfc0   : > { %v2294_v62 = vmul.f32 %v4053_v10, %v2292_v34 }
 0xfc2   : > { %v2299_v41 = vrot.slane %v2294_v62, 7  ;;  %v2305_v42 = vrot.slane %v2294_v62, 1 }
 0xfc3   : > { %v2289_v36 = vpop.f32.mrf.mxu1 }
 0xfc4   : > { %v2290_v37 = vadd.f32 %v3595_v30, %v2289_v36  ;;  %v2304_v56 = vsel %vm1520_vm1, 0.0, %v2299_v41  ;;  %v3425_v30 = vld [vmem:[%s4505_s3] sm:$0xff] }
 0xfc5   : > { %2544 = vmatpush.bf16.msrb.mxu0 %v3425_v30 }
 0xfc6   : > { %v2293_v39 = vmax.f32 %v2290_v37, 0.0  ;;  %v3431_v37 = vld [vmem:[%s4506_s8 + $0x20] sm:$0xff] }
 0xfc7   : > { %2640 = vmatpush.bf16.msrb.mxu1 %v3431_v37 }
 0xfc8   : > { %v2295_v40 = vmul.f32 %v4056_v11, %v2293_v39  ;;  %v3430_v39 = vld [vmem:[%s4506_s8 + $0x18] sm:$0xff] }
 0xfca   : > { %v2300_v43 = vrot.slane %v2295_v40, 7  ;;  %v2306_v44 = vrot.slane %v2295_v40, 1  ;;  %v3561_v25 = vpack.i.bf16 %v2295_v40, %v2294_v62 }
 0xfcb   : > { %2641 = vmatpush.bf16.msrb.mxu1 %v3430_v39 }
 0xfcc   : > { %v2307_v45 = vsel %vm1527_vm15, %v2305_v42, %v2306_v44  ;;  %v2310_v46 = vsel %vm1527_vm15, %v2306_v44, 0.0  ;;  %3562 = vrot.lane.b32.xlu2 %v3561_v25, %s4495_s26  ;;  %v2301_v20 = vsel %vm1520_vm1, %v2299_v41, %v2300_v43  ;;  %v3597_v42 = vld [vmem:[%s4507_s9] ss:$0 sm:$0xff]  ;;  %v3429_v25 = vld [vmem:[%s4506_s8 + $0x10] sm:$0xff]  ;;  %s4509_s9 = sld [smem:[#allocation28_spill]] }
 0xfcd   : > { %v2320_v48 = vpack.c.bf16 %v2310_v46, %v2307_v45 }
 0xfcf   : > { %3290 = vmatmul.msk.bf16.vlgmr.msrb.gmra.mxu2 %vm1548_vm2, %v2320_v48  ;;  %2642 = vmatpush.bf16.msrb.mxu1 %v3429_v25 }
0x1026   : > { %v3563_v51 = vpop.permute.xlu2 %3562 }
0x1027   : > { %v3565_v54 = vunpack.i.h.bf16 %v3563_v51  ;;  %v3564_v55 = vunpack.i.l.bf16 %v3563_v51 }
0x1029   : > { %v2317_v57 = vsel %vm1548_vm2, %v2304_v56, %v3564_v55  ;;  %v2318_v53 = vsel %vm1548_vm2, %v2301_v20, %v3565_v54  ;;  %v3598_v20 = vld [vmem:[%s4508_s11] ss:$0 sm:$0xff]  ;;  %s4510_s11 = sld [smem:[#allocation31_spill]] }
0x102a   : > { %v2319_v47 = vpack.c.bf16 %v2318_v53, %v2317_v57 }
0x102c   : > { %2431 = vmatmul.bf16.vlgmr.msrb.gmra.mxu3 %v2319_v47 }
0x1052   : > { %v2446_v60 = vpop.f32.mrf.mxu2 }
0x105a   : > { %v2448_v8 = vpop.f32.mrf.mxu2 }
0x10af   : > { %v2432_v61 = vpop.f32.mrf.mxu3 }
0x10b0   : > { %v2433_v63 = vadd.f32 %v3596_v59, %v2432_v61 }
0x10b2   : > { %v2447_v0 = vadd.f32 %v2446_v60, %v2433_v63 }
0x10b4   : > { %v2451_v1 = vmul.f32 %v4053_v10, %v2447_v0 }
0x10b6   : > { %v2453_v2 = vadd.f32 %v2451_v1, %v4270_v50 }
0x10b7   : > { %v2434_v3 = vpop.f32.mrf.mxu3 }
0x10b8   : > { %v2435_v4 = vadd.f32 %v3596_v59, %v2434_v3  ;;  %v2457_v7 = vsel %vm1177_vm0, %v2453_v2, 0.0 }
0x10b9   : > { %2458 = vadd.xlane.f32.xlu0 %v2457_v7 }
0x10ba   : > { %v2449_v14 = vadd.f32 %v2448_v8, %v2435_v4 }
0x10bc   : > { %v2452_v15 = vmul.f32 %v4056_v11, %v2449_v14  ;;  %v3428_v14 = vld [vmem:[%s4506_s8 + $0x8] sm:$0xff] }
0x10bd   : > { %2643 = vmatpush.bf16.msrb.mxu1 %v3428_v14 }
0x10be   : > { %v2454_v16 = vadd.f32 %v2452_v15, %v4272_v52  ;;  %v3427_v15 = vld [vmem:[%s4506_s8] sm:$0xff] }
0x10c0   : > { %v2460_v17 = vsel %vm1177_vm0, %v2454_v16, 0.0 }
0x10c1   : > { %2461 = vadd.xlane.f32.xlu1 %v2460_v17  ;;  %2644 = vmatpush.bf16.msrb.mxu1 %v3427_v15 }
0x112c   : > { %v2459_v18 = vpop.xlane.xlu0 %2458 }
0x112d   : > { %v2463_v19 = vmul.f32 %v2459_v18, %v4119_v12 }
0x112f   : > { %v2465_v50 = vsub.f32 %v2453_v2, %v2463_v19 }
0x1131   : > { %v2467_v5 = vmul.f32 %v2465_v50, %v2465_v50 }
0x1133   : > { %v2469_v21 = vsel %vm1177_vm0, %v2467_v5, 0.0 }
0x1134   : > { %v2462_v22 = vpop.xlane.xlu1 %2461  ;;  %2470 = vadd.xlane.f32.xlu2 %v2469_v21 }
0x1135   : > { %v2464_v23 = vmul.f32 %v2462_v22, %v4119_v12 }
0x1137   : > { %v2466_v26 = vsub.f32 %v2454_v16, %v2464_v23 }
0x1139   : > { %v2468_v6 = vmul.f32 %v2466_v26, %v2466_v26 }
0x113b   : > { %v2472_v52 = vsel %vm1177_vm0, %v2468_v6, 0.0 }
0x113c   : > { %2473 = vadd.xlane.f32.xlu0 %v2472_v52 }
0x11a7   : > { %v2471_v27 = vpop.xlane.xlu2 %2470 }
0x11a8   : > { %v2475_v28 = vmul.f32 %v2471_v27, %v4119_v12  ;;  %v3600_v27 = vld [vmem:[%s4509_s9] ss:$0 sm:$0xff]  ;;  %s4512_s9 = sld [smem:[#allocation30_spill]] }
0x11aa   : > { %v2477_v13 = vadd.f32 0.0001, %v2475_v28 }
0x11ac   : > { %3654 = vrsqrt.f32 %v2477_v13  ;;  %vm2485_vm13 = vweird.f32 %v2477_v13 }
0x11af   : > { %v2474_v31 = vpop.xlane.xlu0 %2473 }
0x11b0   : > { %v2476_v58 = vmul.f32 %v2474_v31, %v4119_v12 }
0x11b2   : > { %v3655_v32 = vpop.eup %3654  ;;  %v2478_v33 = vadd.f32 0.0001, %v2476_v58 }
0x11b3   : > { %v2480_v34 = vmul.f32 %v3655_v32, %v2477_v13  ;;  %vm2486_vm12 = vweird.f32 %v3655_v32 }
0x11b4   : > { %3656 = vrsqrt.f32 %v2478_v33  ;;  %vm2487_vm14 = vmor %vm2485_vm13, %vm2486_vm12  ;;  %vm2495_vm7 = vweird.f32 %v2478_v33 }
0x11b5   : > { %v2481_v36 = vmul.f32 %v3655_v32, %v2480_v34  ;;  %v3793_v34 = vmov 64.0  }
0x11b6   : > { %3658 = vrcp.f32 %v3793_v34 }
0x11b7   : > { %v2482_v62 = vmul.f32 0.5, %v2481_v36 }
0x11b9   : > { %v2483_v38 = vsub.f32 1.5, %v2482_v62 }
0x11ba   : > { %v3657_v40 = vpop.eup %3656 }
0x11bb   : > { %v2484_v41 = vmul.f32 %v3655_v32, %v2483_v38  ;;  %v2490_v12 = vmul.f32 %v3657_v40, %v2478_v33  ;;  %vm2496_vm6 = vweird.f32 %v3657_v40 }
0x11bc   : > { %vm2497_vm3 = vmor %vm2495_vm7, %vm2496_vm6  ;;  %v3659_v35 = vpop.eup %3658  ;;  %vm2951_vm7 = vcmp.eq.s32.totalorder %v4077_v24, 8 }
0x11bd   : > { %v2488_v43 = vsel %vm2487_vm14, %v3655_v32, %v2484_v41  ;;  %v2491_v44 = vmul.f32 %v3657_v40, %v2490_v12  ;;  %v2662_v36 = vmul.f32 64.0, %v3659_v35 }
0x11be   : > { %v2499_v45 = vmul.f32 %v2488_v43, %v2465_v50 }
0x11bf   : > { %v2492_v46 = vmul.f32 0.5, %v2491_v44  ;;  %v2663_v37 = vsub.f32 1.0, %v2662_v36 }
0x11c0   : > { %v2504_v48 = vmul.f32 %v3597_v42, %v2499_v45 }
0x11c1   : > { %v2493_v49 = vsub.f32 1.5, %v2492_v46  ;;  %v2664_v62 = vmul.f32 %v3659_v35, %v2663_v37 }
0x11c2   : > { %v2509_v54 = vadd.f32 %v3598_v20, %v2504_v48  ;;  %v3444_v48 = vld [vmem:[%s4510_s11 + $0x58] sm:$0xff] }
0x11c3   : > { %v2494_v51 = vmul.f32 %v3657_v40, %v2493_v49  ;;  %v2665_v38 = vadd.f32 %v3659_v35, %v2664_v62  ;;  %2863 = vmatpush.bf16.msra.mxu0 %v3444_v48 }
0x11c4   : > { %v2511_v53 = vmul.f32 %v4053_v10, %v2509_v54 }
0x11c5   : > { %v2498_v55 = vsel %vm2497_vm3, %v3657_v40, %v2494_v51  ;;  %v3443_v51 = vld [vmem:[%s4510_s11 + $0x50] sm:$0xff] }
0x11c6   : > { %v2500_v56 = vmul.f32 %v2498_v55, %v2466_v26  ;;  %v2560_v60 = vrot.slane %v2511_v53, 1  ;;  %v2554_v61 = vrot.slane %v2511_v53, 7  ;;  %v3442_v55 = vld [vmem:[%s4510_s11 + $0x48] sm:$0xff] }
0x11c7   : > { %2864 = vmatpush.bf16.msra.mxu0 %v3443_v51 }
0x11c8   : > { %v2505_v57 = vmul.f32 %v3597_v42, %v2500_v56  ;;  %v2559_v50 = vsel %vm1520_vm1, 0.0, %v2554_v61 }
0x11ca   : > { %v2510_v47 = vadd.f32 %v3598_v20, %v2505_v57  ;;  %v3441_v57 = vld [vmem:[%s4510_s11 + $0x40] sm:$0xff] }
0x11cb   : > { %2865 = vmatpush.bf16.msra.mxu0 %v3442_v55 }
0x11cc   : > { %v2512_v59 = vmul.f32 %v4056_v11, %v2510_v47 }
0x11ce   : > { %v3566_v63 = vpack.i.bf16 %v2512_v59, %v2511_v53  ;;  %v2513_v0 = vpack.c.bf16 %v2512_v59, %v2511_v53  ;;  %v2561_v1 = vrot.slane %v2512_v59, 1  ;;  %v2555_v2 = vrot.slane %v2512_v59, 7 }
0x11cf   : > { %2866 = vmatpush.bf16.msra.mxu0 %v3441_v57 }
0x11d0   : > { %3567 = vrot.lane.b32.xlu1 %v3566_v63, %s4501_s23  ;;  %3299 = vmatmul.msk.bf16.vlgmr.msrb.gmra.mxu0 %vm1177_vm0, %v2513_v0  ;;  %v2562_v3 = vsel %vm1527_vm15, %v2560_v60, %v2561_v1  ;;  %v2564_v4 = vsel %vm1527_vm15, %v2561_v1, 0.0  ;;  %v2556_v7 = vsel %vm1520_vm1, %v2554_v61, %v2555_v2  ;;  %s4511_s23 = sld [smem:[#allocation29_spill]]  ;;  %v3440_v63 = vld [vmem:[%s4510_s11 + $0x38] sm:$0xff]  ;;  %v3439_v1 = vld [vmem:[%s4510_s11 + $0x30] sm:$0xff] }
0x11d1   : > { %v3571_v8 = vpack.i.bf16 %v2564_v4, %v2562_v3  ;;  %2845 = vmatpush.bf16.msra.mxu2 %v3440_v63  ;;  %v3438_v4 = vld [vmem:[%s4510_s11 + $0x28] sm:$0xff] }
0x11d3   : > { %3572 = vrot.lane.b32.xlu0 %v3571_v8, %s4495_s26 }
0x11d5   : > { %2846 = vmatpush.bf16.msra.mxu2 %v3439_v1 }
0x11d6   : > { %v3601_v15 = vld [vmem:[%s4511_s23] ss:$0 sm:$0xff]  ;;  %s4513_s23 = sld [smem:[#allocation32_spill]] }
0x11d9   : > { %2847 = vmatpush.bf16.msra.mxu2 %v3438_v4 }
0x1242   : > { %v3568_v16 = vpop.permute.xlu1 %3567 }
0x1243   : > { %v3570_v17 = vunpack.i.h.bf16 %v3568_v16  ;;  %v3569_v18 = vunpack.i.l.bf16 %v3568_v16 }
0x1245   : > { %v3573_v19 = vpop.permute.xlu0 %3572  ;;  %v2578_v22 = vsel %vm1177_vm0, %v2559_v50, %v3569_v18  ;;  %v2579_v23 = vsel %vm1177_vm0, %v2556_v7, %v3570_v17  ;;  %vm2666_vm0 = vweird.f32 %v3659_v35  ;;  %v3437_v18 = vld [vmem:[%s4510_s11 + $0x20] sm:$0xff] }
0x1246   : > { %v3575_v5 = vunpack.i.h.bf16 %v3573_v19  ;;  %v3574_v21 = vunpack.i.l.bf16 %v3573_v19  ;;  %v4355_v39 = vsel %vm2666_vm0, %v3659_v35, %v2665_v38  ;;  %2848 = vmatpush.bf16.msra.mxu2 %v3437_v18 }
0x1248   : > { %v2580_v26 = vsel %vm1548_vm2, %v2578_v22, %v3574_v21  ;;  %v2581_v6 = vsel %vm1548_vm2, %v2579_v23, %v3575_v5  ;;  %v3602_v22 = vld [vmem:[%s4512_s9] ss:$0 sm:$0xff]  ;;  %v3436_v23 = vld [vmem:[%s4510_s11 + $0x18] sm:$0xff]  ;;  %s1129_s9 = sand.u32 1, %s3736_s5  }
0x1249   : > { %v2582_v52 = vpack.c.bf16 %v2581_v6, %v2580_v26 }
0x124a   : > { %2849 = vmatpush.bf16.msra.mxu2 %v3436_v23 }
0x124b   : > { %3324 = vmatmul.msk.bf16.vlgmr.msrb.gmra.mxu1 %vm1603_vm5, %v2582_v52 }
0x12c8   : > { %v2646_v28 = vpop.f32.mrf.mxu1 }
0x12c9   : > { %v2647_v29 = vadd.f32 %v3600_v27, %v2646_v28 }
0x12cb   : > { %v2651_v13 = vmax.f32 %v2647_v29, 0.0 }
0x12cd   : > { %v2655_v30 = vsel %vm1548_vm2, %v2651_v13, 0.0 }
0x12ce   : > { %2656 = vadd.xlane.f32.xlu0 %v2655_v30  ;;  %v3434_v30 = vld [vmem:[%s4510_s11 + $0x8] sm:$0xff] }
0x12d0   : > { %v2648_v31 = vpop.f32.mrf.mxu1 }
0x12d1   : > { %v2649_v58 = vadd.f32 %v3600_v27, %v2648_v31  ;;  %v3435_v27 = vld [vmem:[%s4510_s11 + $0x10] sm:$0xff] }
0x12d2   : > { %2850 = vmatpush.bf16.msra.mxu2 %v3435_v27 }
0x12d3   : > { %v2652_v32 = vmax.f32 %v2649_v58, 0.0 }
0x12d5   : > { %v2658_v33 = vsel %vm1548_vm2, %v2652_v32, 0.0 }
0x12d6   : > { %2659 = vadd.xlane.f32.xlu1 %v2658_v33  ;;  %2851 = vmatpush.bf16.msra.mxu2 %v3434_v30  ;;  %v3604_v30 = vld [vmem:[%s3975_s20] ss:$0 sm:$0xff] }
0x1341   : > { %v2657_v40 = vpop.xlane.xlu0 %2656 }
0x1342   : > { %v2668_v41 = vmul.f32 %v4355_v39, %v2657_v40 }
0x1344   : > { %v2670_v12 = vsub.f32 %v2651_v13, %v2668_v41  ;;  %v3433_v41 = vld [vmem:[%s4510_s11] sm:$0xff] }
0x1345   : > { %2852 = vmatpush.bf16.msra.mxu2 %v3433_v41 }
0x1346   : > { %v2672_v42 = vmul.f32 %v2670_v12, %v2670_v12 }
0x1348   : > { %v2674_v43 = vsel %vm1548_vm2, %v2672_v42, 0.0 }
0x1349   : > { %v2660_v44 = vpop.xlane.xlu1 %2659  ;;  %2675 = vadd.xlane.f32.xlu2 %v2674_v43 }
0x134a   : > { %v2669_v25 = vmul.f32 %v4355_v39, %v2660_v44 }
0x134c   : > { %v2671_v45 = vsub.f32 %v2652_v32, %v2669_v25 }
0x134e   : > { %v2673_v46 = vmul.f32 %v2671_v45, %v2671_v45 }
0x1350   : > { %v2677_v20 = vsel %vm1548_vm2, %v2673_v46, 0.0 }
0x1351   : > { %2678 = vadd.xlane.f32.xlu2 %v2677_v20  ;;  %v4387_v20 = vpop.f32.mrf.mxu0 }
0x1359   : > { %v4389_v48 = vpop.f32.mrf.mxu0 }
0x13bc   : > { %v2676_v49 = vpop.xlane.xlu2 %2675 }
0x13bd   : > { %v2680_v54 = vmul.f32 %v2676_v49, %v4355_v39  ;;  %v3603_v49 = vld [vmem:[%s4513_s23] ss:$0 sm:$0xff]  ;;  %s3092_s23 = sshll.u32 %s1129_s9, 4 }
0x13be   : > { %s1131_s3 = scalar_lea.vmem [#allocation5], %s3092_s23 }
0x13bf   : > { %v2682_v56 = vadd.f32 0.0001, %v2680_v54 }
0x13c1   : > { %3660 = vrsqrt.f32 %v2682_v56  ;;  %vm2690_vm8 = vweird.f32 %v2682_v56 }
0x13c4   : > { %v2679_v53 = vpop.xlane.xlu2 %2678 }
0x13c5   : > { %v2681_v47 = vmul.f32 %v2679_v53, %v4355_v39 }
0x13c7   : > { %v3661_v59 = vpop.eup %3660  ;;  %v2683_v60 = vadd.f32 0.0001, %v2681_v47 }
0x13c8   : > { %v2685_v61 = vmul.f32 %v3661_v59, %v2682_v56  ;;  %vm2691_vm5 = vweird.f32 %v3661_v59 }
0x13c9   : > { %3662 = vrsqrt.f32 %v2683_v60  ;;  %vm2692_vm9 = vmor %vm2690_vm8, %vm2691_vm5  ;;  %vm2700_vm11 = vweird.f32 %v2683_v60 }
0x13ca   : > { %v2686_v0 = vmul.f32 %v3661_v59, %v2685_v61 }
0x13cc   : > { %v2687_v2 = vmul.f32 0.5, %v2686_v0 }
0x13ce   : > { %v2688_v3 = vsub.f32 1.5, %v2687_v2 }
0x13cf   : > { %v3663_v7 = vpop.eup %3662 }
0x13d0   : > { %v2689_v8 = vmul.f32 %v3661_v59, %v2688_v3  ;;  %v2695_v14 = vmul.f32 %v3663_v7, %v2683_v60  ;;  %vm2701_vm10 = vweird.f32 %v3663_v7 }
0x13d1   : > { %vm2702_vm4 = vmor %vm2700_vm11, %vm2701_vm10 }
0x13d2   : > { %v2693_v16 = vsel %vm2692_vm9, %v3661_v59, %v2689_v8  ;;  %v2696_v17 = vmul.f32 %v3663_v7, %v2695_v14 }
0x13d3   : > { %v2704_v19 = vmul.f32 %v2693_v16, %v2670_v12 }
0x13d4   : > { %v2697_v50 = vmul.f32 0.5, %v2696_v17 }
0x13d5   : > { %v2709_v5 = vmul.f32 %v3601_v15, %v2704_v19 }
0x13d6   : > { %v2698_v21 = vsub.f32 1.5, %v2697_v50 }
0x13d7   : > { %v2714_v52 = vadd.f32 %v3602_v22, %v2709_v5 }
0x13d8   : > { %v2699_v26 = vmul.f32 %v3663_v7, %v2698_v21 }
0x13d9   : > { %v2716_v13 = vmul.f32 %v4053_v10, %v2714_v52 }
0x13da   : > { %v2703_v6 = vsel %vm2702_vm4, %v3663_v7, %v2699_v26 }
0x13db   : > { %v2705_v28 = vmul.f32 %v2703_v6, %v2671_v45  ;;  %v2727_v32 = vrot.slane %v2716_v13, 1  ;;  %v2721_v35 = vrot.slane %v2716_v13, 7 }
0x13dd   : > { %v2710_v29 = vmul.f32 %v3601_v15, %v2705_v28  ;;  %v2726_v44 = vsel %vm1520_vm1, 0.0, %v2721_v35 }
0x13df   : > { %v2715_v31 = vadd.f32 %v3602_v22, %v2710_v29 }
0x13e1   : > { %v2717_v58 = vmul.f32 %v4056_v11, %v2715_v31 }
0x13e3   : > { %v3576_v33 = vpack.i.bf16 %v2717_v58, %v2716_v13  ;;  %v2728_v34 = vrot.slane %v2717_v58, 1  ;;  %v2722_v36 = vrot.slane %v2717_v58, 7 }
0x13e5   : > { %3577 = vrot.lane.b32.xlu2 %v3576_v33, %s4495_s26  ;;  %v2729_v37 = vsel %vm1527_vm15, %v2727_v32, %v2728_v34  ;;  %v2732_v62 = vsel %vm1527_vm15, %v2728_v34, 0.0  ;;  %v2723_v38 = vsel %vm1520_vm1, %v2721_v35, %v2722_v36  ;;  %s4516_s26 = sld [smem:[#allocation26_spill]] }
0x13e6   : > { %v2742_v40 = vpack.c.bf16 %v2732_v62, %v2729_v37  ;;  %v3606_v37 = vld [vmem:[%s4515_s4] ss:$0 sm:$0xff] }
0x13e8   : > { %3373 = vmatmul.msk.bf16.vlgmr.msra.gmra.mxu0 %vm1548_vm2, %v2742_v40 }
0x143f   : > { %v3578_v12 = vpop.permute.xlu2 %3577 }
0x1440   : > { %v3580_v42 = vunpack.i.h.bf16 %v3578_v12  ;;  %v3579_v43 = vunpack.i.l.bf16 %v3578_v12 }
0x1442   : > { %v2739_v25 = vsel %vm1548_vm2, %v2726_v44, %v3579_v43  ;;  %v2740_v45 = vsel %vm1548_vm2, %v2723_v38, %v3580_v42 }
0x1443   : > { %v2741_v46 = vpack.c.bf16 %v2740_v45, %v2739_v25 }
0x1445   : > { %2853 = vmatmul.bf16.vlgmr.msra.gmra.mxu2 %v2741_v46 }
0x1465   : > { %v2868_v51 = vpop.f32.mrf.mxu0 }
0x146d   : > { %v2870_v60 = vpop.f32.mrf.mxu0 }
0x14c8   : > { %v2854_v54 = vpop.f32.mrf.mxu2 }
0x14c9   : > { %v2855_v55 = vadd.f32 %v3603_v49, %v2854_v54 }
0x14cb   : > { %v2869_v56 = vadd.f32 %v2868_v51, %v2855_v55  ;;  %v3607_v51 = vld [vmem:[#allocation4] ss:$0 sm:$0xff] }
0x14cd   : > { %v2873_v57 = vmax.f32 %v2869_v56, 0.0 }
0x14cf   : > { %v2877_v53 = vsel %vm1548_vm2, %v2873_v57, 0.0 }
0x14d0   : > { %v2856_v47 = vpop.f32.mrf.mxu2  ;;  %2878 = vadd.xlane.f32.xlu0 %v2877_v53  ;;  %v3599_v53 = vld [vmem:[%s4516_s26] ss:$0 sm:$0xff]  ;;  %s2985_s26 = sshll.u32 %s1131_s3, 4  ;;  %s2986_s26 = int_to_ptr.vmem [resolvable:$true] %s2985_s26 }
0x14d1   : > { %v2857_v59 = vadd.f32 %v3603_v49, %v2856_v47  ;;  %v3794_v49 = vmov 0   ;;  %v3374_v47 = vsel %vm2951_vm7, 1.0, %v3785_v9  ;;  %v2549_v24 = vadd.f32 %v3599_v53, %v4389_v48 }
0x14d2   : > { %3581 = vset.pattern.permute.xlu1 %v3794_v49  ;;  %3582 = vset.pattern.permute.xlu0 %v3794_v49 }
0x14d3   : > { %v2871_v61 = vadd.f32 %v2870_v60, %v2857_v59  ;;  %v2547_v60 = vadd.f32 %v3599_v53, %v4387_v20 }
0x14d5   : > { %v2874_v63 = vmax.f32 %v2871_v61, 0.0 }
0x14d7   : > { %v2880_v0 = vsel %vm1548_vm2, %v2874_v63, 0.0 }
0x14d8   : > { %2881 = vadd.xlane.f32.xlu1 %v2880_v0 }
0x1543   : > { %v2879_v1 = vpop.xlane.xlu0 %2878 }
0x1544   : > { %v2883_v2 = vmul.f32 %v2879_v1, %v4355_v39 }
0x1546   : > { %v2885_v3 = vsub.f32 %v2873_v57, %v2883_v2 }
0x1548   : > { %v2887_v4 = vmul.f32 %v2885_v3, %v2885_v3 }
0x154a   : > { %v2889_v7 = vsel %vm1548_vm2, %v2887_v4, 0.0 }
0x154b   : > { %v2882_v8 = vpop.xlane.xlu1 %2881  ;;  %2890 = vadd.xlane.f32.xlu0 %v2889_v7 }
0x154c   : > { %v2884_v14 = vmul.f32 %v2882_v8, %v4355_v39 }
0x154e   : > { %v2886_v15 = vsub.f32 %v2874_v63, %v2884_v14 }
0x1550   : > { %v2888_v16 = vmul.f32 %v2886_v15, %v2886_v15 }
0x1552   : > { %v2892_v17 = vsel %vm1548_vm2, %v2888_v16, 0.0 }
0x1553   : > { %2893 = vadd.xlane.f32.xlu1 %v2892_v17 }
0x15be   : > { %v2891_v18 = vpop.xlane.xlu0 %2890 }
0x15bf   : > { %v2895_v19 = vmul.f32 %v2891_v18, %v4355_v39 }
0x15c1   : > { %v2897_v50 = vadd.f32 0.0001, %v2895_v19 }
0x15c3   : > { %3664 = vrsqrt.f32 %v2897_v50  ;;  %vm2905_vm1 = vweird.f32 %v2897_v50 }
0x15c6   : > { %v2894_v5 = vpop.xlane.xlu1 %2893 }
0x15c7   : > { %v2896_v21 = vmul.f32 %v2894_v5, %v4355_v39  ;;  %v3605_v39 = vld [vmem:[%s4514_s1] ss:$0 sm:$0xff]  ;;  %s3445_s1 = sshll.u32 %s4019_s0, 4  ;;  %s2973_s0 = scalar_lea.sflag [#allocation6], %s1129_s9 }
0x15c8   : > { %s2984_s4 = scalar_lea.hbm %s3991_s16, %s3445_s1  ;;  %s3700_s1 = scalar_lea.hbm %s3991_s16, 32 }
0x15c9   : > { %v3665_v22 = vpop.eup %3664  ;;  %v2898_v23 = vadd.f32 0.0001, %v2896_v21  ;;  %s2987_s8 = sshll.u32 %s2984_s4, 4  ;;  %s2988_s8 = int_to_ptr.hbm [resolvable:$true] %s2987_s8 }
0x15ca   : > { %v2900_v26 = vmul.f32 %v3665_v22, %v2897_v50  ;;  %vm2906_vm15 = vweird.f32 %v3665_v22  ;;  %s3694_s11 = sshra.s32 %s2988_s8, 4  ;;  %s3695_s11 = int_to_ptr.hbm [resolvable:$true] %s3694_s11 }
0x15cb   : > { %3666 = vrsqrt.f32 %v2898_v23  ;;  %vm2907_vm12 = vmor %vm2905_vm1, %vm2906_vm15  ;;  %vm2915_vm14 = vweird.f32 %v2898_v23  ;;  %s3696_s23 = scalar_lea.hbm %s3695_s11, 16  ;;  %p3701_p5 = scmp.lt.s32.totalorder %s3695_s11, %s3991_s16 }
0x15cc   : > { %v2901_v6 = vmul.f32 %v3665_v22, %v2900_v26  ;;  %p3697_p2 = scmp.ne.s32.totalorder %s3695_s11, %s3696_s23  ;;  %p3702_p6 = scmp.lt.s32.totalorder %s3700_s1, %s3696_s23 }
0x15ce   : > { %v2902_v52 = vmul.f32 0.5, %v2901_v6  ;;  %p3698_p3 = pnand %p3697_p2, %p4036_p10  ;;  %p3703_p7 = por %p3702_p6, %p3701_p5 }
0x15d0   : > { %v2903_v27 = vsub.f32 1.5, %v2902_v52  ;;  %p3699_p4 = pneg %p3698_p3 }
0x15d1   : > { %v3667_v28 = vpop.eup %3666 }
0x15d2   : > { %v2904_v29 = vmul.f32 %v3665_v22, %v2903_v27  ;;  %v2910_v13 = vmul.f32 %v3667_v28, %v2898_v23  ;;  %vm2916_vm13 = vweird.f32 %v3667_v28  ;;  %p3704_p8 = pnand %p3703_p7, %p3699_p4 }
0x15d3   : > { %vm2917_vm6 = vmor %vm2915_vm14, %vm2916_vm13 }
0x15d4   : > { %v2908_v31 = vsel %vm2907_vm12, %v3665_v22, %v2904_v29  ;;  %v2911_v58 = vmul.f32 %v3667_v28, %v2910_v13 }
0x15d5   : > { %v2919_v32 = vmul.f32 %v2908_v31, %v2885_v3 }
0x15d6   : > { %v2912_v33 = vmul.f32 0.5, %v2911_v58 }
0x15d7   : > { %v2924_v34 = vmul.f32 %v3604_v30, %v2919_v32 }
0x15d8   : > { %v2913_v35 = vsub.f32 1.5, %v2912_v33 }
0x15d9   : > { %v2929_v36 = vadd.f32 %v3605_v39, %v2924_v34 }
0x15da   : > { %v2914_v62 = vmul.f32 %v3667_v28, %v2913_v35 }
0x15db   : > { %v2931_v38 = vmul.f32 %v4053_v10, %v2929_v36 }
0x15dc   : > { %v2918_v40 = vsel %vm2917_vm6, %v3667_v28, %v2914_v62 }
0x15dd   : > { %v2920_v41 = vmul.f32 %v2918_v40, %v2886_v15  ;;  %v2937_v12 = vmul.f32 %v3606_v37, %v2931_v38 }
0x15df   : > { %v2939_v42 = vsel %vm1548_vm2, %v2937_v12, 0.0  ;;  %v2925_v43 = vmul.f32 %v3604_v30, %v2920_v41 }
0x15e0   : > { %2940 = vadd.xlane.f32.xlu2 %v2939_v42 }
0x15e1   : > { %v2930_v44 = vadd.f32 %v3605_v39, %v2925_v43 }
0x15e3   : > { %v2932_v25 = vmul.f32 %v4056_v11, %v2930_v44 }
0x15e5   : > { %v2938_v45 = vmul.f32 %v3606_v37, %v2932_v25 }
0x15e7   : > { %v2942_v46 = vsel %vm1548_vm2, %v2938_v45, 0.0 }
0x15e8   : > { %2943 = vadd.xlane.f32.xlu0 %v2942_v46 }
0x1653   : > { %v2941_v54 = vpop.xlane.xlu2 %2940 }
0x1654   : > { %v2949_v55 = vadd.f32 %v3607_v51, %v2941_v54 }
0x1656   : > { %2956 = vperm.xlu1 %3581, %v2949_v55  }
0x165b   : > { %v2944_v56 = vpop.xlane.xlu0 %2943 }
0x165c   : > { %v2950_v57 = vadd.f32 %v3607_v51, %v2944_v56 }
0x165e   : > { %2961 = vperm.xlu0 %3582, %v2950_v57  }
0x16c8   : > { %v2957_v59 = vpop.permute.xlu1 %2956 }
0x16c9   : > { %v2964_v61 = vmul.f32 %v3374_v47, %v2957_v59 }
0x16cb   : > { %v2966_v63 = vadd.f32 %v2964_v61, %v2547_v60 }
0x16cd   : > { %v2968_v0 = vmul.f32 %v4053_v10, %v2966_v63 }
0x16cf   : > { %2970 = vst [vmem:[%s1131_s3] sm:$0xff] %v2968_v0 }
0x16d0   : > { %v2962_v1 = vpop.permute.xlu0 %2961 }
0x16d1   : > { %v2965_v9 = vmul.f32 %v3374_v47, %v2962_v1 }
0x16d3   : > { %v2967_v2 = vadd.f32 %v2965_v9, %v2549_v24 }
0x16d5   : > { %v2969_v20 = vmul.f32 %v4056_v11, %v2967_v2 }
0x16d7   : > { %2971 = vst [vmem:[%s1131_s3 + $0x8] sm:$0xff] %v2969_v20 }
0x16d8   : > { %3707 = shalt.err (!%p3704_p8)
}
0x16d9   : > { %s3795_s4 = smov 128   ;;  %s3796_s12 = smov 8  }
0x16da   : > { %3446 = dma.vmem_to_hbm [thread:$0]  (%p4036_p10), %s2986_s26, 256, %s2988_s8, %s2973_s0, %s3795_s4, %s3795_s4, %s3796_s12  }
0x16db PF: > { %p3452_p9 = scmp.ge.s32.totalorder %s3744_s2, 2  ;;  %s3002_s3 = sand.u32 1, %s3732_s10  }
0x16dc   : > { %s3003_s9 = scalar_lea.sflag [#allocation6], %s3002_s3 }
0x16dd   : > { %p3449_p12 = pnand %p3452_p9, %p4040_p11 }
0x16df   : > { %p3450_p13 = pneg %p3449_p12 }
0x16e1   : > { %3727 = dma.done.wait (%p3450_p13), %s3003_s9, 256  }
0x16e2   : > { %3729 = vsyncadd (%p3450_p13), %s3003_s9, 4294967040  ;;  %p97_p0 = scmp.ge.s32.totalorder %s4023_s7, 4   ;;  %s4517_s10 = smov %s3736_s5 }
0x16e3   : > { %s4518_s5 = smov %s3740_s27  ;;  %s4519_s27 = smov %s4034_s6 }
0x16e4   : > { %s4520_s2 = smov %s4023_s7  ;;  %99 = sbr.rel (!%p97_p0) target bundleno = 88 (0x58), region = 241 }
0x16e9   :  { %3009 = vsyncpa [#allocation6], 1 }
0x16ea   :  { %3011 = vsyncpa [#allocation6 + $0x1], 1 }

</bundles_post_ra>
